<compile_context>
chip_gen: v5e
topology: v5e:2x2
jax: 0.10.0
libtpu: 0.0.40
codegen_flags: <defaults>
</compile_context>

<pallas_src>
import functools

import jax
import jax.numpy as jnp
from jax.experimental import pallas as pl
from jax.experimental.pallas import tpu as pltpu

K_CLS = 2    # classifier classes (PointNetCls k=2)
C_IN = 5     # input point channels (STNkd(5), Conv1d(5, 12, 1))
OUT_W = 128  # packed, lane-dense per-cloud output width: [0:2]=logp, [2:27]=trans (5x5 row-major)

# ---- bias slab layout: each segment starts at a 128-aligned lane offset (static slices) ----
_BIAS_SEGS = (
    ("s_b1", 12), ("s_b2", 24), ("s_b3", 192), ("s_fb1", 96), ("s_fb2", 48), ("s_fb3", 25),
    ("f_b1", 12), ("f_b2", 24), ("f_b3", 192), ("a_b", 1),
    ("c_b1", 512), ("c_b2", 256), ("c_b3", K_CLS),
)


def _bias_layout():
    offs, off = {}, 0
    for name, w in _BIAS_SEGS:
        offs[name] = off
        off += ((w + 127) // 128) * 128
    return offs, off


_BIAS_OFF, _BIAS_TOTAL = _bias_layout()
_BIAS_W = dict(_BIAS_SEGS)


def pointnet_cls_kernel(x_ref,
                        conv_w1, conv_w2, conv_w3,   # (2,5,12),(2,12,24),(2,24,192) bf16: [0]=STN, [1]=feat
                        s_fw1, s_fw2, s_fw3,         # (192,96),(96,48),(48,25) bf16
                        a_w,                         # (192,1) bf16  (attn1 @ attn2 folded)
                        c_w1, c_w2, c_w3,            # (192,512),(512,256),(256,2) bf16
                        bias_ref,                    # (1, _BIAS_TOTAL) f32 bias slab
                        out_ref):                    # (Bt, OUT_W) f32 packed output
    bt, n, _ = x_ref.shape

    def bias(name):
        off = _BIAS_OFF[name]
        return bias_ref[:, off:off + _BIAS_W[name]]          # (1, w) broadcasts over rows

    def dense(h, w_ref, bname, relu=True, idx=None):
        w = w_ref[idx] if idx is not None else w_ref[...]
        y = jnp.dot(h.astype(jnp.bfloat16), w,
                    preferred_element_type=jnp.float32) + bias(bname)
        return jnp.maximum(y, 0.0) if relu else y

    x = x_ref[...].reshape(bt * n, C_IN)                      # (Bt*N, 5) channels-last points

    # ---------------- STNkd(k=5): input transform ----------------
    h = dense(x, conv_w1, "s_b1", idx=0)                      # (Bt*N, 12)  conv1+bn1+relu
    h = dense(h, conv_w2, "s_b2", idx=0)                      # (Bt*N, 24)  conv2+bn2+relu
    h = dense(h, conv_w3, "s_b3", idx=0)                      # (Bt*N, 192) conv3+bn3+relu
    g = jnp.max(h.reshape(bt, n, 192), axis=1)                # (Bt, 192)   per-cloud max pool
    g = dense(g, s_fw1, "s_fb1")                              # (Bt, 96)    fc1+bn4+relu
    g = dense(g, s_fw2, "s_fb2")                              # (Bt, 48)    fc2+bn5+relu
    trans25 = dense(g, s_fw3, "s_fb3", relu=False)            # (Bt, 25)    fc3 + bias + eye(5) (folded)

    # Apply the 5x5 transform with 5 VPU rank-1 updates (no tiny MXU dots, no 5x5 reshape).
    x3 = x_ref[...]                                           # (Bt, N, 5)
    xt = x3[:, :, 0:1] * trans25[:, None, 0:5]
    for i in range(1, 5):
        xt = xt + x3[:, :, i:i + 1] * trans25[:, None, 5 * i:5 * i + 5]
    xt = xt.reshape(bt * n, C_IN)                             # (Bt*N, 5) == bmm(x^T, trans)

    # -------- PointNetfeat (global_feat=True, feature_transform=False) --------
    p = dense(xt, conv_w1, "f_b1", idx=1)                     # (Bt*N, 12)  conv1+bn1+relu
    p = dense(p, conv_w2, "f_b2", idx=1)                      # (Bt*N, 24)  conv2+bn2+relu
    p = dense(p, conv_w3, "f_b3", relu=False, idx=1)          # (Bt*N, 192) bn3(conv3), NO relu
    a = dense(p, a_w, "a_b", relu=False)                      # (Bt*N, 1)   attn2(attn1(.)) folded
    a = a.reshape(bt, n, 1)
    a = a - jnp.max(a, axis=1, keepdims=True)                 # softmax over points (dim=1)
    e = jnp.exp(a)
    inv = pl.reciprocal(jnp.sum(e, axis=1, keepdims=True), approx=True)
    attn = e * inv                                            # (Bt, N, 1)
    feat = jnp.sum(p.reshape(bt, n, 192) * attn, axis=1)      # (Bt, 192) attention pooling

    # ---------------- classifier head ----------------
    c = dense(feat, c_w1, "c_b1")                             # (Bt, 512) fc1+bn1+relu
    # TODO(synk): nn.Dropout(p=0.3) treated as identity (eval-mode forward).
    c = dense(c, c_w2, "c_b2")                                # (Bt, 256) fc2+bn2+relu
    logits = dense(c, c_w3, "c_b3", relu=False)               # (Bt, K_CLS)
    z = logits - jnp.max(logits, axis=1, keepdims=True)
    logp = z - jnp.log(jnp.sum(jnp.exp(z), axis=1, keepdims=True))   # log_softmax dim=1

    # packed, lane-dense output block: [0:K_CLS]=logp, [K_CLS:K_CLS+25]=trans(5x5 row-major)
    out_ref[...] = jnp.zeros((bt, OUT_W), jnp.float32)
    out_ref[:, 0:K_CLS] = logp
    out_ref[:, K_CLS:K_CLS + 25] = trans25


def pointnet_cls_forward(x_bcn, params, block_b=8):
    B, C, N = x_bcn.shape
    assert C == C_IN
    x_bnc = jnp.transpose(x_bcn, (0, 2, 1)).astype(jnp.float32)   # (B, N, C) channels-last

    bt = min(block_b, B)
    n_blocks = -(-B // bt)
    b_pad = n_blocks * bt
    if b_pad != B:
        x_bnc = jnp.pad(x_bnc, ((0, b_pad - B), (0, 0), (0, 0)))

    def const_spec(p):
        zeros = (0,) * p.ndim
        return pl.BlockSpec(p.shape, lambda b, _z=zeros: _z)      # weights resident, constant block

    in_specs = [pl.BlockSpec((bt, N, C_IN), lambda b: (b, 0, 0))]
    in_specs += [const_spec(p) for p in params]

    packed = pl.pallas_call(
        pointnet_cls_kernel,
        out_shape=jax.ShapeDtypeStruct((b_pad, OUT_W), jnp.float32),
        grid=(n_blocks,),
        in_specs=in_specs,
        out_specs=pl.BlockSpec((bt, OUT_W), lambda b: (b, 0)),
        compiler_params=pltpu.CompilerParams(dimension_semantics=("parallel",)),
    )(x_bnc, *params)

    logp = packed[:B, :K_CLS]
    trans = packed[:B, K_CLS:K_CLS + 25].reshape(B, 5, 5)
    trans_feat = None   # feature_transform=False in PointNetCls.__init__
    return logp, trans, trans_feat


def _affine(key, cin, cout, with_bn):
    """Conv1d(k=1)/Linear weight (cin,cout) + bias, with eval-mode BN folded in."""
    ks = jax.random.split(key, 6)
    w = 0.1 * jax.random.normal(ks[0], (cin, cout), jnp.float32)
    b = 0.1 * jax.random.normal(ks[1], (cout,), jnp.float32)
    if with_bn:
        gamma = 1.0 + 0.1 * jax.random.normal(ks[2], (cout,), jnp.float32)
        beta = 0.1 * jax.random.normal(ks[3], (cout,), jnp.float32)
        mean = 0.1 * jax.random.normal(ks[4], (cout,), jnp.float32)
        var = 1.0 + 0.5 * jax.random.uniform(ks[5], (cout,), jnp.float32)
        s = gamma / jnp.sqrt(var + 1e-5)
        w = w * s[None, :]
        b = (b - mean) * s + beta
    return w, b


def make_params(key):
    it = iter(jax.random.split(key, 20))
    # --- STNkd(k=5) ---
    s_w1, s_b1 = _affine(next(it), 5, 12, True)          # conv1 + bn1
    s_w2, s_b2 = _affine(next(it), 12, 24, True)         # conv2 + bn2
    s_w3, s_b3 = _affine(next(it), 24, 192, True)        # conv3 + bn3
    s_fw1, s_fb1 = _affine(next(it), 192, 96, True)      # fc1 + bn4
    s_fw2, s_fb2 = _affine(next(it), 96, 48, True)       # fc2 + bn5
    s_fw3, s_fb3 = _affine(next(it), 48, 25, False)      # fc3 (no bn)
    s_fb3 = s_fb3 + jnp.eye(5, dtype=jnp.float32).reshape(25)   # fold the +eye(5) of STNkd
    # --- PointNetfeat ---
    f_w1, f_b1 = _affine(next(it), 5, 12, True)          # conv1 + bn1
    f_w2, f_b2 = _affine(next(it), 12, 24, True)         # conv2 + bn2
    f_w3, f_b3 = _affine(next(it), 24, 192, True)        # conv3 + bn3
    a_w1, a_b1 = _affine(next(it), 192, 48, False)       # attn1
    a_w2, a_b2 = _affine(next(it), 48, 1, False)         # attn2
    a_w = a_w1 @ a_w2                                    # fold attn1@attn2 (no nonlinearity between)
    a_b = a_b1 @ a_w2 + a_b2                             # (1,)
    # --- PointNetCls head ---
    # TODO(synk): reference declares fc1 = Linear(1024, 512) but the global feature is 192-dim;
    # instantiated as Linear(192, 512) so the forward graph is well-formed.
    c_w1, c_b1 = _affine(next(it), 192, 512, True)       # fc1 + bn1
    c_w2, c_b2 = _affine(next(it), 512, 256, True)       # fc2 + bn2
    c_w3, c_b3 = _affine(next(it), 256, K_CLS, False)    # fc3

    # weight slabs: bf16 MXU operands, duplicate-shaped conv weights stacked
    weights = [
        jnp.stack([s_w1, f_w1]).astype(jnp.bfloat16),    # (2, 5, 12)
        jnp.stack([s_w2, f_w2]).astype(jnp.bfloat16),    # (2, 12, 24)
        jnp.stack([s_w3, f_w3]).astype(jnp.bfloat16),    # (2, 24, 192)
        s_fw1.astype(jnp.bfloat16), s_fw2.astype(jnp.bfloat16), s_fw3.astype(jnp.bfloat16),
        a_w.astype(jnp.bfloat16),
        c_w1.astype(jnp.bfloat16), c_w2.astype(jnp.bfloat16), c_w3.astype(jnp.bfloat16),
    ]

    # single f32 bias slab with 128-lane-aligned segments
    bias_vals = {"s_b1": s_b1, "s_b2": s_b2, "s_b3": s_b3, "s_fb1": s_fb1, "s_fb2": s_fb2,
                 "s_fb3": s_fb3, "f_b1": f_b1, "f_b2": f_b2, "f_b3": f_b3, "a_b": a_b,
                 "c_b1": c_b1, "c_b2": c_b2, "c_b3": c_b3}
    slab = jnp.zeros((1, _BIAS_TOTAL), jnp.float32)
    for name, w in _BIAS_SEGS:
        off = _BIAS_OFF[name]
        slab = slab.at[0, off:off + w].set(bias_vals[name].reshape(-1))
    return weights + [slab]


if __name__ == "__main__":
    key = jax.random.PRNGKey(0)
    kx, kp = jax.random.split(key)
    B, N = 16, 16                                     # 2 "parallel" grid steps of Bt=8 clouds
    x = jax.random.normal(kx, (B, C_IN, N), jnp.float32)   # PyTorch NCW layout (B, C=5, N)
    params = make_params(kp)

    fwd = jax.jit(functools.partial(pointnet_cls_forward, params=params))
    logp, trans, trans_feat = fwd(x)
    jax.block_until_ready((logp, trans))

    assert logp.shape == (B, K_CLS)
    assert trans.shape == (B, 5, 5)
    assert trans_feat is None
    assert bool(jnp.all(jnp.isfinite(logp))) and bool(jnp.all(jnp.isfinite(trans)))
    # log_softmax rows must exponentiate to probability distributions
    assert bool(jnp.allclose(jnp.sum(jnp.exp(logp), axis=1), 1.0, atol=1e-4))
    print("KERNEL_OK")
</pallas_src>

<mosaic_0001>
module attributes {stable_mosaic.version = 11 : i64} {
  func.func @pointnet_cls_kernel(%arg0: i32, %arg1: memref<8x16x5xf32, #tpu.memory_space<vmem>>, %arg2: memref<2x5x12xbf16, #tpu.memory_space<vmem>>, %arg3: memref<2x12x24xbf16, #tpu.memory_space<vmem>>, %arg4: memref<2x24x192xbf16, #tpu.memory_space<vmem>>, %arg5: memref<192x96xbf16, #tpu.memory_space<vmem>>, %arg6: memref<96x48xbf16, #tpu.memory_space<vmem>>, %arg7: memref<48x25xbf16, #tpu.memory_space<vmem>>, %arg8: memref<192x1xbf16, #tpu.memory_space<vmem>>, %arg9: memref<192x512xbf16, #tpu.memory_space<vmem>>, %arg10: memref<512x256xbf16, #tpu.memory_space<vmem>>, %arg11: memref<256x2xbf16, #tpu.memory_space<vmem>>, %arg12: memref<1x2432xf32, #tpu.memory_space<vmem>>, %arg13: memref<8x128xf32, #tpu.memory_space<vmem>>) attributes {dimension_semantics = [#tpu.dimension_semantics<parallel>], iteration_bounds = array<i64: 2>, scalar_prefetch = 0 : i64, scratch_operands = 0 : i64, tpu.core_type = #tpu.core_type<tc>, window_params = [{transform_indices = @transform_0, window_bounds = array<i64: 8, 16, 5>}, {pipeline_mode = #tpu.pipeline_mode<synchronous>, transform_indices = @transform_1, window_bounds = array<i64: 2, 5, 12>}, {pipeline_mode = #tpu.pipeline_mode<synchronous>, transform_indices = @transform_2, window_bounds = array<i64: 2, 12, 24>}, {pipeline_mode = #tpu.pipeline_mode<synchronous>, transform_indices = @transform_3, window_bounds = array<i64: 2, 24, 192>}, {pipeline_mode = #tpu.pipeline_mode<synchronous>, transform_indices = @transform_4, window_bounds = array<i64: 192, 96>}, {pipeline_mode = #tpu.pipeline_mode<synchronous>, transform_indices = @transform_5, window_bounds = array<i64: 96, 48>}, {pipeline_mode = #tpu.pipeline_mode<synchronous>, transform_indices = @transform_6, window_bounds = array<i64: 48, 25>}, {pipeline_mode = #tpu.pipeline_mode<synchronous>, transform_indices = @transform_7, window_bounds = array<i64: 192, 1>}, {pipeline_mode = #tpu.pipeline_mode<synchronous>, transform_indices = @transform_8, window_bounds = array<i64: 192, 512>}, {pipeline_mode = #tpu.pipeline_mode<synchronous>, transform_indices = @transform_9, window_bounds = array<i64: 512, 256>}, {pipeline_mode = #tpu.pipeline_mode<synchronous>, transform_indices = @transform_10, window_bounds = array<i64: 256, 2>}, {pipeline_mode = #tpu.pipeline_mode<synchronous>, transform_indices = @transform_11, window_bounds = array<i64: 1, 2432>}, {transform_indices = @transform_12, window_bounds = array<i64: 8, 128>}]} {
    %c0 = arith.constant 0 : index
    %c0_0 = arith.constant 0 : index
    %c0_1 = arith.constant 0 : index
    %0 = vector.load %arg1[%c0, %c0_0, %c0_1] : memref<8x16x5xf32, #tpu.memory_space<vmem>>, vector<8x16x5xf32>
    %1 = vector.shape_cast %0 : vector<8x16x5xf32> to vector<128x5xf32>
    %c0_2 = arith.constant 0 : index
    %c0_3 = arith.constant 0 : index
    %c0_4 = arith.constant 0 : index
    %2 = vector.load %arg2[%c0_2, %c0_3, %c0_4] : memref<2x5x12xbf16, #tpu.memory_space<vmem>>, vector<1x5x12xbf16>
    %3 = vector.shape_cast %2 : vector<1x5x12xbf16> to vector<5x12xbf16>
    %4 = arith.truncf %1 : vector<128x5xf32> to vector<128x5xbf16>
    %cst = arith.constant dense<0.000000e+00> : vector<128x12xf32>
    %5 = tpu.matmul %4, %3, %cst {dimension_numbers = #tpu.dot_dimension_numbers<[1], [0], [0], [1], [0, 0, 1, 1], [], []>} : vector<128x5xbf16>, vector<5x12xbf16>, vector<128x12xf32> -> vector<128x12xf32>
    %c0_5 = arith.constant 0 : index
    %c0_6 = arith.constant 0 : index
    %6 = vector.load %arg12[%c0_5, %c0_6] : memref<1x2432xf32, #tpu.memory_space<vmem>>, vector<1x12xf32>
    %7 = vector.broadcast %6 : vector<1x12xf32> to vector<128x12xf32>
    %8 = arith.addf %5, %7 : vector<128x12xf32>
    %cst_7 = arith.constant 0.000000e+00 : f32
    %9 = vector.broadcast %cst_7 : f32 to vector<128x12xf32>
    %10 = arith.maximumf %8, %9 : vector<128x12xf32>
    %c0_8 = arith.constant 0 : index
    %c0_9 = arith.constant 0 : index
    %c0_10 = arith.constant 0 : index
    %11 = vector.load %arg3[%c0_8, %c0_9, %c0_10] : memref<2x12x24xbf16, #tpu.memory_space<vmem>>, vector<1x12x24xbf16>
    %12 = vector.shape_cast %11 : vector<1x12x24xbf16> to vector<12x24xbf16>
    %13 = arith.truncf %10 : vector<128x12xf32> to vector<128x12xbf16>
    %cst_11 = arith.constant dense<0.000000e+00> : vector<128x24xf32>
    %14 = tpu.matmul %13, %12, %cst_11 {dimension_numbers = #tpu.dot_dimension_numbers<[1], [0], [0], [1], [0, 0, 1, 1], [], []>} : vector<128x12xbf16>, vector<12x24xbf16>, vector<128x24xf32> -> vector<128x24xf32>
    %c0_12 = arith.constant 0 : index
    %c128 = arith.constant 128 : index
    %15 = vector.load %arg12[%c0_12, %c128] : memref<1x2432xf32, #tpu.memory_space<vmem>>, vector<1x24xf32>
    %16 = vector.broadcast %15 : vector<1x24xf32> to vector<128x24xf32>
    %17 = arith.addf %14, %16 : vector<128x24xf32>
    %cst_13 = arith.constant 0.000000e+00 : f32
    %18 = vector.broadcast %cst_13 : f32 to vector<128x24xf32>
    %19 = arith.maximumf %17, %18 : vector<128x24xf32>
    %c0_14 = arith.constant 0 : index
    %c0_15 = arith.constant 0 : index
    %c0_16 = arith.constant 0 : index
    %20 = vector.load %arg4[%c0_14, %c0_15, %c0_16] : memref<2x24x192xbf16, #tpu.memory_space<vmem>>, vector<1x24x192xbf16>
    %21 = vector.shape_cast %20 : vector<1x24x192xbf16> to vector<24x192xbf16>
    %22 = arith.truncf %19 : vector<128x24xf32> to vector<128x24xbf16>
    %cst_17 = arith.constant dense<0.000000e+00> : vector<128x192xf32>
    %23 = tpu.matmul %22, %21, %cst_17 {dimension_numbers = #tpu.dot_dimension_numbers<[1], [0], [0], [1], [0, 0, 1, 1], [], []>} : vector<128x24xbf16>, vector<24x192xbf16>, vector<128x192xf32> -> vector<128x192xf32>
    %c0_18 = arith.constant 0 : index
    %c256 = arith.constant 256 : index
    %24 = vector.load %arg12[%c0_18, %c256] : memref<1x2432xf32, #tpu.memory_space<vmem>>, vector<1x192xf32>
    %25 = vector.broadcast %24 : vector<1x192xf32> to vector<128x192xf32>
    %26 = arith.addf %23, %25 : vector<128x192xf32>
    %cst_19 = arith.constant 0.000000e+00 : f32
    %27 = vector.broadcast %cst_19 : f32 to vector<128x192xf32>
    %28 = arith.maximumf %26, %27 : vector<128x192xf32>
    %29 = vector.shape_cast %28 : vector<128x192xf32> to vector<8x16x192xf32>
    %cst_20 = arith.constant dense<0xFF800000> : vector<8x192xf32>
    %30 = vector.multi_reduction <maximumf>, %29, %cst_20 [1] : vector<8x16x192xf32> to vector<8x192xf32>
    %c0_21 = arith.constant 0 : index
    %c0_22 = arith.constant 0 : index
    %31 = vector.load %arg5[%c0_21, %c0_22] : memref<192x96xbf16, #tpu.memory_space<vmem>>, vector<192x96xbf16>
    %32 = arith.truncf %30 : vector<8x192xf32> to vector<8x192xbf16>
    %cst_23 = arith.constant dense<0.000000e+00> : vector<8x96xf32>
    %33 = tpu.matmul %32, %31, %cst_23 {dimension_numbers = #tpu.dot_dimension_numbers<[1], [0], [0], [1], [0, 0, 1, 1], [], []>} : vector<8x192xbf16>, vector<192x96xbf16>, vector<8x96xf32> -> vector<8x96xf32>
    %c0_24 = arith.constant 0 : index
    %c512 = arith.constant 512 : index
    %34 = vector.load %arg12[%c0_24, %c512] : memref<1x2432xf32, #tpu.memory_space<vmem>>, vector<1x96xf32>
    %35 = vector.broadcast %34 : vector<1x96xf32> to vector<8x96xf32>
    %36 = arith.addf %33, %35 : vector<8x96xf32>
    %cst_25 = arith.constant 0.000000e+00 : f32
    %37 = vector.broadcast %cst_25 : f32 to vector<8x96xf32>
    %38 = arith.maximumf %36, %37 : vector<8x96xf32>
    %c0_26 = arith.constant 0 : index
    %c0_27 = arith.constant 0 : index
    %39 = vector.load %arg6[%c0_26, %c0_27] : memref<96x48xbf16, #tpu.memory_space<vmem>>, vector<96x48xbf16>
    %40 = arith.truncf %38 : vector<8x96xf32> to vector<8x96xbf16>
    %cst_28 = arith.constant dense<0.000000e+00> : vector<8x48xf32>
    %41 = tpu.matmul %40, %39, %cst_28 {dimension_numbers = #tpu.dot_dimension_numbers<[1], [0], [0], [1], [0, 0, 1, 1], [], []>} : vector<8x96xbf16>, vector<96x48xbf16>, vector<8x48xf32> -> vector<8x48xf32>
    %c0_29 = arith.constant 0 : index
    %c640 = arith.constant 640 : index
    %42 = vector.load %arg12[%c0_29, %c640] : memref<1x2432xf32, #tpu.memory_space<vmem>>, vector<1x48xf32>
    %43 = vector.broadcast %42 : vector<1x48xf32> to vector<8x48xf32>
    %44 = arith.addf %41, %43 : vector<8x48xf32>
    %cst_30 = arith.constant 0.000000e+00 : f32
    %45 = vector.broadcast %cst_30 : f32 to vector<8x48xf32>
    %46 = arith.maximumf %44, %45 : vector<8x48xf32>
    %c0_31 = arith.constant 0 : index
    %c0_32 = arith.constant 0 : index
    %47 = vector.load %arg7[%c0_31, %c0_32] : memref<48x25xbf16, #tpu.memory_space<vmem>>, vector<48x25xbf16>
    %48 = arith.truncf %46 : vector<8x48xf32> to vector<8x48xbf16>
    %cst_33 = arith.constant dense<0.000000e+00> : vector<8x25xf32>
    %49 = tpu.matmul %48, %47, %cst_33 {dimension_numbers = #tpu.dot_dimension_numbers<[1], [0], [0], [1], [0, 0, 1, 1], [], []>} : vector<8x48xbf16>, vector<48x25xbf16>, vector<8x25xf32> -> vector<8x25xf32>
    %c0_34 = arith.constant 0 : index
    %c768 = arith.constant 768 : index
    %50 = vector.load %arg12[%c0_34, %c768] : memref<1x2432xf32, #tpu.memory_space<vmem>>, vector<1x25xf32>
    %51 = vector.broadcast %50 : vector<1x25xf32> to vector<8x25xf32>
    %52 = arith.addf %49, %51 : vector<8x25xf32>
    %c0_35 = arith.constant 0 : index
    %c0_36 = arith.constant 0 : index
    %c0_37 = arith.constant 0 : index
    %53 = vector.load %arg1[%c0_35, %c0_36, %c0_37] : memref<8x16x5xf32, #tpu.memory_space<vmem>>, vector<8x16x5xf32>
    %54 = vector.extract_strided_slice %53 {offsets = [0, 0, 0], sizes = [8, 16, 1], strides = [1, 1, 1]} : vector<8x16x5xf32> to vector<8x16x1xf32>
    %55 = vector.extract_strided_slice %52 {offsets = [0, 0], sizes = [8, 5], strides = [1, 1]} : vector<8x25xf32> to vector<8x5xf32>
    %56 = vector.shape_cast %55 : vector<8x5xf32> to vector<8x1x5xf32>
    %57 = vector.broadcast %54 : vector<8x16x1xf32> to vector<8x16x5xf32>
    %58 = vector.broadcast %56 : vector<8x1x5xf32> to vector<8x16x5xf32>
    %59 = arith.mulf %57, %58 : vector<8x16x5xf32>
    %60 = vector.extract_strided_slice %53 {offsets = [0, 0, 1], sizes = [8, 16, 1], strides = [1, 1, 1]} : vector<8x16x5xf32> to vector<8x16x1xf32>
    %61 = vector.extract_strided_slice %52 {offsets = [0, 5], sizes = [8, 5], strides = [1, 1]} : vector<8x25xf32> to vector<8x5xf32>
    %62 = vector.shape_cast %61 : vector<8x5xf32> to vector<8x1x5xf32>
    %63 = vector.broadcast %60 : vector<8x16x1xf32> to vector<8x16x5xf32>
    %64 = vector.broadcast %62 : vector<8x1x5xf32> to vector<8x16x5xf32>
    %65 = arith.mulf %63, %64 : vector<8x16x5xf32>
    %66 = arith.addf %59, %65 : vector<8x16x5xf32>
    %67 = vector.extract_strided_slice %53 {offsets = [0, 0, 2], sizes = [8, 16, 1], strides = [1, 1, 1]} : vector<8x16x5xf32> to vector<8x16x1xf32>
    %68 = vector.extract_strided_slice %52 {offsets = [0, 10], sizes = [8, 5], strides = [1, 1]} : vector<8x25xf32> to vector<8x5xf32>
    %69 = vector.shape_cast %68 : vector<8x5xf32> to vector<8x1x5xf32>
    %70 = vector.broadcast %67 : vector<8x16x1xf32> to vector<8x16x5xf32>
    %71 = vector.broadcast %69 : vector<8x1x5xf32> to vector<8x16x5xf32>
    %72 = arith.mulf %70, %71 : vector<8x16x5xf32>
    %73 = arith.addf %66, %72 : vector<8x16x5xf32>
    %74 = vector.extract_strided_slice %53 {offsets = [0, 0, 3], sizes = [8, 16, 1], strides = [1, 1, 1]} : vector<8x16x5xf32> to vector<8x16x1xf32>
    %75 = vector.extract_strided_slice %52 {offsets = [0, 15], sizes = [8, 5], strides = [1, 1]} : vector<8x25xf32> to vector<8x5xf32>
    %76 = vector.shape_cast %75 : vector<8x5xf32> to vector<8x1x5xf32>
    %77 = vector.broadcast %74 : vector<8x16x1xf32> to vector<8x16x5xf32>
    %78 = vector.broadcast %76 : vector<8x1x5xf32> to vector<8x16x5xf32>
    %79 = arith.mulf %77, %78 : vector<8x16x5xf32>
    %80 = arith.addf %73, %79 : vector<8x16x5xf32>
    %81 = vector.extract_strided_slice %53 {offsets = [0, 0, 4], sizes = [8, 16, 1], strides = [1, 1, 1]} : vector<8x16x5xf32> to vector<8x16x1xf32>
    %82 = vector.extract_strided_slice %52 {offsets = [0, 20], sizes = [8, 5], strides = [1, 1]} : vector<8x25xf32> to vector<8x5xf32>
    %83 = vector.shape_cast %82 : vector<8x5xf32> to vector<8x1x5xf32>
    %84 = vector.broadcast %81 : vector<8x16x1xf32> to vector<8x16x5xf32>
    %85 = vector.broadcast %83 : vector<8x1x5xf32> to vector<8x16x5xf32>
    %86 = arith.mulf %84, %85 : vector<8x16x5xf32>
    %87 = arith.addf %80, %86 : vector<8x16x5xf32>
    %88 = vector.shape_cast %87 : vector<8x16x5xf32> to vector<128x5xf32>
    %c1 = arith.constant 1 : index
    %c0_38 = arith.constant 0 : index
    %c0_39 = arith.constant 0 : index
    %89 = vector.load %arg2[%c1, %c0_38, %c0_39] : memref<2x5x12xbf16, #tpu.memory_space<vmem>>, vector<1x5x12xbf16>
    %90 = vector.shape_cast %89 : vector<1x5x12xbf16> to vector<5x12xbf16>
    %91 = arith.truncf %88 : vector<128x5xf32> to vector<128x5xbf16>
    %cst_40 = arith.constant dense<0.000000e+00> : vector<128x12xf32>
    %92 = tpu.matmul %91, %90, %cst_40 {dimension_numbers = #tpu.dot_dimension_numbers<[1], [0], [0], [1], [0, 0, 1, 1], [], []>} : vector<128x5xbf16>, vector<5x12xbf16>, vector<128x12xf32> -> vector<128x12xf32>
    %c0_41 = arith.constant 0 : index
    %c896 = arith.constant 896 : index
    %93 = vector.load %arg12[%c0_41, %c896] : memref<1x2432xf32, #tpu.memory_space<vmem>>, vector<1x12xf32>
    %94 = vector.broadcast %93 : vector<1x12xf32> to vector<128x12xf32>
    %95 = arith.addf %92, %94 : vector<128x12xf32>
    %cst_42 = arith.constant 0.000000e+00 : f32
    %96 = vector.broadcast %cst_42 : f32 to vector<128x12xf32>
    %97 = arith.maximumf %95, %96 : vector<128x12xf32>
    %c1_43 = arith.constant 1 : index
    %c0_44 = arith.constant 0 : index
    %c0_45 = arith.constant 0 : index
    %98 = vector.load %arg3[%c1_43, %c0_44, %c0_45] : memref<2x12x24xbf16, #tpu.memory_space<vmem>>, vector<1x12x24xbf16>
    %99 = vector.shape_cast %98 : vector<1x12x24xbf16> to vector<12x24xbf16>
    %100 = arith.truncf %97 : vector<128x12xf32> to vector<128x12xbf16>
    %cst_46 = arith.constant dense<0.000000e+00> : vector<128x24xf32>
    %101 = tpu.matmul %100, %99, %cst_46 {dimension_numbers = #tpu.dot_dimension_numbers<[1], [0], [0], [1], [0, 0, 1, 1], [], []>} : vector<128x12xbf16>, vector<12x24xbf16>, vector<128x24xf32> -> vector<128x24xf32>
    %c0_47 = arith.constant 0 : index
    %c1024 = arith.constant 1024 : index
    %102 = vector.load %arg12[%c0_47, %c1024] : memref<1x2432xf32, #tpu.memory_space<vmem>>, vector<1x24xf32>
    %103 = vector.broadcast %102 : vector<1x24xf32> to vector<128x24xf32>
    %104 = arith.addf %101, %103 : vector<128x24xf32>
    %cst_48 = arith.constant 0.000000e+00 : f32
    %105 = vector.broadcast %cst_48 : f32 to vector<128x24xf32>
    %106 = arith.maximumf %104, %105 : vector<128x24xf32>
    %c1_49 = arith.constant 1 : index
    %c0_50 = arith.constant 0 : index
    %c0_51 = arith.constant 0 : index
    %107 = vector.load %arg4[%c1_49, %c0_50, %c0_51] : memref<2x24x192xbf16, #tpu.memory_space<vmem>>, vector<1x24x192xbf16>
    %108 = vector.shape_cast %107 : vector<1x24x192xbf16> to vector<24x192xbf16>
    %109 = arith.truncf %106 : vector<128x24xf32> to vector<128x24xbf16>
    %cst_52 = arith.constant dense<0.000000e+00> : vector<128x192xf32>
    %110 = tpu.matmul %109, %108, %cst_52 {dimension_numbers = #tpu.dot_dimension_numbers<[1], [0], [0], [1], [0, 0, 1, 1], [], []>} : vector<128x24xbf16>, vector<24x192xbf16>, vector<128x192xf32> -> vector<128x192xf32>
    %c0_53 = arith.constant 0 : index
    %c1152 = arith.constant 1152 : index
    %111 = vector.load %arg12[%c0_53, %c1152] : memref<1x2432xf32, #tpu.memory_space<vmem>>, vector<1x192xf32>
    %112 = vector.broadcast %111 : vector<1x192xf32> to vector<128x192xf32>
    %113 = arith.addf %110, %112 : vector<128x192xf32>
    %c0_54 = arith.constant 0 : index
    %c0_55 = arith.constant 0 : index
    %114 = vector.load %arg8[%c0_54, %c0_55] : memref<192x1xbf16, #tpu.memory_space<vmem>>, vector<192x1xbf16>
    %115 = arith.truncf %113 : vector<128x192xf32> to vector<128x192xbf16>
    %cst_56 = arith.constant dense<0.000000e+00> : vector<128x1xf32>
    %116 = tpu.matmul %115, %114, %cst_56 {dimension_numbers = #tpu.dot_dimension_numbers<[1], [0], [0], [1], [0, 0, 1, 1], [], []>} : vector<128x192xbf16>, vector<192x1xbf16>, vector<128x1xf32> -> vector<128x1xf32>
    %c0_57 = arith.constant 0 : index
    %c1408 = arith.constant 1408 : index
    %117 = vector.load %arg12[%c0_57, %c1408] : memref<1x2432xf32, #tpu.memory_space<vmem>>, vector<1x1xf32>
    %118 = vector.broadcast %117 : vector<1x1xf32> to vector<128x1xf32>
    %119 = arith.addf %116, %118 : vector<128x1xf32>
    %120 = vector.shape_cast %119 : vector<128x1xf32> to vector<8x16x1xf32>
    %cst_58 = arith.constant dense<0xFF800000> : vector<8x1xf32>
    %121 = vector.multi_reduction <maximumf>, %120, %cst_58 [1] : vector<8x16x1xf32> to vector<8x1xf32>
    %122 = vector.shape_cast %121 : vector<8x1xf32> to vector<8x1x1xf32>
    %123 = vector.broadcast %122 : vector<8x1x1xf32> to vector<8x16x1xf32>
    %124 = arith.subf %120, %123 : vector<8x16x1xf32>
    %125 = math.exp %124 : vector<8x16x1xf32>
    %cst_59 = arith.constant dense<0.000000e+00> : vector<8x1xf32>
    %126 = vector.multi_reduction <add>, %125, %cst_59 [1] : vector<8x16x1xf32> to vector<8x1xf32>
    %127 = vector.shape_cast %126 : vector<8x1xf32> to vector<8x1x1xf32>
    %128 = tpu.reciprocal %127 {approx = true} : vector<8x1x1xf32> -> vector<8x1x1xf32>
    %129 = vector.broadcast %128 : vector<8x1x1xf32> to vector<8x16x1xf32>
    %130 = arith.mulf %125, %129 : vector<8x16x1xf32>
    %131 = vector.shape_cast %113 : vector<128x192xf32> to vector<8x16x192xf32>
    %132 = vector.broadcast %130 : vector<8x16x1xf32> to vector<8x16x192xf32>
    %133 = arith.mulf %131, %132 : vector<8x16x192xf32>
    %cst_60 = arith.constant dense<0.000000e+00> : vector<8x192xf32>
    %134 = vector.multi_reduction <add>, %133, %cst_60 [1] : vector<8x16x192xf32> to vector<8x192xf32>
    %c0_61 = arith.constant 0 : index
    %c0_62 = arith.constant 0 : index
    %135 = vector.load %arg9[%c0_61, %c0_62] : memref<192x512xbf16, #tpu.memory_space<vmem>>, vector<192x512xbf16>
    %136 = arith.truncf %134 : vector<8x192xf32> to vector<8x192xbf16>
    %cst_63 = arith.constant dense<0.000000e+00> : vector<8x512xf32>
    %137 = tpu.matmul %136, %135, %cst_63 {dimension_numbers = #tpu.dot_dimension_numbers<[1], [0], [0], [1], [0, 0, 1, 1], [], []>} : vector<8x192xbf16>, vector<192x512xbf16>, vector<8x512xf32> -> vector<8x512xf32>
    %c0_64 = arith.constant 0 : index
    %c1536 = arith.constant 1536 : index
    %138 = vector.load %arg12[%c0_64, %c1536] : memref<1x2432xf32, #tpu.memory_space<vmem>>, vector<1x512xf32>
    %139 = vector.broadcast %138 : vector<1x512xf32> to vector<8x512xf32>
    %140 = arith.addf %137, %139 : vector<8x512xf32>
    %cst_65 = arith.constant 0.000000e+00 : f32
    %141 = vector.broadcast %cst_65 : f32 to vector<8x512xf32>
    %142 = arith.maximumf %140, %141 : vector<8x512xf32>
    %c0_66 = arith.constant 0 : index
    %c0_67 = arith.constant 0 : index
    %143 = vector.load %arg10[%c0_66, %c0_67] : memref<512x256xbf16, #tpu.memory_space<vmem>>, vector<512x256xbf16>
    %144 = arith.truncf %142 : vector<8x512xf32> to vector<8x512xbf16>
    %cst_68 = arith.constant dense<0.000000e+00> : vector<8x256xf32>
    %145 = tpu.matmul %144, %143, %cst_68 {dimension_numbers = #tpu.dot_dimension_numbers<[1], [0], [0], [1], [0, 0, 1, 1], [], []>} : vector<8x512xbf16>, vector<512x256xbf16>, vector<8x256xf32> -> vector<8x256xf32>
    %c0_69 = arith.constant 0 : index
    %c2048 = arith.constant 2048 : index
    %146 = vector.load %arg12[%c0_69, %c2048] : memref<1x2432xf32, #tpu.memory_space<vmem>>, vector<1x256xf32>
    %147 = vector.broadcast %146 : vector<1x256xf32> to vector<8x256xf32>
    %148 = arith.addf %145, %147 : vector<8x256xf32>
    %cst_70 = arith.constant 0.000000e+00 : f32
    %149 = vector.broadcast %cst_70 : f32 to vector<8x256xf32>
    %150 = arith.maximumf %148, %149 : vector<8x256xf32>
    %c0_71 = arith.constant 0 : index
    %c0_72 = arith.constant 0 : index
    %151 = vector.load %arg11[%c0_71, %c0_72] : memref<256x2xbf16, #tpu.memory_space<vmem>>, vector<256x2xbf16>
    %152 = arith.truncf %150 : vector<8x256xf32> to vector<8x256xbf16>
    %cst_73 = arith.constant dense<0.000000e+00> : vector<8x2xf32>
    %153 = tpu.matmul %152, %151, %cst_73 {dimension_numbers = #tpu.dot_dimension_numbers<[1], [0], [0], [1], [0, 0, 1, 1], [], []>} : vector<8x256xbf16>, vector<256x2xbf16>, vector<8x2xf32> -> vector<8x2xf32>
    %c0_74 = arith.constant 0 : index
    %c2304 = arith.constant 2304 : index
    %154 = vector.load %arg12[%c0_74, %c2304] : memref<1x2432xf32, #tpu.memory_space<vmem>>, vector<1x2xf32>
    %155 = vector.broadcast %154 : vector<1x2xf32> to vector<8x2xf32>
    %156 = arith.addf %153, %155 : vector<8x2xf32>
    %cst_75 = arith.constant dense<0xFF800000> : vector<8xf32>
    %157 = vector.multi_reduction <maximumf>, %156, %cst_75 [1] : vector<8x2xf32> to vector<8xf32>
    %158 = vector.shape_cast %157 : vector<8xf32> to vector<8x1xf32>
    %159 = vector.broadcast %158 : vector<8x1xf32> to vector<8x2xf32>
    %160 = arith.subf %156, %159 : vector<8x2xf32>
    %161 = math.exp %160 : vector<8x2xf32>
    %cst_76 = arith.constant dense<0.000000e+00> : vector<8xf32>
    %162 = vector.multi_reduction <add>, %161, %cst_76 [1] : vector<8x2xf32> to vector<8xf32>
    %163 = vector.shape_cast %162 : vector<8xf32> to vector<8x1xf32>
    %164 = math.log %163 : vector<8x1xf32>
    %165 = vector.broadcast %164 : vector<8x1xf32> to vector<8x2xf32>
    %166 = arith.subf %160, %165 : vector<8x2xf32>
    %cst_77 = arith.constant 0.000000e+00 : f32
    %167 = vector.broadcast %cst_77 : f32 to vector<8x128xf32>
    %c0_78 = arith.constant 0 : index
    %c0_79 = arith.constant 0 : index
    %168 = vector.load %arg13[%c0_78, %c0_79] : memref<8x128xf32, #tpu.memory_space<vmem>>, vector<8x128xf32>
    tpu.vector_store %arg13[%c0_78, %c0_79], %167 {strides = array<i32>} : memref<8x128xf32, #tpu.memory_space<vmem>>, vector<8x128xf32>,
    %c0_80 = arith.constant 0 : index
    %c0_81 = arith.constant 0 : index
    %169 = vector.load %arg13[%c0_80, %c0_81] : memref<8x128xf32, #tpu.memory_space<vmem>>, vector<8x2xf32>
    tpu.vector_store %arg13[%c0_80, %c0_81], %166 {strides = array<i32>} : memref<8x128xf32, #tpu.memory_space<vmem>>, vector<8x2xf32>,
    %c0_82 = arith.constant 0 : index
    %c2 = arith.constant 2 : index
    %170 = vector.load %arg13[%c0_82, %c2] : memref<8x128xf32, #tpu.memory_space<vmem>>, vector<8x25xf32>
    tpu.vector_store %arg13[%c0_82, %c2], %52 {strides = array<i32>} : memref<8x128xf32, #tpu.memory_space<vmem>>, vector<8x25xf32>,
    return
  }
  func.func @transform_0(%arg0: i32) -> (i32, i32, i32) {
    %c0_i32 = arith.constant 0 : i32
    %c0_i32_0 = arith.constant 0 : i32
    %c0_i32_1 = arith.constant 0 : i32
    return %arg0, %c0_i32, %c0_i32_0 : i32, i32, i32
  }
  func.func @transform_1(%arg0: i32) -> (i32, i32, i32) {
    %c0_i32 = arith.constant 0 : i32
    %c0_i32_0 = arith.constant 0 : i32
    %c0_i32_1 = arith.constant 0 : i32
    %c0_i32_2 = arith.constant 0 : i32
    return %c0_i32, %c0_i32_0, %c0_i32_1 : i32, i32, i32
  }
  func.func @transform_2(%arg0: i32) -> (i32, i32, i32) {
    %c0_i32 = arith.constant 0 : i32
    %c0_i32_0 = arith.constant 0 : i32
    %c0_i32_1 = arith.constant 0 : i32
    %c0_i32_2 = arith.constant 0 : i32
    return %c0_i32, %c0_i32_0, %c0_i32_1 : i32, i32, i32
  }
  func.func @transform_3(%arg0: i32) -> (i32, i32, i32) {
    %c0_i32 = arith.constant 0 : i32
    %c0_i32_0 = arith.constant 0 : i32
    %c0_i32_1 = arith.constant 0 : i32
    %c0_i32_2 = arith.constant 0 : i32
    return %c0_i32, %c0_i32_0, %c0_i32_1 : i32, i32, i32
  }
  func.func @transform_4(%arg0: i32) -> (i32, i32) {
    %c0_i32 = arith.constant 0 : i32
    %c0_i32_0 = arith.constant 0 : i32
    %c0_i32_1 = arith.constant 0 : i32
    return %c0_i32, %c0_i32_0 : i32, i32
  }
  func.func @transform_5(%arg0: i32) -> (i32, i32) {
    %c0_i32 = arith.constant 0 : i32
    %c0_i32_0 = arith.constant 0 : i32
    %c0_i32_1 = arith.constant 0 : i32
    return %c0_i32, %c0_i32_0 : i32, i32
  }
  func.func @transform_6(%arg0: i32) -> (i32, i32) {
    %c0_i32 = arith.constant 0 : i32
    %c0_i32_0 = arith.constant 0 : i32
    %c0_i32_1 = arith.constant 0 : i32
    return %c0_i32, %c0_i32_0 : i32, i32
  }
  func.func @transform_7(%arg0: i32) -> (i32, i32) {
    %c0_i32 = arith.constant 0 : i32
    %c0_i32_0 = arith.constant 0 : i32
    %c0_i32_1 = arith.constant 0 : i32
    return %c0_i32, %c0_i32_0 : i32, i32
  }
  func.func @transform_8(%arg0: i32) -> (i32, i32) {
    %c0_i32 = arith.constant 0 : i32
    %c0_i32_0 = arith.constant 0 : i32
    %c0_i32_1 = arith.constant 0 : i32
    return %c0_i32, %c0_i32_0 : i32, i32
  }
  func.func @transform_9(%arg0: i32) -> (i32, i32) {
    %c0_i32 = arith.constant 0 : i32
    %c0_i32_0 = arith.constant 0 : i32
    %c0_i32_1 = arith.constant 0 : i32
    return %c0_i32, %c0_i32_0 : i32, i32
  }
  func.func @transform_10(%arg0: i32) -> (i32, i32) {
    %c0_i32 = arith.constant 0 : i32
    %c0_i32_0 = arith.constant 0 : i32
    %c0_i32_1 = arith.constant 0 : i32
    return %c0_i32, %c0_i32_0 : i32, i32
  }
  func.func @transform_11(%arg0: i32) -> (i32, i32) {
    %c0_i32 = arith.constant 0 : i32
    %c0_i32_0 = arith.constant 0 : i32
    %c0_i32_1 = arith.constant 0 : i32
    return %c0_i32, %c0_i32_0 : i32, i32
  }
  func.func @transform_12(%arg0: i32) -> (i32, i32) {
    %c0_i32 = arith.constant 0 : i32
    %c0_i32_0 = arith.constant 0 : i32
    return %arg0, %c0_i32 : i32, i32
  }
}

</mosaic_0001>

<bundles_post_ra>
// kernel: pointnet_cls_forward.1
= control target key start
LH: loop header
LB: loop body
LE: loop exit
PB: predicated region body
PF: predicated region fallthrough
CT: control target
= control target key end

     0   :  { %s7432_s0 = inlined_call_operand.vmem [shape: f32[16,16,5], index: 0, kind: input, shape index: {}]   ;;  %s7433_s1 = inlined_call_operand.hbm [shape: bf16[2,5,12], index: 1, kind: input, shape index: {}]   ;;  %s7434_s2 = inlined_call_operand.hbm [shape: bf16[2,12,24], index: 2, kind: input, shape index: {}]   ;;  %s7435_s3 = inlined_call_operand.hbm [shape: bf16[2,24,192], index: 3, kind: input, shape index: {}]   ;;  %s7436_s4 = inlined_call_operand.vmem [shape: bf16[192,96], index: 4, kind: input, shape index: {}]   ;;  %s7437_s5 = inlined_call_operand.hbm [shape: bf16[96,48], index: 5, kind: input, shape index: {}]   ;;  %s7438_s6 = inlined_call_operand.hbm [shape: bf16[48,25], index: 6, kind: input, shape index: {}]   ;;  %s7439_s7 = inlined_call_operand.vmem [shape: bf16[192,1], index: 7, kind: input, shape index: {}]   ;;  %s7440_s8 = inlined_call_operand.hbm [shape: bf16[192,512], index: 8, kind: input, shape index: {}]   ;;  %s7441_s9 = inlined_call_operand.hbm [shape: bf16[512,256], index: 9, kind: input, shape index: {}]   ;;  %s7442_s10 = inlined_call_operand.vmem [shape: bf16[256,2], index: 10, kind: input, shape index: {}]   ;;  %s7443_s11 = inlined_call_operand.vmem [shape: f32[1,2432], index: 11, kind: input, shape index: {}]   ;;  %s7444_s12 = inlined_call_operand.vmem [shape: f32[16,128], index: 12, kind: output, shape index: {}]  }
   0x1   :  { %7445 = sst [smem:[#allocation34_spill]] %s7434_s2 }
   0x2   :  { %7446 = sst [smem:[#allocation35_spill]] %s7437_s5 }
   0x3   :  { %17 = vsyncpa [#allocation3], 0 }
   0x4   :  { %18 = vsyncpa [#allocation5], 0 }
   0x5   :  { %19 = vsyncpa [#allocation8], 0 }
   0x6   :  { %20 = vsyncpa [#allocation11], 0  ;;  %s6026_s21 = smov 0  }
   0x7 LB: > { %s6032_s22 = sadd.s32 4294967295, %s5934_s21   ;;  %p4527_p0 = scmp.ge.s32.totalorder %s5934_s21, 1  ;;  %s5934_s21 = sphi %s6026_s21, %s26_s21  }
   0x8   : > { %p314_p1 = scmp.lt.s32.totalorder %s5934_s21, 3  ;;  %p5515_p2 = scmp.eq.s32.totalorder %s6032_s22, 0 }
   0x9   : > { %s7447_s2 = sld [smem:[#allocation34_spill]]  ;;  %s5936_s30 = smov [#allocation4]  }
   0xa   : > { %p6040_p3 = pnand %p4527_p0, %p314_p1  ;;  %s7449_s5 = sld [smem:[#allocation35_spill]] }
   0xb   : > { %s341_s13 = sshll.u32 %s5936_s30, 4  ;;  %s5937_s15 = smov [#allocation7]   ;;  %s342_s13 = int_to_ptr.vmem [resolvable:$true] %s341_s13 }
   0xc   : > { %p5493_p4 = pneg %p6040_p3  ;;  %s372_s16 = sshll.u32 %s5937_s15, 4  ;;  %s373_s16 = int_to_ptr.vmem [resolvable:$true] %s372_s16 }
   0xd   : > { %s401_s19 = sshll.u32 %s7440_s8, 4  ;;  %s5938_s20 = smov 64   ;;  %s402_s19 = int_to_ptr.hbm [resolvable:$true] %s401_s19 }
   0xe   : > { %p6051_p5 = pnand %p5515_p2, %p5493_p4  ;;  %s5939_s23 = smov 4  }
   0xf   : > { %s339_s25 = sshll.u32 %s7447_s2, 4  ;;  %s5940_s24 = smov [#allocation10]   ;;  %s340_s25 = int_to_ptr.hbm [resolvable:$true] %s339_s25 }
  0x10   : > { %s370_s29 = sshll.u32 %s7449_s5, 4  ;;  %s403_s27 = sshll.u32 %s5940_s24, 4  ;;  %s371_s29 = int_to_ptr.hbm [resolvable:$true] %s370_s29  ;;  %s404_s27 = int_to_ptr.vmem [resolvable:$true] %s403_s27 }
  0x11   : > { %5499 = dma.hbm_to_vmem [thread:$0]  (!%p6051_p5), %s340_s25, 256, %s342_s13, [#allocation5], %s5938_s20, %s5938_s20, %s5939_s23  }
  0x12   : > { %5505 = dma.hbm_to_vmem [thread:$0]  (!%p6051_p5), %s371_s29, 768, %s373_s16, [#allocation8], %s5938_s20, %s5938_s20, %s5939_s23  }
  0x13   : > { %s5941_s28 = smov 256   ;;  %s5942_s30 = smov 16  }
  0x14   : > { %5511 = dma.hbm_to_vmem [thread:$0]  (!%p6051_p5), %s402_s19, 6144, %s404_s27, [#allocation11], %s5941_s28, %s5941_s28, %s5942_s30  }
  0x15   : > { %s325_s18 = sshll.u32 %s7433_s1, 4  ;;  %s5943_s25 = smov [#allocation2]   ;;  %s326_s18 = int_to_ptr.hbm [resolvable:$true] %s325_s18 }
  0x16   : > { %s327_s13 = sshll.u32 %s5943_s25, 4  ;;  %s353_s29 = sshll.u32 %s7435_s3, 4  ;;  %s328_s13 = int_to_ptr.vmem [resolvable:$true] %s327_s13  ;;  %s354_s29 = int_to_ptr.hbm [resolvable:$true] %s353_s29 }
  0x17   : > { %5496 = dma.hbm_to_vmem [thread:$0]  (!%p6051_p5), %s326_s18, 128, %s328_s13, [#allocation3], %s5938_s20, %s5938_s20, %s5939_s23  }
  0x18   : > { %s5944_s16 = smov [#allocation6]   ;;  %s5945_s24 = smov 128  }
  0x19   : > { %s355_s19 = sshll.u32 %s5944_s16, 4  ;;  %s5946_s27 = smov 8   ;;  %s356_s19 = int_to_ptr.vmem [resolvable:$true] %s355_s19 }
  0x1a   : > { %5502 = dma.hbm_to_vmem [thread:$0]  (!%p6051_p5), %s354_s29, 768, %s356_s19, [#allocation5], %s5945_s24, %s5945_s24, %s5946_s27  }
  0x1b   : > { %s384_s2 = sshll.u32 %s7438_s6, 4  ;;  %s5947_s5 = smov [#allocation9]   ;;  %s385_s2 = int_to_ptr.hbm [resolvable:$true] %s384_s2 }
  0x1c   : > { %s386_s15 = sshll.u32 %s5947_s5, 4  ;;  %s415_s18 = sshll.u32 %s7441_s9, 4  ;;  %s387_s15 = int_to_ptr.vmem [resolvable:$true] %s386_s15  ;;  %s416_s18 = int_to_ptr.hbm [resolvable:$true] %s415_s18 }
  0x1d   : > { %5508 = dma.hbm_to_vmem [thread:$0]  (!%p6051_p5), %s385_s2, 384, %s387_s15, [#allocation8], %s5938_s20, %s5938_s20, %s5939_s23  }
  0x1e   : > { %s5948_s13 = smov [#allocation12]   ;;  %449 = sbr.rel (%p6040_p3) target bundleno = 2785 (0xae1), region = 68 }
  0x1f   : > { %s417_s29 = sshll.u32 %s5948_s13, 4  ;;  %s418_s29 = int_to_ptr.vmem [resolvable:$true] %s417_s29 }
  0x20   : > { %5514 = dma.hbm_to_vmem [thread:$0]  (!%p6051_p5), %s416_s18, 8192, %s418_s29, [#allocation11], %s5945_s24, %s5945_s24, %s5946_s27  }
  0x23   : > { %5917 = dma.done.wait (%p5515_p2), [#allocation3], 128  }
  0x24   : > { %5919 = vsyncadd (%p5515_p2), [#allocation3], 4294967168 }
  0x25   : > { %5921 = dma.done.wait (%p5515_p2), [#allocation5], 1024  }
  0x26   : > { %5923 = vsyncadd (%p5515_p2), [#allocation5], 4294966272 }
  0x27   : > { %5925 = dma.done.wait (%p5515_p2), [#allocation8], 1152  }
  0x28   : > { %5927 = vsyncadd (%p5515_p2), [#allocation8], 4294966144 }
  0x29   : > { %5929 = dma.done.wait (%p5515_p2), [#allocation11], 14336  }
  0x2a   : > { %5931 = vsyncadd (%p5515_p2), [#allocation11], 4294952960  ;;  %vm588_vm0 = vcmask 1041408   ;;  %s4544_s26 = sshll.u32 %s6032_s22, 3  ;;  %vm589_vm1 = vcmask 1042432   ;;  %v5949_v0 = vmov 65535  }
  0x2b   : > { %p523_p6 = scmp.lt.s32.totalorder %s4544_s26, 15  ;;  %v590_v1 = vsel %vm588_vm0, 4294967295, %v5949_v0  ;;  %v550_v3 = vld [vmem:[#allocation2] sm:$0x7]  ;;  %vm563_vm2 = vcmask 39936   ;;  %vm704_vm3 = vcmask 1045504  }
  0x2c   : > { %v6115_v2 = vsel %vm589_vm1, %v590_v1, 0  ;;  %v4558_v26 = vld [vmem:[#allocation4] sm:$0xf]  ;;  %v5298_v27 = vld [vmem:[#allocation4] sm:$0x30]  ;;  %vm679_vm4 = vcmask 97280  }
  0x2d   : > { %s7486_s26 = smov (!%p523_p6, %s4544_s26), 15  ;;  %v593_v5 = vand.u32 %v6115_v2, %v550_v3  ;;  %v4559_v28 = vor.u32 %v5298_v27, %v4558_v26  ;;  %v6166_v34 = vld [vmem:[%s7443_s11] ss:$0 sm:$0xff]  ;;  %vm830_vm5 = vcmask 1043456   ;;  %vm805_vm6 = vcmask 195584   ;;  %s5955_s24 = smov 118  }
  0x2e   : > { %s5297_s14 = sshll.u32 %s7486_s26, 4  ;;  %vm974_vm7 = vcmask 523264   ;;  %vm1172_vm8 = vcmask 1041409   ;;  %vm1174_vm9 = vcmask 1042434   ;;  %vm1176_vm10 = vcmask 1043459   ;;  %s5956_s27 = smov 123  }
  0x2f   : > { %s6120_s16 = scalar_lea.vmem %s7432_s0, %s5297_s14  ;;  %602 = vmatpush.bf16.msra.mxu0 %v593_v5  ;;  %v706_v29 = vsel %vm704_vm3, %v4559_v28, 0  ;;  %vm1178_vm11 = vcmask 1044484   ;;  %vm1180_vm12 = vcmask 1045509   ;;  %vm1182_vm13 = vcmask 1046534   ;;  %s5957_s28 = smov 113  }
  0x30   : > { %v6123_v4 = vld [vmem:[%s6120_s16] sm:$0xff]  ;;  %v6127_v6 = vld [vmem:[%s6120_s16 + $0x8] sm:$0xff]  ;;  %v6133_v8 = vld [vmem:[%s6120_s16 + $0x10] sm:$0xff]  ;;  %715 = vmatpush.bf16.msra.mxu1 %v706_v29  ;;  %vm1184_vm14 = vcmask 1047559   ;;  %vm1351_vm15 = vcmask 785408   ;;  %vm1398_vm0 = vcmask 392192  }
  0x31   : > { %v551_v7 = vpack.c.bf16 %v6127_v6, %v6123_v4  ;;  %v537_v9 = vld [vmem:[%s6120_s16 + $0x18] sm:$0xff]  ;;  %v538_v11 = vld [vmem:[%s6120_s16 + $0x20] sm:$0xff]  ;;  %v6140_v12 = vld [vmem:[%s6120_s16 + $0x28] sm:$0xff]  ;;  %s5958_s30 = smov 108   ;;  %vm2792_vm1 = vcmask 7168   ;;  %p529_p7 = scmp.lt.s32.totalorder %s6032_s22, 1 }
  0x32   : > { %v552_v10 = vpack.c.bf16 %v537_v9, %v6133_v8  ;;  %v553_v13 = vpack.c.bf16 %v6140_v12, %v538_v11  ;;  %v540_v14 = vld [vmem:[%s6120_s16 + $0x30] sm:$0xff]  ;;  %v541_v15 = vld [vmem:[%s6120_s16 + $0x38] sm:$0xff]  ;;  %v542_v17 = vld [vmem:[%s6120_s16 + $0x40] sm:$0xff] }
  0x33   : > { %4548 = vmatmul.msk.bf16.vlgmr.msra.gmra.mxu0 %vm563_vm2, %v551_v7  ;;  %v554_v16 = vpack.c.bf16 %v541_v15, %v540_v14  ;;  %v543_v18 = vld [vmem:[%s6120_s16 + $0x48] sm:$0xff]  ;;  %v544_v20 = vld [vmem:[%s6120_s16 + $0x50] sm:$0xff]  ;;  %v6152_v21 = vld [vmem:[%s6120_s16 + $0x58] sm:$0xff]  ;;  %s7488_s22 = smov (!%p529_p7, %s6032_s22), 1 }
  0x34   : > { %v555_v19 = vpack.c.bf16 %v543_v18, %v542_v17  ;;  %v556_v22 = vpack.c.bf16 %v6152_v21, %v544_v20  ;;  %v546_v23 = vld [vmem:[%s6120_s16 + $0x60] sm:$0xff]  ;;  %v547_v24 = vld [vmem:[%s6120_s16 + $0x68] sm:$0xff]  ;;  %v548_v30 = vld [vmem:[%s6120_s16 + $0x70] sm:$0xff] }
  0x35   : > { %v557_v25 = vpack.c.bf16 %v547_v24, %v546_v23  ;;  %v549_v31 = vld [vmem:[%s6120_s16 + $0x78] sm:$0xff] }
  0x36   : > { %v558_v32 = vpack.c.bf16 %v549_v31, %v548_v30 }
  0x43   : > { %4549 = vmatmul.msk.bf16.gmra.mxu0 %vm563_vm2, %v552_v10 }
  0x53   : > { %4550 = vmatmul.msk.bf16.gmra.mxu0 %vm563_vm2, %v553_v13 }
  0x63   : > { %4551 = vmatmul.msk.bf16.gmra.mxu0 %vm563_vm2, %v554_v16 }
  0x73   : > { %4552 = vmatmul.msk.bf16.gmra.mxu0 %vm563_vm2, %v555_v19 }
  0x83   : > { %4553 = vmatmul.msk.bf16.gmra.mxu0 %vm563_vm2, %v556_v22 }
  0x93   : > { %4554 = vmatmul.msk.bf16.gmra.mxu0 %vm563_vm2, %v557_v25  ;;  %v775_v25 = vld [vmem:[#allocation6 + $0x10] sm:$0xff] }
  0x94   : > { %v797_v26 = vunpack.c.l.b16 %v775_v25  ;;  %v798_v27 = vunpack.c.h.b16 %v775_v25 }
  0x96   : > { %v801_v29 = vpack.c.b16 %v797_v26, %v797_v26  ;;  %v802_v30 = vpack.c.b16 %v798_v27, %v798_v27 }
  0x98   : > { %v832_v31 = vsel %vm830_vm5, %v801_v29, 0 }
  0x99   : > { %843 = vmatpush.bf16.msra.mxu2 %v832_v31 }
  0xa3   : > { %4555 = vmatmul.msk.bf16.gmra.mxu0 %vm563_vm2, %v558_v32  ;;  %v835_v32 = vsel %vm830_vm5, %v802_v30, 0 }
  0xa4   : > { %892 = vmatpush.bf16.msra.mxu3 %v835_v32 }
  0xb0   : > { %v604_v33 = vpop.f32.mrf.mxu0 }
  0xb1   : > { %v605_v35 = vadd.f32 %v6166_v34, %v604_v33  ;;  %v4570_v33 = vld [vmem:[#allocation6] sm:$0xf] }
  0xb3   : > { %v644_v38 = vmax.f32 %v605_v35, 0.0  ;;  %v5300_v35 = vld [vmem:[#allocation6 + $0x4] sm:$0xf0] }
  0xb8   : > { %v606_v36 = vpop.f32.mrf.mxu0 }
  0xb9   : > { %v607_v37 = vadd.f32 %v6166_v34, %v606_v36  ;;  %v5299_v36 = vld [vmem:[#allocation6 + $0x4] sm:$0xf] }
  0xbb   : > { %v645_v39 = vmax.f32 %v607_v37, 0.0  ;;  %v4571_v37 = vor.u32 %v5300_v35, %v4570_v33 }
  0xbd   : > { %v662_v40 = vpack.c.bf16 %v645_v39, %v644_v38  ;;  %v4572_v38 = vld [vmem:[#allocation6 + $0x8] sm:$0xf0]  ;;  %844 = vmatpush.bf16.msra.mxu2 %v4571_v37 }
  0xbf   : > { %4560 = vmatmul.msk.bf16.vlgmr.msra.gmra.mxu1 %vm679_vm4, %v662_v40  ;;  %v4575_v40 = vor.u32 %v5299_v36, %v4572_v38 }
  0xc0   : > { %v609_v41 = vpop.f32.mrf.mxu0 }
  0xc1   : > { %v610_v42 = vadd.f32 %v6166_v34, %v609_v41  ;;  %893 = vmatpush.bf16.msra.mxu3 %v4575_v40 }
  0xc3   : > { %v646_v45 = vmax.f32 %v610_v42, 0.0 }
  0xc8   : > { %v611_v43 = vpop.f32.mrf.mxu0 }
  0xc9   : > { %v612_v44 = vadd.f32 %v6166_v34, %v611_v43 }
  0xcb   : > { %v647_v46 = vmax.f32 %v612_v44, 0.0 }
  0xcd   : > { %v663_v47 = vpack.c.bf16 %v647_v46, %v646_v45 }
  0xcf   : > { %4561 = vmatmul.msk.bf16.gmra.mxu1 %vm679_vm4, %v663_v47  ;;  %v6197_v47 = vld [vmem:[%s7443_s11 + $0x1] ss:$0 sm:$0xff] }
  0xd0   : > { %v614_v48 = vpop.f32.mrf.mxu0 }
  0xd1   : > { %v615_v49 = vadd.f32 %v6166_v34, %v614_v48 }
  0xd3   : > { %v648_v52 = vmax.f32 %v615_v49, 0.0 }
  0xd8   : > { %v616_v50 = vpop.f32.mrf.mxu0 }
  0xd9   : > { %v617_v51 = vadd.f32 %v6166_v34, %v616_v50 }
  0xdb   : > { %v649_v53 = vmax.f32 %v617_v51, 0.0 }
  0xdd   : > { %v664_v54 = vpack.c.bf16 %v649_v53, %v648_v52 }
  0xdf   : > { %4562 = vmatmul.msk.bf16.gmra.mxu1 %vm679_vm4, %v664_v54 }
  0xe0   : > { %v619_v55 = vpop.f32.mrf.mxu0 }
  0xe1   : > { %v620_v56 = vadd.f32 %v6166_v34, %v619_v55 }
  0xe3   : > { %v650_v59 = vmax.f32 %v620_v56, 0.0 }
  0xe8   : > { %v621_v57 = vpop.f32.mrf.mxu0 }
  0xe9   : > { %v622_v58 = vadd.f32 %v6166_v34, %v621_v57 }
  0xeb   : > { %v651_v60 = vmax.f32 %v622_v58, 0.0 }
  0xed   : > { %v665_v61 = vpack.c.bf16 %v651_v60, %v650_v59 }
  0xef   : > { %4563 = vmatmul.msk.bf16.gmra.mxu1 %vm679_vm4, %v665_v61 }
  0xf0   : > { %v624_v62 = vpop.f32.mrf.mxu0 }
  0xf1   : > { %v625_v63 = vadd.f32 %v6166_v34, %v624_v62 }
  0xf3   : > { %v652_v3 = vmax.f32 %v625_v63, 0.0 }
  0xf8   : > { %v626_v0 = vpop.f32.mrf.mxu0 }
  0xf9   : > { %v627_v1 = vadd.f32 %v6166_v34, %v626_v0 }
  0xfb   : > { %v653_v5 = vmax.f32 %v627_v1, 0.0 }
  0xfd   : > { %v666_v7 = vpack.c.bf16 %v653_v5, %v652_v3 }
  0xff   : > { %4564 = vmatmul.msk.bf16.gmra.mxu1 %vm679_vm4, %v666_v7 }
 0x100   : > { %v629_v9 = vpop.f32.mrf.mxu0 }
 0x101   : > { %v630_v10 = vadd.f32 %v6166_v34, %v629_v9 }
 0x103   : > { %v654_v14 = vmax.f32 %v630_v10, 0.0 }
 0x108   : > { %v631_v11 = vpop.f32.mrf.mxu0 }
 0x109   : > { %v632_v13 = vadd.f32 %v6166_v34, %v631_v11 }
 0x10b   : > { %v655_v15 = vmax.f32 %v632_v13, 0.0 }
 0x10d   : > { %v667_v16 = vpack.c.bf16 %v655_v15, %v654_v14 }
 0x10f   : > { %4565 = vmatmul.msk.bf16.gmra.mxu1 %vm679_vm4, %v667_v16 }
 0x110   : > { %v634_v17 = vpop.f32.mrf.mxu0 }
 0x111   : > { %v635_v18 = vadd.f32 %v6166_v34, %v634_v17 }
 0x113   : > { %v656_v22 = vmax.f32 %v635_v18, 0.0 }
 0x118   : > { %v636_v19 = vpop.f32.mrf.mxu0 }
 0x119   : > { %v637_v20 = vadd.f32 %v6166_v34, %v636_v19 }
 0x11b   : > { %v657_v23 = vmax.f32 %v637_v20, 0.0 }
 0x11d   : > { %v668_v24 = vpack.c.bf16 %v657_v23, %v656_v22 }
 0x11f   : > { %4566 = vmatmul.msk.bf16.gmra.mxu1 %vm679_vm4, %v668_v24 }
 0x120   : > { %v639_v28 = vpop.f32.mrf.mxu0 }
 0x121   : > { %v640_v39 = vadd.f32 %v6166_v34, %v639_v28 }
 0x123   : > { %v658_v43 = vmax.f32 %v640_v39, 0.0 }
 0x128   : > { %v641_v41 = vpop.f32.mrf.mxu0 }
 0x129   : > { %v642_v42 = vadd.f32 %v6166_v34, %v641_v41 }
 0x12b   : > { %v659_v44 = vmax.f32 %v642_v42, 0.0 }
 0x12d   : > { %v669_v45 = vpack.c.bf16 %v659_v44, %v658_v43 }
 0x12f   : > { %4567 = vmatmul.msk.bf16.gmra.mxu1 %vm679_vm4, %v669_v45  ;;  %v784_v45 = vld [vmem:[%s7443_s11 + $0x2] sm:$0x3] }
 0x13c   : > { %v717_v46 = vpop.f32.mrf.mxu1 }
 0x13d   : > { %v718_v48 = vadd.f32 %v6197_v47, %v717_v46  ;;  %v5308_v46 = vld [vmem:[%s7436_s4 + $0x38] sm:$0xff] }
 0x13e   : > { %1271 = vmatpush.bf16.msrb.mxu0 %v5308_v46 }
 0x13f   : > { %v757_v51 = vmax.f32 %v718_v48, 0.0  ;;  %v5312_v48 = vld [vmem:[%s7436_s4 + $0x58] sm:$0xff] }
 0x140   : > { %1288 = vmatpush.bf16.msrb.mxu1 %v5312_v48 }
 0x144   : > { %v719_v49 = vpop.f32.mrf.mxu1 }
 0x145   : > { %v720_v50 = vadd.f32 %v6197_v47, %v719_v49 }
 0x147   : > { %v758_v52 = vmax.f32 %v720_v50, 0.0  ;;  %v6240_v50 = vperm.slane %v784_v45, 1 }
 0x149   : > { %v776_v34 = vpack.c.bf16 %v758_v52, %v757_v51  ;;  %v6242_v51 = vperm.slane %v784_v45, 0 }
 0x14b   : > { %4576 = vmatmul.msk.bf16.vlgmr.msra.gmra.mxu2 %vm805_vm6, %v776_v34  ;;  %4584 = vmatmul.msk.bf16.vlgmr.msra.gmra.mxu3 %vm805_vm6, %v776_v34 }
 0x14c   : > { %v722_v53 = vpop.f32.mrf.mxu1 }
 0x14d   : > { %v723_v54 = vadd.f32 %v6197_v47, %v722_v53 }
 0x14f   : > { %v759_v57 = vmax.f32 %v723_v54, 0.0 }
 0x154   : > { %v724_v55 = vpop.f32.mrf.mxu1 }
 0x155   : > { %v725_v56 = vadd.f32 %v6197_v47, %v724_v55 }
 0x157   : > { %v760_v58 = vmax.f32 %v725_v56, 0.0 }
 0x159   : > { %v777_v59 = vpack.c.bf16 %v760_v58, %v759_v57 }
 0x15b   : > { %4577 = vmatmul.msk.bf16.gmra.mxu2 %vm805_vm6, %v777_v59  ;;  %4585 = vmatmul.msk.bf16.gmra.mxu3 %vm805_vm6, %v777_v59 }
 0x15c   : > { %v727_v60 = vpop.f32.mrf.mxu1 }
 0x15d   : > { %v728_v61 = vadd.f32 %v6197_v47, %v727_v60 }
 0x15f   : > { %v761_v0 = vmax.f32 %v728_v61, 0.0 }
 0x164   : > { %v729_v62 = vpop.f32.mrf.mxu1 }
 0x165   : > { %v730_v63 = vadd.f32 %v6197_v47, %v729_v62 }
 0x167   : > { %v762_v1 = vmax.f32 %v730_v63, 0.0 }
 0x169   : > { %v778_v3 = vpack.c.bf16 %v762_v1, %v761_v0 }
 0x16b   : > { %4578 = vmatmul.msk.bf16.gmra.mxu2 %vm805_vm6, %v778_v3  ;;  %4586 = vmatmul.msk.bf16.gmra.mxu3 %vm805_vm6, %v778_v3 }
 0x16c   : > { %v732_v5 = vpop.f32.mrf.mxu1 }
 0x16d   : > { %v733_v7 = vadd.f32 %v6197_v47, %v732_v5 }
 0x16f   : > { %v763_v11 = vmax.f32 %v733_v7, 0.0  ;;  %v5307_v7 = vld [vmem:[%s7436_s4 + $0x30] sm:$0xff] }
 0x170   : > { %1272 = vmatpush.bf16.msrb.mxu0 %v5307_v7 }
 0x174   : > { %v734_v9 = vpop.f32.mrf.mxu1 }
 0x175   : > { %v735_v10 = vadd.f32 %v6197_v47, %v734_v9 }
 0x177   : > { %v764_v13 = vmax.f32 %v735_v10, 0.0 }
 0x179   : > { %v779_v14 = vpack.c.bf16 %v764_v13, %v763_v11 }
 0x17b   : > { %4579 = vmatmul.msk.bf16.gmra.mxu2 %vm805_vm6, %v779_v14  ;;  %4587 = vmatmul.msk.bf16.gmra.mxu3 %vm805_vm6, %v779_v14 }
 0x17c   : > { %v737_v15 = vpop.f32.mrf.mxu1 }
 0x17d   : > { %v738_v16 = vadd.f32 %v6197_v47, %v737_v15 }
 0x17f   : > { %v765_v19 = vmax.f32 %v738_v16, 0.0 }
 0x184   : > { %v739_v17 = vpop.f32.mrf.mxu1 }
 0x185   : > { %v740_v18 = vadd.f32 %v6197_v47, %v739_v17 }
 0x187   : > { %v766_v20 = vmax.f32 %v740_v18, 0.0 }
 0x189   : > { %v780_v22 = vpack.c.bf16 %v766_v20, %v765_v19 }
 0x18b   : > { %4580 = vmatmul.msk.bf16.gmra.mxu2 %vm805_vm6, %v780_v22  ;;  %4588 = vmatmul.msk.bf16.gmra.mxu3 %vm805_vm6, %v780_v22 }
 0x18c   : > { %v742_v23 = vpop.f32.mrf.mxu1 }
 0x18d   : > { %v743_v24 = vadd.f32 %v6197_v47, %v742_v23 }
 0x18f   : > { %v767_v27 = vmax.f32 %v743_v24, 0.0 }
 0x194   : > { %v744_v25 = vpop.f32.mrf.mxu1 }
 0x195   : > { %v745_v26 = vadd.f32 %v6197_v47, %v744_v25 }
 0x197   : > { %v768_v28 = vmax.f32 %v745_v26, 0.0 }
 0x199   : > { %v781_v29 = vpack.c.bf16 %v768_v28, %v767_v27 }
 0x19b   : > { %4581 = vmatmul.msk.bf16.gmra.mxu2 %vm805_vm6, %v781_v29  ;;  %4589 = vmatmul.msk.bf16.gmra.mxu3 %vm805_vm6, %v781_v29 }
 0x19c   : > { %v747_v30 = vpop.f32.mrf.mxu1 }
 0x19d   : > { %v748_v31 = vadd.f32 %v6197_v47, %v747_v30 }
 0x19f   : > { %v769_v35 = vmax.f32 %v748_v31, 0.0 }
 0x1a4   : > { %v749_v32 = vpop.f32.mrf.mxu1 }
 0x1a5   : > { %v750_v33 = vadd.f32 %v6197_v47, %v749_v32 }
 0x1a7   : > { %v770_v36 = vmax.f32 %v750_v33, 0.0 }
 0x1a9   : > { %v782_v37 = vpack.c.bf16 %v770_v36, %v769_v35 }
 0x1ab   : > { %4582 = vmatmul.msk.bf16.gmra.mxu2 %vm805_vm6, %v782_v37  ;;  %4590 = vmatmul.msk.bf16.gmra.mxu3 %vm805_vm6, %v782_v37 }
 0x1ac   : > { %v752_v38 = vpop.f32.mrf.mxu1 }
 0x1ad   : > { %v753_v39 = vadd.f32 %v6197_v47, %v752_v38  ;;  %v5306_v38 = vld [vmem:[%s7436_s4 + $0x28] sm:$0xff] }
 0x1ae   : > { %1273 = vmatpush.bf16.msrb.mxu0 %v5306_v38 }
 0x1af   : > { %v771_v42 = vmax.f32 %v753_v39, 0.0  ;;  %v5311_v39 = vld [vmem:[%s7436_s4 + $0x50] sm:$0xff] }
 0x1b0   : > { %1289 = vmatpush.bf16.msrb.mxu1 %v5311_v39 }
 0x1b4   : > { %v754_v40 = vpop.f32.mrf.mxu1 }
 0x1b5   : > { %v755_v41 = vadd.f32 %v6197_v47, %v754_v40 }
 0x1b7   : > { %v772_v43 = vmax.f32 %v755_v41, 0.0 }
 0x1b9   : > { %v783_v44 = vpack.c.bf16 %v772_v43, %v771_v42 }
 0x1bb   : > { %4583 = vmatmul.msk.bf16.gmra.mxu2 %vm805_vm6, %v783_v44  ;;  %4591 = vmatmul.msk.bf16.gmra.mxu3 %vm805_vm6, %v783_v44 }
 0x1ce   : > { %v846_v47 = vpop.f32.mrf.mxu2  ;;  %v895_v49 = vpop.f32.mrf.mxu3 }
 0x1cf   : > { %v896_v52 = vadd.f32 %v895_v49, %v6240_v50  ;;  %v847_v34 = vadd.f32 %v846_v47, %v6242_v51 }
 0x1d1   : > { %v936_v55 = vmax.f32 %v896_v52, 0.0  ;;  %v935_v58 = vmax.f32 %v847_v34, 0.0 }
 0x1d3   : > { %v975_v61 = vsel %vm974_vm7, %v936_v55, -inf }
 0x1d6   : > { %v848_v53 = vpop.f32.mrf.mxu2  ;;  %v897_v54 = vpop.f32.mrf.mxu3 }
 0x1d7   : > { %v849_v56 = vadd.f32 %v848_v53, %v6242_v51  ;;  %v898_v57 = vadd.f32 %v897_v54, %v6240_v50 }
 0x1d9   : > { %v937_v59 = vmax.f32 %v849_v56, 0.0  ;;  %v938_v60 = vmax.f32 %v898_v57, 0.0 }
 0x1db   : > { %v967_v62 = vmax.f32 %v935_v58, %v937_v59  ;;  %v976_v63 = vsel %vm974_vm7, %v938_v60, -inf }
 0x1dc   : > { %v977_v0 = vmax.f32 %v975_v61, %v976_v63 }
 0x1dd   : > { %v968_v1 = vrot.slane %v967_v62, 4 }
 0x1de   : > { %v851_v3 = vpop.f32.mrf.mxu2  ;;  %v900_v5 = vpop.f32.mrf.mxu3  ;;  %v978_v9 = vrot.slane %v977_v0, 4 }
 0x1df   : > { %v969_v10 = vmax.f32 %v967_v62, %v968_v1  ;;  %v901_v11 = vadd.f32 %v900_v5, %v6240_v50  ;;  %v852_v14 = vadd.f32 %v851_v3, %v6242_v51 }
 0x1e0   : > { %v979_v13 = vmax.f32 %v977_v0, %v978_v9 }
 0x1e1   : > { %v970_v15 = vrot.slane %v969_v10, 2  ;;  %v940_v18 = vmax.f32 %v901_v11, 0.0  ;;  %v939_v23 = vmax.f32 %v852_v14, 0.0 }
 0x1e2   : > { %v980_v22 = vrot.slane %v979_v13, 2 }
 0x1e3   : > { %v971_v26 = vmax.f32 %v969_v10, %v970_v15  ;;  %v991_v27 = vsel %vm974_vm7, %v940_v18, -inf }
 0x1e4   : > { %v981_v30 = vmax.f32 %v979_v13, %v980_v22 }
 0x1e5   : > { %v972_v33 = vrot.slane %v971_v26, 1 }
 0x1e6   : > { %v853_v16 = vpop.f32.mrf.mxu2  ;;  %v902_v17 = vpop.f32.mrf.mxu3  ;;  %v982_v41 = vrot.slane %v981_v30, 1 }
 0x1e7   : > { %v854_v19 = vadd.f32 %v853_v16, %v6242_v51  ;;  %v903_v20 = vadd.f32 %v902_v17, %v6240_v50  ;;  %v973_v44 = vmax.f32 %v971_v26, %v972_v33  ;;  %v5305_v17 = vld [vmem:[%s7436_s4 + $0x20] sm:$0xff] }
 0x1e8   : > { %v983_v47 = vmax.f32 %v981_v30, %v982_v41  ;;  %1274 = vmatpush.bf16.msrb.mxu0 %v5305_v17 }
 0x1e9   : > { %v941_v24 = vmax.f32 %v854_v19, 0.0  ;;  %v942_v25 = vmax.f32 %v903_v20, 0.0  ;;  %v1120_v53 = vpack.c.bf16 %v973_v44, %v973_v44 }
 0x1ea   : > { %v1121_v61 = vpack.c.bf16 %v983_v47, %v983_v47 }
 0x1eb   : > { %v984_v28 = vmax.f32 %v939_v23, %v941_v24  ;;  %v992_v29 = vsel %vm974_vm7, %v942_v25, -inf  ;;  %v1156_v5 = vunpack.c.l.b16 %v1120_v53 }
 0x1ec   : > { %v993_v31 = vmax.f32 %v991_v27, %v992_v29  ;;  %v1157_v14 = vunpack.c.l.b16 %v1121_v61 }
 0x1ed   : > { %v985_v32 = vrot.slane %v984_v28, 4 }
 0x1ee   : > { %v994_v35 = vrot.slane %v993_v31, 4  ;;  %v856_v36 = vpop.f32.mrf.mxu2  ;;  %v905_v37 = vpop.f32.mrf.mxu3 }
 0x1ef   : > { %v986_v40 = vmax.f32 %v984_v28, %v985_v32  ;;  %v906_v48 = vadd.f32 %v905_v37, %v6240_v50  ;;  %v857_v34 = vadd.f32 %v856_v36, %v6242_v51 }
 0x1f0   : > { %v995_v42 = vmax.f32 %v993_v31, %v994_v35 }
 0x1f1   : > { %v987_v43 = vrot.slane %v986_v40, 2  ;;  %v944_v58 = vmax.f32 %v906_v48, 0.0  ;;  %v943_v0 = vmax.f32 %v857_v34, 0.0 }
 0x1f2   : > { %v996_v45 = vrot.slane %v995_v42, 2 }
 0x1f3   : > { %v988_v46 = vmax.f32 %v986_v40, %v987_v43  ;;  %v1007_v10 = vsel %vm974_vm7, %v944_v58, -inf }
 0x1f4   : > { %v997_v49 = vmax.f32 %v995_v42, %v996_v45 }
 0x1f5   : > { %v989_v52 = vrot.slane %v988_v46, 1 }
 0x1f6   : > { %v998_v54 = vrot.slane %v997_v49, 1  ;;  %v858_v55 = vpop.f32.mrf.mxu2  ;;  %v907_v56 = vpop.f32.mrf.mxu3 }
 0x1f7   : > { %v990_v57 = vmax.f32 %v988_v46, %v989_v52  ;;  %v859_v59 = vadd.f32 %v858_v55, %v6242_v51  ;;  %v908_v60 = vadd.f32 %v907_v56, %v6240_v50  ;;  %v5304_v55 = vld [vmem:[%s7436_s4 + $0x18] sm:$0xff]  ;;  %v5310_v56 = vld [vmem:[%s7436_s4 + $0x48] sm:$0xff] }
 0x1f8   : > { %v999_v62 = vmax.f32 %v997_v49, %v998_v54  ;;  %1275 = vmatpush.bf16.msrb.mxu0 %v5304_v55  ;;  %1290 = vmatpush.bf16.msrb.mxu1 %v5310_v56 }
 0x1f9   : > { %v1122_v63 = vpack.c.bf16 %v990_v57, %v990_v57  ;;  %v945_v1 = vmax.f32 %v859_v59, 0.0  ;;  %v946_v3 = vmax.f32 %v908_v60, 0.0 }
 0x1fa   : > { %v1123_v7 = vpack.c.bf16 %v999_v62, %v999_v62 }
 0x1fb   : > { %v1158_v9 = vunpack.c.l.b16 %v1122_v63  ;;  %v1000_v11 = vmax.f32 %v943_v0, %v945_v1  ;;  %v1008_v13 = vsel %vm974_vm7, %v946_v3, -inf }
 0x1fc   : > { %v1159_v15 = vunpack.c.l.b16 %v1123_v7  ;;  %v1009_v16 = vmax.f32 %v1007_v10, %v1008_v13 }
 0x1fd   : > { %v1173_v18 = vsel %vm1172_vm8, %v1158_v9, %v1156_v5  ;;  %v1001_v19 = vrot.slane %v1000_v11, 4 }
 0x1fe   : > { %v1186_v20 = vsel %vm1172_vm8, %v1159_v15, %v1157_v14  ;;  %v1010_v22 = vrot.slane %v1009_v16, 4  ;;  %v861_v23 = vpop.f32.mrf.mxu2  ;;  %v910_v24 = vpop.f32.mrf.mxu3 }
 0x1ff   : > { %v1002_v25 = vmax.f32 %v1000_v11, %v1001_v19  ;;  %v911_v30 = vadd.f32 %v910_v24, %v6240_v50  ;;  %v862_v33 = vadd.f32 %v861_v23, %v6242_v51 }
 0x200   : > { %v1011_v26 = vmax.f32 %v1009_v16, %v1010_v22 }
 0x201   : > { %v1003_v27 = vrot.slane %v1002_v25, 2  ;;  %v948_v39 = vmax.f32 %v911_v30, 0.0  ;;  %v947_v44 = vmax.f32 %v862_v33, 0.0  ;;  %v5302_v33 = vld [vmem:[%s7436_s4 + $0x8] sm:$0xff] }
 0x202   : > { %v1012_v28 = vrot.slane %v1011_v26, 2 }
 0x203   : > { %v1004_v29 = vmax.f32 %v1002_v25, %v1003_v27  ;;  %v1023_v49 = vsel %vm974_vm7, %v948_v39, -inf  ;;  %v5322_v27 = vld [vmem:[#allocation4 + $0x8] sm:$0x30] }
 0x204   : > { %v1013_v31 = vmax.f32 %v1011_v26, %v1012_v28  ;;  %v4689_v26 = vld [vmem:[#allocation4 + $0x8] sm:$0xf] }
 0x205   : > { %v1005_v32 = vrot.slane %v1004_v29, 1  ;;  %v4690_v30 = vor.u32 %v5322_v27, %v4689_v26 }
 0x206   : > { %v1014_v35 = vrot.slane %v1013_v31, 1  ;;  %v863_v36 = vpop.f32.mrf.mxu2  ;;  %v912_v37 = vpop.f32.mrf.mxu3 }
 0x207   : > { %v1006_v38 = vmax.f32 %v1004_v29, %v1005_v32  ;;  %v864_v40 = vadd.f32 %v863_v36, %v6242_v51  ;;  %v913_v41 = vadd.f32 %v912_v37, %v6240_v50  ;;  %v2326_v32 = vsel %vm704_vm3, %v4690_v30, 0 }
 0x208   : > { %v1015_v42 = vmax.f32 %v1013_v31, %v1014_v35  ;;  %v5309_v35 = vld [vmem:[%s7436_s4 + $0x40] sm:$0xff]  ;;  %vm4401_vm3 = vcmask 220176  }
 0x209   : > { %v1124_v43 = vpack.c.bf16 %v1006_v38, %v1006_v38  ;;  %v949_v45 = vmax.f32 %v864_v40, 0.0  ;;  %v950_v46 = vmax.f32 %v913_v41, 0.0  ;;  %1291 = vmatpush.bf16.msrb.mxu1 %v5309_v35 }
 0x20a   : > { %v1125_v48 = vpack.c.bf16 %v1015_v42, %v1015_v42 }
 0x20b   : > { %v1160_v47 = vunpack.c.l.b16 %v1124_v43  ;;  %v1016_v52 = vmax.f32 %v947_v44, %v949_v45  ;;  %v1024_v34 = vsel %vm974_vm7, %v950_v46, -inf }
 0x20c   : > { %v1161_v53 = vunpack.c.l.b16 %v1125_v48  ;;  %v1025_v54 = vmax.f32 %v1023_v49, %v1024_v34 }
 0x20d   : > { %v1017_v57 = vrot.slane %v1016_v52, 4  ;;  %v1175_v58 = vsel %vm1174_vm9, %v1160_v47, %v1173_v18  ;;  %2335 = vmatpush.bf16.msra.mxu1 %v2326_v32 }
 0x20e   : > { %v1187_v59 = vsel %vm1174_vm9, %v1161_v53, %v1186_v20  ;;  %v1026_v60 = vrot.slane %v1025_v54, 4  ;;  %v866_v61 = vpop.f32.mrf.mxu2  ;;  %v915_v62 = vpop.f32.mrf.mxu3  ;;  %v5303_v20 = vld [vmem:[%s7436_s4 + $0x10] sm:$0xff] }
 0x20f   : > { %v1018_v63 = vmax.f32 %v1016_v52, %v1017_v57  ;;  %1276 = vmatpush.bf16.msrb.mxu0 %v5303_v20  ;;  %v916_v36 = vadd.f32 %v915_v62, %v6240_v50  ;;  %v867_v44 = vadd.f32 %v866_v61, %v6242_v51 }
 0x210   : > { %v1027_v0 = vmax.f32 %v1025_v54, %v1026_v60 }
 0x211   : > { %v1019_v1 = vrot.slane %v1018_v63, 2  ;;  %v952_v45 = vmax.f32 %v916_v36, 0.0  ;;  %v951_v54 = vmax.f32 %v867_v44, 0.0 }
 0x212   : > { %v1028_v3 = vrot.slane %v1027_v0, 2 }
 0x213   : > { %v1020_v5 = vmax.f32 %v1018_v63, %v1019_v1  ;;  %1277 = vmatpush.bf16.msrb.mxu0 %v5302_v33  ;;  %v1039_v55 = vsel %vm974_vm7, %v952_v45, -inf }
 0x214   : > { %v1029_v7 = vmax.f32 %v1027_v0, %v1028_v3 }
 0x215   : > { %v1021_v9 = vrot.slane %v1020_v5, 1 }
 0x216   : > { %v1030_v10 = vrot.slane %v1029_v7, 1  ;;  %v868_v11 = vpop.f32.mrf.mxu2  ;;  %v917_v13 = vpop.f32.mrf.mxu3 }
 0x217   : > { %v1022_v14 = vmax.f32 %v1020_v5, %v1021_v9  ;;  %v918_v31 = vadd.f32 %v917_v13, %v6240_v50  ;;  %v869_v38 = vadd.f32 %v868_v11, %v6242_v51 }
 0x218   : > { %v1031_v15 = vmax.f32 %v1029_v7, %v1030_v10 }
 0x219   : > { %v1126_v16 = vpack.c.bf16 %v1022_v14, %v1022_v14  ;;  %v954_v42 = vmax.f32 %v918_v31, 0.0  ;;  %v953_v47 = vmax.f32 %v869_v38, 0.0 }
 0x21a   : > { %v1127_v17 = vpack.c.bf16 %v1031_v15, %v1031_v15 }
 0x21b   : > { %v1162_v18 = vunpack.c.l.b16 %v1126_v16  ;;  %v1040_v52 = vsel %vm974_vm7, %v954_v42, -inf  ;;  %v1032_v60 = vmax.f32 %v951_v54, %v953_v47 }
 0x21c   : > { %v1163_v19 = vunpack.c.l.b16 %v1127_v17  ;;  %v1041_v61 = vmax.f32 %v1039_v55, %v1040_v52  ;;  %v5301_v17 = vld [vmem:[%s7436_s4] sm:$0xff] }
 0x21d   : > { %v6294_v22 = vsel %vm1176_vm10, %v1162_v18, %v1175_v58  ;;  %v1033_v15 = vrot.slane %v1032_v60, 4  ;;  %1278 = vmatpush.bf16.msrb.mxu0 %v5301_v17 }
 0x21e   : > { %v871_v23 = vpop.f32.mrf.mxu2  ;;  %v920_v24 = vpop.f32.mrf.mxu3  ;;  %v6297_v25 = vsel %vm1176_vm10, %v1163_v19, %v1187_v59  ;;  %v2176_v59 = vld [vmem:[#allocation2 + $0x4] sm:$0x7]  ;;  %v1042_v16 = vrot.slane %v1041_v61, 4 }
 0x21f   : > { %v921_v39 = vadd.f32 %v920_v24, %v6240_v50  ;;  %v872_v46 = vadd.f32 %v871_v23, %v6242_v51  ;;  %v2214_v10 = vand.u32 %v2176_v59, %v6115_v2  ;;  %v1034_v2 = vmax.f32 %v1032_v60, %v1033_v15 }
 0x221   : > { %v956_v49 = vmax.f32 %v921_v39, 0.0  ;;  %v955_v56 = vmax.f32 %v872_v46, 0.0  ;;  %2223 = vmatpush.bf16.msra.mxu0 %v2214_v10  ;;  %v1035_v38 = vrot.slane %v1034_v2, 2  ;;  %v5951_v46 = vmov 3  }
 0x222   : > { %5563 = vset.pattern.permute.xlu2 %v5951_v46  ;;  %5576 = vset.pattern.permute.xlu0 %v5951_v46 }
 0x223   : > { %v1055_v62 = vsel %vm974_vm7, %v956_v49, -inf  ;;  %1856 = vperm.xlu2 %5563, %v6123_v4   ;;  %1876 = vperm.xlu0 %5576, %v6140_v12   ;;  %v1036_v49 = vmax.f32 %v1034_v2, %v1035_v38 }
 0x226   : > { %v873_v28 = vpop.f32.mrf.mxu2  ;;  %v922_v29 = vpop.f32.mrf.mxu3 }
 0x227   : > { %v923_v37 = vadd.f32 %v922_v29, %v6240_v50  ;;  %v874_v43 = vadd.f32 %v873_v28, %v6242_v51  ;;  %v1043_v28 = vmax.f32 %v1041_v61, %v1042_v16 }
 0x229   : > { %v958_v48 = vmax.f32 %v923_v37, 0.0  ;;  %v957_v34 = vmax.f32 %v874_v43, 0.0  ;;  %v5318_v37 = vld [vmem:[#allocation7 + $0x28] sm:$0xff]  ;;  %v1044_v39 = vrot.slane %v1043_v28, 2  ;;  %v5317_v43 = vld [vmem:[#allocation7 + $0x20] sm:$0xff] }
 0x22a   : > { %1357 = vmatpush.bf16.msrb.mxu2 %v5318_v37  ;;  %v5953_v37 = vmov 1  }
 0x22b   : > { %v1056_v57 = vsel %vm974_vm7, %v958_v48, -inf  ;;  %v1048_v1 = vmax.f32 %v955_v56, %v957_v34  ;;  %v1045_v52 = vmax.f32 %v1043_v28, %v1044_v39  ;;  %1860 = vperm.xlu2 %5563, %v6127_v6   ;;  %1900 = vperm.xlu0 %5576, %v6152_v21  }
 0x22c   : > { %v1057_v9 = vmax.f32 %v1055_v62, %v1056_v57 }
 0x22d   : > { %v1049_v18 = vrot.slane %v1048_v1, 4  ;;  %v1046_v12 = vrot.slane %v1045_v52, 1 }
 0x22e   : > { %v876_v40 = vpop.f32.mrf.mxu2  ;;  %v925_v41 = vpop.f32.mrf.mxu3  ;;  %v1058_v24 = vrot.slane %v1057_v9, 4  ;;  %1358 = vmatpush.bf16.msrb.mxu2 %v5317_v43 }
 0x22f   : > { %v926_v53 = vadd.f32 %v925_v41, %v6240_v50  ;;  %v877_v58 = vadd.f32 %v876_v40, %v6242_v51  ;;  %v1050_v32 = vmax.f32 %v1048_v1, %v1049_v18  ;;  %v5950_v40 = vmov 2  }
 0x230   : > { %v1059_v33 = vmax.f32 %v1057_v9, %v1058_v24  ;;  %5562 = vset.pattern.permute.xlu1 %v5950_v40  ;;  %v1047_v16 = vmax.f32 %v1045_v52, %v1046_v12  ;;  %v6387_v12 = vld [vmem:[%s6120_s16 + $0x38] sm:$0xff] }
 0x231   : > { %v960_v3 = vmax.f32 %v926_v53, 0.0  ;;  %v959_v11 = vmax.f32 %v877_v58, 0.0  ;;  %v1051_v41 = vrot.slane %v1050_v32, 2  ;;  %1696 = vperm.xlu1 %5562, %v6123_v4   ;;  %v5316_v58 = vld [vmem:[#allocation7 + $0x18] sm:$0xff] }
 0x232   : > { %v1060_v44 = vrot.slane %v1059_v33, 2  ;;  %1359 = vmatpush.bf16.msrb.mxu2 %v5316_v58  ;;  %v1129_v28 = vpack.c.bf16 %v1047_v16, %v1047_v16  ;;  %v5320_v16 = vld [vmem:[#allocation9 + $0x8] sm:$0xff] }
 0x233   : > { %v1071_v19 = vsel %vm974_vm7, %v960_v3, -inf  ;;  %v1052_v54 = vmax.f32 %v1050_v32, %v1051_v41  ;;  %5565 = vset.pattern.permute.xlu2 %v5953_v37  ;;  %5601 = vset.pattern.permute.xlu0 %v5953_v37  ;;  %v6352_v41 = vld [vmem:[%s6120_s16] sm:$0xff] }
 0x234   : > { %v1061_v59 = vmax.f32 %v1059_v33, %v1060_v44  ;;  %v6345_v33 = vld [vmem:[%s6120_s16 + $0x8] sm:$0xff]  ;;  %1544 = vperm.xlu2 %5565, %v6133_v8   ;;  %1536 = vperm.xlu0 %5601, %v6352_v41  }
 0x235   : > { %v1053_v1 = vrot.slane %v1052_v54, 1 }
 0x236   : > { %v878_v63 = vpop.f32.mrf.mxu2  ;;  %v927_v0 = vpop.f32.mrf.mxu3 }
 0x237   : > { %v879_v5 = vadd.f32 %v878_v63, %v6242_v51  ;;  %v928_v7 = vadd.f32 %v927_v0, %v6240_v50  ;;  %v1037_v0 = vrot.slane %v1036_v49, 1  ;;  %v1054_v17 = vmax.f32 %v1052_v54, %v1053_v1  ;;  %v5313_v1 = vld [vmem:[#allocation7] sm:$0xff] }
 0x239   : > { %v961_v13 = vmax.f32 %v879_v5, 0.0  ;;  %v962_v14 = vmax.f32 %v928_v7, 0.0  ;;  %1700 = vperm.xlu1 %5562, %v6127_v6   ;;  %v5952_v6 = vmov 4  }
 0x23b   : > { %v1064_v20 = vmax.f32 %v959_v11, %v961_v13  ;;  %v1072_v23 = vsel %vm974_vm7, %v962_v14, -inf  ;;  %v1038_v14 = vmax.f32 %v1036_v49, %v1037_v0  ;;  %v6380_v0 = vld [vmem:[%s6120_s16 + $0x20] sm:$0xff] }
 0x23c   : > { %v1073_v26 = vmax.f32 %v1071_v19, %v1072_v23  ;;  %5567 = vset.pattern.permute.xlu2 %v5950_v40  ;;  %1540 = vperm.xlu0 %5601, %v6345_v33  }
 0x23d   : > { %v1065_v27 = vrot.slane %v1064_v20, 4 }
 0x23e   : > { %v1074_v29 = vrot.slane %v1073_v26, 4  ;;  %v881_v30 = vpop.f32.mrf.mxu2  ;;  %v930_v31 = vpop.f32.mrf.mxu3 }
 0x23f   : > { %v1066_v35 = vmax.f32 %v1064_v20, %v1065_v27  ;;  %v931_v42 = vadd.f32 %v930_v31, %v6240_v50  ;;  %v882_v47 = vadd.f32 %v881_v30, %v6242_v51  ;;  %v1128_v27 = vpack.c.bf16 %v1038_v14, %v1038_v14  ;;  %v6463_v14 = vld [vmem:[%s6120_s16 + $0x78] sm:$0xff] }
 0x240   : > { %v1075_v36 = vmax.f32 %v1073_v26, %v1074_v29  ;;  %v1130_v29 = vpack.c.bf16 %v1054_v17, %v1054_v17  ;;  %v5627_v17 = vld [vmem:[%s7443_s11 + $0x4] ss:$0 sm:$0xff] }
 0x241   : > { %v1067_v45 = vrot.slane %v1066_v35, 2  ;;  %v964_v55 = vmax.f32 %v931_v42, 0.0  ;;  %v963_v62 = vmax.f32 %v882_v47, 0.0  ;;  %5564 = vset.pattern.permute.xlu1 %v5952_v6  ;;  %v1164_v38 = vunpack.c.l.b16 %v1128_v27  ;;  %v6488_v27 = vld [vmem:[%s6120_s16 + $0x58] sm:$0xff] }
 0x242   : > { %v1076_v48 = vrot.slane %v1075_v36, 2  ;;  %2020 = vperm.xlu1 %5564, %v6345_v33   ;;  %v1165_v42 = vunpack.c.l.b16 %v1129_v28  ;;  %v1166_v43 = vunpack.c.l.b16 %v1130_v29  ;;  %v5319_v29 = vld [vmem:[#allocation9] sm:$0xff] }
 0x243   : > { %v1068_v60 = vmax.f32 %v1066_v35, %v1067_v45  ;;  %v1087_v3 = vsel %vm974_vm7, %v964_v55, -inf  ;;  %v1179_v8 = vsel %vm1178_vm11, %v1164_v38, %v6294_v22  ;;  %v6366_v22 = vld [vmem:[%s6120_s16 + $0x18] sm:$0xff] }
 0x244   : > { %v1077_v61 = vmax.f32 %v1075_v36, %v1076_v48  ;;  %v1181_v54 = vsel %vm1180_vm12, %v1166_v43, %v1179_v8  ;;  %v1189_v55 = vsel %vm1178_vm11, %v1165_v42, %v6297_v25  ;;  %1552 = vperm.xlu0 %5601, %v6380_v0  }
 0x245   : > { %v1069_v9 = vrot.slane %v1068_v60, 1 }
 0x246   : > { %v883_v34 = vpop.f32.mrf.mxu2  ;;  %v932_v53 = vpop.f32.mrf.mxu3  ;;  %v1078_v11 = vrot.slane %v1077_v61, 1 }
 0x247   : > { %v884_v56 = vadd.f32 %v883_v34, %v6242_v51  ;;  %v933_v57 = vadd.f32 %v932_v53, %v6240_v50  ;;  %v5315_v50 = vld [vmem:[#allocation7 + $0x10] sm:$0xff]  ;;  %v1062_v51 = vrot.slane %v1061_v59, 1  ;;  %v1070_v20 = vmax.f32 %v1068_v60, %v1069_v9  ;;  %v6427_v9 = vld [vmem:[%s6120_s16 + $0x70] sm:$0xff] }
 0x248   : > { %1360 = vmatpush.bf16.msrb.mxu2 %v5315_v50  ;;  %v1079_v24 = vmax.f32 %v1077_v61, %v1078_v11  ;;  %v6419_v50 = vld [vmem:[%s6120_s16 + $0x40] sm:$0xff]  ;;  %v6449_v11 = vld [vmem:[%s6120_s16 + $0x48] sm:$0xff] }
 0x249   : > { %v965_v63 = vmax.f32 %v884_v56, 0.0  ;;  %v966_v4 = vmax.f32 %v933_v57, 0.0  ;;  %v1063_v19 = vmax.f32 %v1061_v59, %v1062_v51  ;;  %v1132_v31 = vpack.c.bf16 %v1070_v20, %v1070_v20 }
 0x24a   : > { %v1133_v35 = vpack.c.bf16 %v1079_v24, %v1079_v24  ;;  %5566 = vset.pattern.permute.xlu1 %v5953_v37  ;;  %v5954_v51 = vmov 0  }
 0x24b   : > { %v1080_v5 = vmax.f32 %v963_v62, %v965_v63  ;;  %v1088_v7 = vsel %vm974_vm7, %v966_v4, -inf  ;;  %v1131_v21 = vpack.c.bf16 %v1063_v19, %v1063_v19  ;;  %v1168_v47 = vunpack.c.l.b16 %v1132_v31  ;;  %1548 = vperm.xlu1 %5566, %v6366_v22   ;;  %v6373_v63 = vld [vmem:[%s6120_s16 + $0x10] sm:$0xff] }
 0x24c   : > { %v1089_v10 = vmax.f32 %v1087_v3, %v1088_v7  ;;  %v1169_v49 = vunpack.c.l.b16 %v1133_v35  ;;  %1704 = vperm.xlu2 %5567, %v6373_v63   ;;  %v5314_v4 = vld [vmem:[#allocation7 + $0x8] sm:$0xff]  ;;  %1564 = vperm.xlu0 %5601, %v6387_v12   ;;  %v6405_v7 = vld [vmem:[%s6120_s16 + $0x68] sm:$0xff] }
 0x24d   : > { %v1081_v13 = vrot.slane %v1080_v5, 4  ;;  %v1167_v45 = vunpack.c.l.b16 %v1131_v21  ;;  %v1183_v56 = vsel %vm1182_vm13, %v1168_v47, %v1181_v54  ;;  %1361 = vmatpush.bf16.msrb.mxu2 %v5314_v4  ;;  %v6394_v3 = vld [vmem:[%s6120_s16 + $0x50] sm:$0xff] }
 0x24e   : > { %v1090_v15 = vrot.slane %v1089_v10, 4 }
 0x24f   : > { %v1082_v18 = vmax.f32 %v1080_v5, %v1081_v13  ;;  %v1190_v58 = vsel %vm1180_vm12, %v1167_v45, %v1189_v55  ;;  %v6399_v5 = vld [vmem:[%s6120_s16 + $0x28] sm:$0xff]  ;;  %v6456_v13 = vld [vmem:[%s6120_s16 + $0x60] sm:$0xff] }
 0x250   : > { %v1091_v23 = vmax.f32 %v1089_v10, %v1090_v15  ;;  %v1191_v60 = vsel %vm1182_vm13, %v1169_v49, %v1190_v58  ;;  %v6432_v10 = vld [vmem:[%s6120_s16 + $0x30] sm:$0xff]  ;;  %v5321_v15 = vld [vmem:[#allocation9 + $0x10] sm:$0xff]  ;;  %v5628_v55 = vld [vmem:[%s7443_s11 + $0x5] ss:$0 sm:$0xff] }
 0x251   : > { %v1083_v26 = vrot.slane %v1082_v18, 2  ;;  %1362 = vmatpush.bf16.msrb.mxu2 %v5313_v1  ;;  %1407 = vmatpush.bf16.msrb.mxu3 %v5321_v15 }
 0x252   : > { %v1092_v2 = vrot.slane %v1091_v23, 2 }
 0x253   : > { %v1084_v30 = vmax.f32 %v1082_v18, %v1083_v26  ;;  %5568 = vset.pattern.permute.xlu1 %v5951_v46 }
 0x254   : > { %v1093_v32 = vmax.f32 %v1091_v23, %v1092_v2  ;;  %1864 = vperm.xlu1 %5568, %v6373_v63   ;;  %5569 = vset.pattern.permute.xlu2 %v5951_v46 }
 0x255   : > { %v1085_v36 = vrot.slane %v1084_v30, 1  ;;  %1868 = vperm.xlu2 %5569, %v6366_v22   ;;  %1576 = vperm.xlu0 %5601, %v6394_v3  }
 0x256   : > { %v1094_v39 = vrot.slane %v1093_v32, 1  ;;  %1408 = vmatpush.bf16.msrb.mxu3 %v5320_v16 }
 0x257   : > { %v1086_v44 = vmax.f32 %v1084_v30, %v1085_v36 }
 0x258   : > { %v1095_v48 = vmax.f32 %v1093_v32, %v1094_v39 }
 0x259   : > { %v1134_v52 = vpack.c.bf16 %v1086_v44, %v1086_v44 }
 0x25a   : > { %v1135_v34 = vpack.c.bf16 %v1095_v48, %v1095_v48  ;;  %1409 = vmatpush.bf16.msrb.mxu3 %v5319_v29 }
 0x25b   : > { %v1170_v53 = vunpack.c.l.b16 %v1134_v52 }
 0x25c   : > { %v1171_v57 = vunpack.c.l.b16 %v1135_v34  ;;  %5570 = vset.pattern.permute.xlu1 %v5952_v6 }
 0x25d   : > { %v1185_v59 = vsel %vm1184_vm14, %v1170_v53, %v1183_v56  ;;  %2024 = vperm.xlu1 %5570, %v6373_v63   ;;  %5571 = vset.pattern.permute.xlu2 %v5952_v6 }
 0x25e   : > { %v1193_v61 = vpack.c.b16 %v1185_v59, %v1185_v59  ;;  %v1192_v62 = vsel %vm1184_vm14, %v1171_v57, %v1191_v60  ;;  %2028 = vperm.xlu2 %5571, %v6366_v22   ;;  %1588 = vperm.xlu0 %5601, %v6405_v7  }
 0x25f   : > { %v1194_v25 = vpack.c.b16 %v1192_v62, %v1192_v62 }
 0x260   : > { %1279 = vmatmul.bf16.vlgmr.msrb.gmra.mxu0 %v1193_v61 }
 0x261   : > { %4640 = vmatmul.msk.bf16.vlgmr.msrb.gmra.mxu1 %vm974_vm7, %v1194_v25 }
 0x265   : > { %5572 = vset.pattern.permute.xlu1 %v5953_v37 }
 0x266   : > { %1556 = vperm.xlu1 %5572, %v6399_v5   ;;  %5573 = vset.pattern.permute.xlu2 %v5950_v40 }
 0x267   : > { %1712 = vperm.xlu2 %5573, %v6380_v0   ;;  %5607 = vset.pattern.permute.xlu0 %v5950_v40 }
 0x268   : > { %1708 = vperm.xlu0 %5607, %v6366_v22  }
 0x26e   : > { %5574 = vset.pattern.permute.xlu1 %v5950_v40 }
 0x26f   : > { %1716 = vperm.xlu1 %5574, %v6399_v5   ;;  %5575 = vset.pattern.permute.xlu2 %v5951_v46 }
 0x270   : > { %1872 = vperm.xlu2 %5575, %v6380_v0   ;;  %1728 = vperm.xlu0 %5607, %v6419_v50  }
 0x277   : > { %5577 = vset.pattern.permute.xlu1 %v5952_v6 }
 0x278   : > { %2032 = vperm.xlu1 %5577, %v6380_v0   ;;  %5578 = vset.pattern.permute.xlu2 %v5952_v6 }
 0x279   : > { %2036 = vperm.xlu2 %5578, %v6399_v5   ;;  %1752 = vperm.xlu0 %5607, %v6427_v9  }
 0x27d   : > { %v6493_v30 = vpop.permute.xlu2 %1856 }
 0x280   : > { %5579 = vset.pattern.permute.xlu1 %v5954_v51 }
 0x281   : > { %1425 = vperm.xlu1 %5579, %v6352_v41   ;;  %5580 = vset.pattern.permute.xlu2 %v5954_v51 }
 0x282   : > { %1430 = vperm.xlu2 %5580, %v6345_v33   ;;  %5617 = vset.pattern.permute.xlu0 %v5952_v6 }
 0x283   : > { %2016 = vperm.xlu0 %5617, %v6352_v41  }
 0x285   : > { %v6501_v31 = vpop.permute.xlu2 %1860 }
 0x289   : > { %5582 = vset.pattern.permute.xlu1 %v5950_v40 }
 0x28a   : > { %1720 = vperm.xlu1 %5582, %v6432_v10   ;;  %5581 = vset.pattern.permute.xlu2 %v5953_v37 }
 0x28b   : > { %1560 = vperm.xlu2 %5581, %v6432_v10   ;;  %2040 = vperm.xlu0 %5617, %v6432_v10  }
 0x28e   : > { %v6509_v33 = vpop.permute.xlu2 %1544 }
 0x292   : > { %5584 = vset.pattern.permute.xlu1 %v5951_v46 }
 0x293   : > { %1880 = vperm.xlu1 %5584, %v6432_v10   ;;  %5583 = vset.pattern.permute.xlu2 %v5950_v40 }
 0x294   : > { %1724 = vperm.xlu2 %5583, %v6387_v12   ;;  %2052 = vperm.xlu0 %5617, %v6449_v11  }
 0x295   : > { %v6596_v60 = vpop.permute.xlu0 %1876 }
 0x29b   : > { %5586 = vset.pattern.permute.xlu1 %v5952_v6 }
 0x29c   : > { %2044 = vperm.xlu1 %5586, %v6387_v12   ;;  %5585 = vset.pattern.permute.xlu2 %v5951_v46 }
 0x29d   : > { %1884 = vperm.xlu2 %5585, %v6387_v12   ;;  %2064 = vperm.xlu0 %5617, %v6456_v13  }
 0x2a3   : > { %v6495_v21 = vpop.permute.xlu1 %1696 }
 0x2a4   : > { %5588 = vset.pattern.permute.xlu1 %v5954_v51 }
 0x2a5   : > { %1440 = vperm.xlu1 %5588, %v6366_v22   ;;  %5587 = vset.pattern.permute.xlu2 %v5954_v51 }
 0x2a6   : > { %1435 = vperm.xlu2 %5587, %v6373_v63   ;;  %2076 = vperm.xlu0 %5617, %v6463_v14   ;;  %v6518_v36 = vpop.permute.xlu2 %1704  ;;  %v6602_v63 = vpop.permute.xlu0 %1900 }
 0x2ab   : > { %v6503_v32 = vpop.permute.xlu1 %1700 }
 0x2ad   : > { %5589 = vset.pattern.permute.xlu1 %v5953_v37 }
 0x2ae   : > { %1568 = vperm.xlu1 %5589, %v6419_v50   ;;  %5590 = vset.pattern.permute.xlu2 %v5953_v37 }
 0x2af   : > { %1572 = vperm.xlu2 %5590, %v6449_v11   ;;  %5624 = vset.pattern.permute.xlu0 %v5954_v51  ;;  %v6527_v39 = vpop.permute.xlu2 %1868 }
 0x2b0   : > { %1485 = vperm.xlu0 %5624, %v6456_v13  }
 0x2b4   : > { %v6512_v35 = vpop.permute.xlu1 %2020 }
 0x2b6   : > { %5591 = vset.pattern.permute.xlu1 %v5950_v40 }
 0x2b7   : > { %1732 = vperm.xlu1 %5591, %v6449_v11   ;;  %5592 = vset.pattern.permute.xlu2 %v5951_v46 }
 0x2b8   : > { %1888 = vperm.xlu2 %5592, %v6419_v50   ;;  %1500 = vperm.xlu0 %5624, %v6463_v14   ;;  %v6536_v42 = vpop.permute.xlu2 %2028 }
 0x2bd   : > { %v6521_v38 = vpop.permute.xlu1 %1548 }
 0x2bf   : > { %5593 = vset.pattern.permute.xlu1 %v5951_v46 }
 0x2c0   : > { %1892 = vperm.xlu1 %5593, %v6449_v11   ;;  %5594 = vset.pattern.permute.xlu2 %v5952_v6 }
 0x2c1   : > { %2048 = vperm.xlu2 %5594, %v6419_v50   ;;  %v6545_v44 = vpop.permute.xlu2 %1712 }
 0x2c6   : > { %v6530_v41 = vpop.permute.xlu1 %1864 }
 0x2c8   : > { %5595 = vset.pattern.permute.xlu1 %v5954_v51 }
 0x2c9   : > { %1445 = vperm.xlu1 %5595, %v6380_v0   ;;  %5596 = vset.pattern.permute.xlu2 %v5954_v51 }
 0x2ca   : > { %1450 = vperm.xlu2 %5596, %v6399_v5   ;;  %v6553_v48 = vpop.permute.xlu2 %1872 }
 0x2cf   : > { %v6539_v43 = vpop.permute.xlu1 %2024 }
 0x2d1   : > { %5597 = vset.pattern.permute.xlu1 %v5953_v37 }
 0x2d2   : > { %1580 = vperm.xlu1 %5597, %v6488_v27   ;;  %5598 = vset.pattern.permute.xlu2 %v5950_v40 }
 0x2d3   : > { %1736 = vperm.xlu2 %5598, %v6394_v3   ;;  %v6561_v49 = vpop.permute.xlu2 %2036 }
 0x2d8   : > { %v6547_v45 = vpop.permute.xlu1 %1556 }
 0x2da   : > { %5599 = vset.pattern.permute.xlu1 %v5950_v40 }
 0x2db   : > { %1740 = vperm.xlu1 %5599, %v6488_v27   ;;  %5600 = vset.pattern.permute.xlu2 %v5951_v46 }
 0x2dc   : > { %1896 = vperm.xlu2 %5600, %v6394_v3  }
 0x2dd   : > { %v1280_v18 = vpop.f32.mrf.mxu0 }
 0x2de   : > { %v1281_v19 = vadd.f32 %v5627_v17, %v1280_v18  ;;  %v1293_v20 = vpop.f32.mrf.mxu1 }
 0x2e0   : > { %v1294_v23 = vadd.f32 %v1293_v20, %v1281_v19 }
 0x2e1   : > { %v6555_v47 = vpop.permute.xlu1 %1716 }
 0x2e2   : > { %v1297_v24 = vmax.f32 %v1294_v23, 0.0 }
 0x2e3   : > { %5602 = vset.pattern.permute.xlu1 %v5952_v6 }
 0x2e4   : > { %v1310_v26 = vpack.c.bf16 %v1297_v24, %v1297_v24  ;;  %2056 = vperm.xlu1 %5602, %v6394_v3   ;;  %5603 = vset.pattern.permute.xlu2 %v5952_v6 }
 0x2e5   : > { %v1282_v2 = vpop.f32.mrf.mxu0  ;;  %2060 = vperm.xlu2 %5603, %v6488_v27  }
 0x2e6   : > { %v1295_v28 = vpop.f32.mrf.mxu1  ;;  %4665 = vmatmul.msk.bf16.vlgmr.msrb.gmra.mxu2 %vm1351_vm15, %v1310_v26 }
 0x2ea   : > { %v6563_v52 = vpop.permute.xlu1 %2032 }
 0x2ec   : > { %5604 = vset.pattern.permute.xlu1 %v5954_v51 }
 0x2ed   : > { %1455 = vperm.xlu1 %5604, %v6432_v10   ;;  %5605 = vset.pattern.permute.xlu2 %v5954_v51 }
 0x2ee   : > { %1460 = vperm.xlu2 %5605, %v6387_v12   ;;  %v1537_v12 = vpop.permute.xlu0 %1536 }
 0x2f5   : > { %5608 = vset.pattern.permute.xlu1 %v5950_v40 }
 0x2f6   : > { %1744 = vperm.xlu1 %5608, %v6456_v13   ;;  %5606 = vset.pattern.permute.xlu2 %v5953_v37  ;;  %v1541_v5 = vpop.permute.xlu0 %1540 }
 0x2f7   : > { %1584 = vperm.xlu2 %5606, %v6456_v13  }
 0x2fe   : > { %5610 = vset.pattern.permute.xlu1 %v5951_v46 }
 0x2ff   : > { %1904 = vperm.xlu1 %5610, %v6456_v13   ;;  %5609 = vset.pattern.permute.xlu2 %v5950_v40 }
 0x300   : > { %1748 = vperm.xlu2 %5609, %v6405_v7  }
 0x307   : > { %5612 = vset.pattern.permute.xlu1 %v5952_v6 }
 0x308   : > { %2068 = vperm.xlu1 %5612, %v6405_v7   ;;  %5611 = vset.pattern.permute.xlu2 %v5951_v46 }
 0x309   : > { %1908 = vperm.xlu2 %5611, %v6405_v7  }
 0x310   : > { %5614 = vset.pattern.permute.xlu1 %v5954_v51 }
 0x311   : > { %1470 = vperm.xlu1 %5614, %v6449_v11   ;;  %5613 = vset.pattern.permute.xlu2 %v5954_v51 }
 0x312   : > { %1465 = vperm.xlu2 %5613, %v6419_v50  }
 0x319   : > { %5615 = vset.pattern.permute.xlu1 %v5953_v37 }
 0x31a   : > { %1592 = vperm.xlu1 %5615, %v6427_v9   ;;  %5616 = vset.pattern.permute.xlu2 %v5953_v37  ;;  %v6569_v37 = vpop.permute.xlu2 %1430 }
 0x31b   : > { %1596 = vperm.xlu2 %5616, %v6463_v14  }
 0x322   : > { %5618 = vset.pattern.permute.xlu1 %v5950_v40  ;;  %v6571_v40 = vpop.permute.xlu1 %1425  ;;  %v6577_v34 = vpop.permute.xlu2 %1560 }
 0x323   : > { %1756 = vperm.xlu1 %5618, %v6463_v14   ;;  %5619 = vset.pattern.permute.xlu2 %v5951_v46 }
 0x324   : > { %1912 = vperm.xlu2 %5619, %v6427_v9  }
 0x32b   : > { %5620 = vset.pattern.permute.xlu1 %v5951_v46  ;;  %v6579_v46 = vpop.permute.xlu1 %1720 }
 0x32c   : > { %1916 = vperm.xlu1 %5620, %v6463_v14   ;;  %5621 = vset.pattern.permute.xlu2 %v5952_v6  ;;  %v6583_v6 = vpop.permute.xlu2 %1724 }
 0x32d   : > { %2072 = vperm.xlu2 %5621, %v6427_v9  }
 0x333   : > { %v6585_v8 = vpop.permute.xlu1 %1880 }
 0x334   : > { %5622 = vset.pattern.permute.xlu1 %v5954_v51  ;;  %v6587_v53 = vpop.permute.xlu2 %1884 }
 0x335   : > { %1475 = vperm.xlu1 %5622, %v6394_v3   ;;  %5623 = vset.pattern.permute.xlu2 %v5954_v51  ;;  %v6616_v51 = vpop.permute.xlu0 %1552 }
 0x336   : > { %1480 = vperm.xlu2 %5623, %v6488_v27  }
 0x33b   : > { %v6589_v54 = vpop.permute.xlu1 %2044 }
 0x33c   : > { %v6594_v59 = vpop.permute.xlu2 %1435 }
 0x33d   : > { %1490 = vperm.xlu1 %5622, %v6405_v7   ;;  %7451 = vst [vmem:[#allocation17_spill] sm:$0xff] %v6594_v59  ;;  %v6622_v11 = vpop.permute.xlu0 %1564 }
 0x33e   : > { %1495 = vperm.xlu2 %5623, %v6427_v9  }
 0x343   : > { %v6598_v22 = vpop.permute.xlu1 %1440 }
 0x344   : > { %7452 = vst [vmem:[#allocation18_spill] sm:$0xff] %v6598_v22  ;;  %v6600_v25 = vpop.permute.xlu2 %1572  ;;  %v5629_v22 = vld [vmem:[%s7443_s11 + $0x6] ss:$0 sm:$0xff] }
 0x345   : > { %v6628_v15 = vpop.permute.xlu0 %1576 }
 0x34b   : > { %v6604_v4 = vpop.permute.xlu1 %1568 }
 0x34c   : > { %v6606_v0 = vpop.permute.xlu2 %1888 }
 0x34d   : > { %v6634_v18 = vpop.permute.xlu0 %1588 }
 0x353   : > { %v6608_v1 = vpop.permute.xlu1 %1732 }
 0x354   : > { %v6610_v3 = vpop.permute.xlu2 %2048 }
 0x355   : > { %v1709_v23 = vpop.permute.xlu0 %1708 }
 0x35b   : > { %v6612_v7 = vpop.permute.xlu1 %1892 }
 0x35c   : > { %v6614_v50 = vpop.permute.xlu2 %1450 }
 0x35d   : > { %7453 = vst [vmem:[#allocation19_spill] sm:$0xff] %v6614_v50  ;;  %v6644_v27 = vpop.permute.xlu0 %1728 }
 0x363   : > { %v6618_v9 = vpop.permute.xlu1 %1445 }
 0x364   : > { %7454 = vst [vmem:[#allocation20_spill] sm:$0xff] %v6618_v9  ;;  %v6620_v10 = vpop.permute.xlu2 %1736 }
 0x365   : > { %v6650_v29 = vpop.permute.xlu0 %1752 }
 0x366   : > { %7457 = vst [vmem:[#allocation23_spill] sm:$0xff] %v6650_v29 }
 0x369   : > { %v1364_v56 = vpop.f32.mrf.mxu2 }
 0x36a   : > { %v1365_v57 = vadd.f32 %v5628_v55, %v1364_v56 }
 0x36b   : > { %v6624_v13 = vpop.permute.xlu1 %1580 }
 0x36c   : > { %v1368_v58 = vmax.f32 %v1365_v57, 0.0  ;;  %v6626_v14 = vpop.permute.xlu2 %1896 }
 0x36d   : > { %v2017_v57 = vpop.permute.xlu0 %2016 }
 0x36e   : > { %v1375_v61 = vpack.c.bf16 %v1368_v58, %v1368_v58 }
 0x370   : > { %4678 = vmatmul.msk.bf16.vlgmr.msrb.gmra.mxu3 %vm1398_vm0, %v1375_v61 }
 0x371   : > { %v1366_v62 = vpop.f32.mrf.mxu2 }
 0x373   : > { %v6630_v16 = vpop.permute.xlu1 %1740 }
 0x374   : > { %v6632_v17 = vpop.permute.xlu2 %2060 }
 0x375   : > { %v6660_v62 = vpop.permute.xlu0 %2040 }
 0x37b   : > { %v6636_v19 = vpop.permute.xlu1 %2056 }
 0x37c   : > { %v6638_v20 = vpop.permute.xlu2 %1460 }
 0x37d   : > { %7455 = vst [vmem:[#allocation21_spill] sm:$0xff] %v6638_v20  ;;  %v6666_v50 = vpop.permute.xlu0 %2052 }
 0x383   : > { %v6640_v24 = vpop.permute.xlu1 %1455 }
 0x384   : > { %7456 = vst [vmem:[#allocation22_spill] sm:$0xff] %v6640_v24  ;;  %v6642_v26 = vpop.permute.xlu2 %1584 }
 0x38b   : > { %v6646_v2 = vpop.permute.xlu1 %1744 }
 0x38c   : > { %v6648_v28 = vpop.permute.xlu2 %1748 }
 0x393   : > { %v6652_v55 = vpop.permute.xlu1 %1904 }
 0x394   : > { %7458 = vst [vmem:[#allocation24_spill] sm:$0xff] %v6652_v55  ;;  %v6654_v56 = vpop.permute.xlu2 %1908 }
 0x395   : > { %7459 = vst [vmem:[#allocation25_spill] sm:$0xff] %v6654_v56  ;;  %v6680_v56 = vpop.permute.xlu0 %2064 }
 0x39b   : > { %v6656_v58 = vpop.permute.xlu1 %2068 }
 0x39c   : > { %7460 = vst [vmem:[#allocation26_spill] sm:$0xff] %v6656_v58  ;;  %v6658_v61 = vpop.permute.xlu2 %1465 }
 0x39d   : > { %7461 = vst [vmem:[#allocation27_spill] sm:$0xff] %v6658_v61 }
 0x3a3   : > { %v6662_v24 = vpop.permute.xlu1 %1470 }
 0x3a4   : > { %7462 = vst [vmem:[#allocation28_spill] sm:$0xff] %v6662_v24  ;;  %v6664_v20 = vpop.permute.xlu2 %1596 }
 0x3a5   : > { %7463 = vst [vmem:[#allocation29_spill] sm:$0xff] %v6664_v20 }
 0x3ab   : > { %v6668_v9 = vpop.permute.xlu1 %1592 }
 0x3ac   : > { %7464 = vst [vmem:[#allocation30_spill] sm:$0xff] %v6668_v9  ;;  %v6678_v61 = vpop.permute.xlu2 %1912 }
 0x3ad   : > { %7465 = vst [vmem:[#allocation31_spill] sm:$0xff] %v6678_v61 }
 0x3b3   : > { %v6682_v24 = vpop.permute.xlu1 %1756 }
 0x3b4   : > { %7466 = vst [vmem:[#allocation32_spill] sm:$0xff] %v6682_v24  ;;  %v6694_v61 = vpop.permute.xlu2 %2072 }
 0x3b5   : > { %7467 = vst [vmem:[#allocation33_spill] sm:$0xff] %v6694_v61 }
 0x3f3   : > { %v1411_v59 = vpop.f32.mrf.mxu3 }
 0x3f4   : > { %v6673_v29 = vadd.f32 %v5629_v22, %v1411_v59 }
 0x3f6   : > { %v6676_v58 = vperm.slane %v6673_v29, 0  ;;  %v1416_v22 = vrot.slane %v6673_v29, 1 }
 0x3f8   : > { %v1759_v20 = vmul.f32 %v6495_v21, %v6676_v58  ;;  %v1600_v9 = vmul.f32 %v1541_v5, %v6676_v58  ;;  %v1599_v55 = vmul.f32 %v1537_v12, %v6676_v58  ;;  %v1920_v24 = vmul.f32 %v6501_v31, %v6676_v58  ;;  %v6700_v5 = vpop.permute.xlu0 %2076 }
 0x3f9   : > { %v1919_v21 = vmul.f32 %v6493_v30, %v6676_v58  ;;  %v1760_v12 = vmul.f32 %v6503_v32, %v6676_v58  ;;  %v1420_v31 = vrot.slane %v6673_v29, 5  ;;  %v1421_v30 = vrot.slane %v6673_v29, 6 }
 0x3fa   : > { %1791 = vrot.lane.b32.xlu2 %v1759_v20, %s5955_s24  ;;  %1633 = vrot.lane.b32.xlu1 %v1600_v9, %s5956_s27  ;;  %v6702_v20 = vpop.permute.xlu1 %1916  ;;  %v6708_v9 = vperm.slane %v1416_v22, 0 }
 0x3fb   : > { %v1413_v59 = vpop.f32.mrf.mxu3  ;;  %1631 = vrot.lane.b32.xlu0 %v1599_v55, %s5956_s27  ;;  %v6711_v55 = vperm.slane %v1420_v31, 0 }
 0x3fc   : > { %v1601_v32 = vmul.f32 %v6509_v33, %v6708_v9  ;;  %v6715_v59 = vperm.slane %v1421_v30, 0  ;;  %v1761_v30 = vmul.f32 %v6518_v36, %v6708_v9  ;;  %v1921_v36 = vmul.f32 %v6530_v41, %v6708_v9 }
 0x400   : > { %v1486_v22 = vpop.permute.xlu0 %1485 }
 0x402   : > { %1953 = vrot.lane.b32.xlu2 %v1920_v24, %s5957_s28  ;;  %1951 = vrot.lane.b32.xlu1 %v1919_v21, %s5957_s28  ;;  %v2080_v24 = vmul.f32 %v6512_v35, %v6676_v58  ;;  %v2079_v21 = vmul.f32 %v2017_v57, %v6676_v58  ;;  %v1476_v31 = vpop.permute.xlu1 %1475  ;;  %v6730_v35 = vmul.f32 %v6715_v59, %v1486_v22 }
 0x403   : > { %1793 = vrot.lane.b32.xlu0 %v1760_v12, %s5955_s24  ;;  %v1481_v12 = vpop.permute.xlu2 %1480  ;;  %v6727_v33 = vmul.f32 %v6711_v55, %v1476_v31  ;;  %v1762_v57 = vmul.f32 %v1709_v23, %v6708_v9  ;;  %v1922_v23 = vmul.f32 %v6527_v39, %v6708_v9  ;;  %v2082_v39 = vmul.f32 %v6536_v42, %v6708_v9 }
 0x404   : > { %v6724_v61 = vmul.f32 %v6711_v55, %v1481_v12  ;;  %v1418_v42 = vrot.slane %v6673_v29, 3 }
 0x40a   : > { %1635 = vrot.lane.b32.xlu2 %v1601_v32, %s5956_s27  ;;  %2113 = vrot.lane.b32.xlu1 %v2080_v24, %s5958_s30  ;;  %v1602_v32 = vmul.f32 %v6521_v38, %v6708_v9  ;;  %v1417_v24 = vrot.slane %v6673_v29, 2 }
 0x40b   : > { %2111 = vrot.lane.b32.xlu0 %v2079_v21, %s5958_s30  ;;  %v2081_v21 = vmul.f32 %v6539_v43, %v6708_v9 }
 0x40c   : > { %v6750_v38 = vperm.slane %v1417_v24, 0 }
 0x40e   : > { %v1604_v12 = vmul.f32 %v6547_v45, %v6750_v38  ;;  %v1603_v43 = vmul.f32 %v6616_v51, %v6750_v38  ;;  %v1923_v41 = vmul.f32 %v6553_v48, %v6750_v38  ;;  %v1764_v22 = vmul.f32 %v6555_v47, %v6750_v38 }
 0x40f   : > { %v1763_v45 = vmul.f32 %v6545_v44, %v6750_v38  ;;  %v2084_v51 = vmul.f32 %v6561_v49, %v6750_v38  ;;  %v2083_v48 = vmul.f32 %v6563_v52, %v6750_v38  ;;  %v1924_v47 = vmul.f32 %v6596_v60, %v6750_v38 }
 0x410   : > { %v6780_v44 = vperm.slane %v1418_v42, 0  ;;  %v1419_v60 = vrot.slane %v6673_v29, 4 }
 0x412   : > { %1797 = vrot.lane.b32.xlu2 %v1762_v57, %s5955_s24  ;;  %1795 = vrot.lane.b32.xlu1 %v1761_v30, %s5955_s24  ;;  %v1765_v31 = vmul.f32 %v6579_v46, %v6780_v44  ;;  %v1606_v49 = vmul.f32 %v6622_v11, %v6780_v44  ;;  %v1605_v52 = vmul.f32 %v6577_v34, %v6780_v44  ;;  %v6801_v34 = vperm.slane %v1419_v60, 0 }
 0x413   : > { %1637 = vrot.lane.b32.xlu0 %v1602_v32, %s5956_s27  ;;  %v1926_v57 = vmul.f32 %v6587_v53, %v6780_v44  ;;  %v1925_v46 = vmul.f32 %v6585_v8, %v6780_v44  ;;  %v1766_v11 = vmul.f32 %v6583_v6, %v6780_v44  ;;  %v2086_v53 = vmul.f32 %v6589_v54, %v6780_v44  ;;  %v6812_v6 = vpop.permute.xlu2 %1495 }
 0x414   : > { %v1607_v30 = vmul.f32 %v6604_v4, %v6801_v34  ;;  %v2085_v8 = vmul.f32 %v6660_v62, %v6780_v44  ;;  %v1768_v32 = vmul.f32 %v6608_v1, %v6801_v34  ;;  %v1767_v4 = vmul.f32 %v6644_v27, %v6801_v34 }
 0x415   : > { %v1608_v54 = vmul.f32 %v6600_v25, %v6801_v34  ;;  %v2087_v24 = vmul.f32 %v6610_v3, %v6801_v34  ;;  %v1927_v1 = vmul.f32 %v6606_v0, %v6801_v34  ;;  %v1610_v27 = vmul.f32 %v6624_v13, %v6711_v55 }
 0x416   : > { %v2088_v3 = vmul.f32 %v6666_v50, %v6801_v34  ;;  %v1929_v13 = vmul.f32 %v6626_v14, %v6711_v55  ;;  %v1769_v50 = vmul.f32 %v6620_v10, %v6711_v55  ;;  %v2089_v14 = vmul.f32 %v6636_v19, %v6711_v55 }
 0x417   : > { %v1520_v10 = vmul.f32 %v6676_v58, %v6569_v37 }
 0x41a   : > { %2115 = vrot.lane.b32.xlu2 %v2081_v21, %s5958_s30  ;;  %1957 = vrot.lane.b32.xlu1 %v1922_v23, %s5957_s28  ;;  %v1928_v21 = vmul.f32 %v6612_v7, %v6801_v34  ;;  %v1609_v23 = vmul.f32 %v6628_v15, %v6711_v55  ;;  %v6843_v7 = vpop.permute.xlu0 %1500  ;;  %v1770_v15 = vmul.f32 %v6630_v16, %v6711_v55 }
 0x41b   : > { %1955 = vrot.lane.b32.xlu0 %v1921_v36, %s5957_s28  ;;  %v6845_v36 = vpop.permute.xlu1 %1490  ;;  %v1930_v16 = vmul.f32 %v6602_v63, %v6711_v55  ;;  %v1611_v63 = vmul.f32 %v6642_v26, %v6715_v59 }
 0x422   : > { %1641 = vrot.lane.b32.xlu2 %v1604_v12, %s5956_s27  ;;  %1639 = vrot.lane.b32.xlu1 %v1603_v43, %s5956_s27 }
 0x423   : > { %2117 = vrot.lane.b32.xlu0 %v2082_v39, %s5958_s30 }
 0x42a   : > { %1959 = vrot.lane.b32.xlu2 %v1923_v41, %s5957_s28  ;;  %1801 = vrot.lane.b32.xlu1 %v1764_v22, %s5955_s24  ;;  %v2090_v41 = vmul.f32 %v6632_v17, %v6711_v55  ;;  %v1519_v22 = vmul.f32 %v6676_v58, %v6571_v40  ;;  %v1612_v55 = vmul.f32 %v6634_v18, %v6715_v59 }
 0x42b   : > { %1799 = vrot.lane.b32.xlu0 %v1763_v45, %s5955_s24  ;;  %v1771_v18 = vmul.f32 %v6646_v2, %v6715_v59 }
 0x432   : > { %2121 = vrot.lane.b32.xlu2 %v2084_v51, %s5958_s30  ;;  %2119 = vrot.lane.b32.xlu1 %v2083_v48, %s5958_s30 }
 0x433   : > { %1961 = vrot.lane.b32.xlu0 %v1924_v47, %s5957_s28  ;;  %v1772_v47 = vmul.f32 %v6648_v28, %v6715_v59  ;;  %v1422_v28 = vrot.slane %v6673_v29, 7 }
 0x43a   : > { %1803 = vrot.lane.b32.xlu2 %v1765_v31, %s5955_s24  ;;  %1645 = vrot.lane.b32.xlu1 %v1606_v49, %s5956_s27 }
 0x43b   : > { %1643 = vrot.lane.b32.xlu0 %v1605_v52, %s5956_s27 }
 0x442   : > { %1965 = vrot.lane.b32.xlu2 %v1926_v57, %s5957_s28  ;;  %1963 = vrot.lane.b32.xlu1 %v1925_v46, %s5957_s28  ;;  %v7468_v46 = vld [vmem:[#allocation24_spill] sm:$0xff] }
 0x443   : > { %1805 = vrot.lane.b32.xlu0 %v1766_v11, %s5955_s24  ;;  %v1931_v11 = vmul.f32 %v7468_v46, %v6715_v59 }
 0x44a   : > { %1647 = vrot.lane.b32.xlu2 %v1607_v30, %s5956_s27  ;;  %2125 = vrot.lane.b32.xlu1 %v2086_v53, %s5958_s30  ;;  %v2091_v30 = vmul.f32 %v6680_v56, %v6715_v59  ;;  %v7471_v56 = vld [vmem:[#allocation23_spill] sm:$0xff] }
 0x44b   : > { %2123 = vrot.lane.b32.xlu0 %v2085_v8, %s5958_s30  ;;  %v6889_v8 = vperm.slane %v1422_v28, 0  ;;  %v7480_v28 = vld [vmem:[#allocation33_spill] sm:$0xff] }
 0x44d   : > { %v2093_v46 = vmul.f32 %v7480_v28, %v6889_v8 }
 0x452   : > { %1809 = vrot.lane.b32.xlu2 %v1768_v32, %s5955_s24  ;;  %1807 = vrot.lane.b32.xlu1 %v1767_v4, %s5955_s24  ;;  %v7469_v4 = vld [vmem:[#allocation25_spill] sm:$0xff] }
 0x453   : > { %1649 = vrot.lane.b32.xlu0 %v1608_v54, %s5956_s27  ;;  %v1932_v54 = vmul.f32 %v7469_v4, %v6715_v59 }
 0x454   : > { %v1792_v62 = vpop.permute.xlu2 %1791 }
 0x45a   : > { %2127 = vrot.lane.b32.xlu2 %v2087_v24, %s5958_s30  ;;  %1969 = vrot.lane.b32.xlu1 %v1928_v21, %s5957_s28  ;;  %v1773_v21 = vmul.f32 %v7471_v56, %v6889_v8 }
 0x45b   : > { %1967 = vrot.lane.b32.xlu0 %v1927_v1, %s5957_s28  ;;  %v7472_v1 = vld [vmem:[#allocation17_spill] sm:$0xff] }
 0x45c   : > { %v1954_v25 = vpop.permute.xlu2 %1953 }
 0x462   : > { %1653 = vrot.lane.b32.xlu2 %v1610_v27, %s5956_s27  ;;  %1651 = vrot.lane.b32.xlu1 %v1609_v23, %s5956_s27  ;;  %v7473_v27 = vld [vmem:[#allocation18_spill] sm:$0xff] }
 0x463   : > { %2129 = vrot.lane.b32.xlu0 %v2088_v3, %s5958_s30  ;;  %v1522_v23 = vmul.f32 %v6708_v9, %v7473_v27 }
 0x464   : > { %v6841_v0 = vpop.permute.xlu2 %1635 }
 0x46a   : > { %1971 = vrot.lane.b32.xlu2 %v1929_v13, %s5957_s28  ;;  %1813 = vrot.lane.b32.xlu1 %v1770_v15, %s5955_s24 }
 0x46b   : > { %1811 = vrot.lane.b32.xlu0 %v1769_v50, %s5955_s24 }
 0x46c   : > { %v1798_v12 = vpop.permute.xlu2 %1797  ;;  %v1634_v43 = vpop.permute.xlu1 %1633 }
 0x46d   : > { %v1632_v39 = vpop.permute.xlu0 %1631  ;;  %v1680_v51 = vadd.f32 %v1634_v43, %v1520_v10 }
 0x46e   : > { %v1679_v19 = vadd.f32 %v1632_v39, %v1519_v22  ;;  %v1934_v22 = vmul.f32 %v6702_v20, %v6889_v8  ;;  %v7477_v20 = vld [vmem:[#allocation32_spill] sm:$0xff] }
 0x470   : > { %v1839_v31 = vadd.f32 %v1792_v62, %v1679_v19  ;;  %v7470_v62 = vld [vmem:[#allocation26_spill] sm:$0xff] }
 0x471   : > { %v2092_v24 = vmul.f32 %v7470_v62, %v6715_v59 }
 0x472   : > { %2133 = vrot.lane.b32.xlu2 %v2090_v41, %s5958_s30  ;;  %2131 = vrot.lane.b32.xlu1 %v2089_v14, %s5958_s30  ;;  %v7474_v41 = vld [vmem:[#allocation29_spill] sm:$0xff] }
 0x473   : > { %1973 = vrot.lane.b32.xlu0 %v1930_v16, %s5957_s28  ;;  %v1614_v14 = vmul.f32 %v7474_v41, %v6889_v8  ;;  %v7475_v16 = vld [vmem:[#allocation30_spill] sm:$0xff] }
 0x474   : > { %v2116_v45 = vpop.permute.xlu2 %2115  ;;  %v1952_v17 = vpop.permute.xlu1 %1951  ;;  %v1613_v10 = vmul.f32 %v7475_v16, %v6889_v8 }
 0x475   : > { %v1794_v42 = vpop.permute.xlu0 %1793  ;;  %v1999_v37 = vadd.f32 %v1952_v17, %v1839_v31 }
 0x476   : > { %v1840_v48 = vadd.f32 %v1794_v42, %v1680_v51 }
 0x478   : > { %v2000_v40 = vadd.f32 %v1954_v25, %v1840_v48  ;;  %v1521_v25 = vmul.f32 %v6708_v9, %v7472_v1 }
 0x47a   : > { %1655 = vrot.lane.b32.xlu2 %v1611_v63, %s5956_s27  ;;  %1657 = vrot.lane.b32.xlu1 %v1612_v55, %s5956_s27  ;;  %v1681_v50 = vadd.f32 %v6841_v0, %v1521_v25 }
 0x47b   : > { %1817 = vrot.lane.b32.xlu0 %v1772_v47, %s5955_s24  ;;  %v7476_v47 = vld [vmem:[#allocation31_spill] sm:$0xff] }
 0x47c   : > { %v1642_v58 = vpop.permute.xlu2 %1641  ;;  %v2114_v49 = vpop.permute.xlu1 %2113  ;;  %v1933_v31 = vmul.f32 %v7476_v47, %v6889_v8 }
 0x47d   : > { %v2112_v52 = vpop.permute.xlu0 %2111  ;;  %v2160_v60 = vadd.f32 %v2114_v49, %v2000_v40 }
 0x47e   : > { %v2159_v26 = vadd.f32 %v2112_v52, %v1999_v37  ;;  %v7478_v52 = vld [vmem:[#allocation20_spill] sm:$0xff] }
 0x480   : > { %v2177_v57 = vpack.c.bf16 %v2160_v60, %v2159_v26  ;;  %v7479_v60 = vld [vmem:[#allocation19_spill] sm:$0xff] }
 0x481   : > { %v1524_v26 = vmul.f32 %v6750_v38, %v7479_v60 }
 0x482   : > { %4679 = vmatmul.msk.bf16.vlgmr.msra.gmra.mxu0 %vm563_vm2, %v2177_v57  ;;  %1815 = vrot.lane.b32.xlu2 %v1771_v18, %s5955_s24  ;;  %v2094_v18 = vmul.f32 %v6700_v5, %v6889_v8 }
 0x483   : > { %1975 = vrot.lane.b32.xlu1 %v1931_v11, %s5957_s28  ;;  %2135 = vrot.lane.b32.xlu0 %v2091_v30, %s5958_s30  ;;  %v1684_v11 = vadd.f32 %v1642_v58, %v1524_v26  ;;  %v7481_v58 = vld [vmem:[#allocation21_spill] sm:$0xff] }
 0x484   : > { %v1960_v53 = vpop.permute.xlu2 %1959  ;;  %v1796_v2 = vpop.permute.xlu1 %1795  ;;  %v1526_v27 = vmul.f32 %v6780_v44, %v7481_v58 }
 0x485   : > { %v1638_v32 = vpop.permute.xlu0 %1637  ;;  %v1841_v39 = vadd.f32 %v1796_v2, %v1681_v50 }
 0x486   : > { %v1682_v43 = vadd.f32 %v1638_v32, %v1522_v23  ;;  %v7482_v23 = vld [vmem:[#allocation22_spill] sm:$0xff] }
 0x488   : > { %v1842_v17 = vadd.f32 %v1798_v12, %v1682_v43  ;;  %v1774_v12 = vmul.f32 %v7477_v20, %v6889_v8 }
 0x48a   : > { %1977 = vrot.lane.b32.xlu2 %v1932_v54, %s5957_s28 }
 0x48b   : > { %2137 = vrot.lane.b32.xlu1 %v2092_v24, %s5958_s30  ;;  %1819 = vrot.lane.b32.xlu0 %v1773_v21, %s5955_s24 }
 0x48c   : > { %v2122_v3 = vpop.permute.xlu2 %2121  ;;  %v1958_v13 = vpop.permute.xlu1 %1957 }
 0x48d   : > { %v1956_v15 = vpop.permute.xlu0 %1955  ;;  %v2002_v9 = vadd.f32 %v1958_v13, %v1842_v17  ;;  %v1525_v13 = vmul.f32 %v6780_v44, %v7482_v23  ;;  %v7483_v44 = vld [vmem:[#allocation27_spill] sm:$0xff] }
 0x48e   : > { %v2001_v42 = vadd.f32 %v1956_v15, %v1841_v39 }
 0x490   : > { %v2161_v48 = vadd.f32 %v2116_v45, %v2001_v42  ;;  %v1523_v45 = vmul.f32 %v6750_v38, %v7478_v52 }
 0x492   : > { %1661 = vrot.lane.b32.xlu2 %v1614_v14, %s5956_s27 }
 0x493   : > { %1659 = vrot.lane.b32.xlu1 %v1613_v10, %s5956_s27  ;;  %1981 = vrot.lane.b32.xlu0 %v1934_v22, %s5957_s28 }
 0x494   : > { %v1804_v0 = vpop.permute.xlu2 %1803  ;;  %v1640_v51 = vpop.permute.xlu1 %1639 }
 0x495   : > { %v2118_v19 = vpop.permute.xlu0 %2117  ;;  %v1683_v57 = vadd.f32 %v1640_v51, %v1523_v45 }
 0x496   : > { %v2162_v63 = vadd.f32 %v2118_v19, %v2002_v9 }
 0x498   : > { %v2178_v55 = vpack.c.bf16 %v2162_v63, %v2161_v48  ;;  %v1527_v63 = vmul.f32 %v6801_v34, %v7483_v44 }
 0x49a   : > { %4680 = vmatmul.msk.bf16.gmra.mxu0 %vm563_vm2, %v2178_v55  ;;  %1979 = vrot.lane.b32.xlu2 %v1933_v31, %s5957_s28  ;;  %v7484_v55 = vld [vmem:[#allocation28_spill] sm:$0xff] }
 0x49b   : > { %1821 = vrot.lane.b32.xlu1 %v1774_v12, %s5955_s24  ;;  %v1528_v47 = vmul.f32 %v6801_v34, %v7484_v55  ;;  %s5959_s24 = smov 2  }
 0x49c   : > { %v1966_v37 = vpop.permute.xlu2 %1965  ;;  %v1802_v40 = vpop.permute.xlu1 %1801 }
 0x49d   : > { %v1800_v49 = vpop.permute.xlu0 %1799  ;;  %v1844_v2 = vadd.f32 %v1802_v40, %v1684_v11 }
 0x49e   : > { %v1843_v30 = vadd.f32 %v1800_v49, %v1683_v57 }
 0x4a0   : > { %v2003_v54 = vadd.f32 %v1960_v53, %v1843_v30 }
 0x4a2   : > { %2141 = vrot.lane.b32.xlu2 %v2094_v18, %s5958_s30 }
 0x4a3   : > { %2139 = vrot.lane.b32.xlu1 %v2093_v46, %s5958_s30  ;;  %s4547_s30 = sshll.u32 %s7488_s22, 3 }
 0x4a4   : > { %v2120_v32 = vpop.permute.xlu1 %2119  ;;  %v1648_v24 = vpop.permute.xlu2 %1647  ;;  %s532_s15 = scalar_lea.vmem %s7444_s12, %s4547_s30 }
 0x4a5   : > { %v1962_v4 = vpop.permute.xlu0 %1961  ;;  %v2163_v38 = vadd.f32 %v2120_v32, %v2003_v54  ;;  %v1687_v20 = vadd.f32 %v1648_v24, %v1527_v63 }
 0x4a6   : > { %v2004_v62 = vadd.f32 %v1962_v4, %v1844_v2 }
 0x4a8   : > { %v2164_v56 = vadd.f32 %v2122_v3, %v2004_v62 }
 0x4aa   : > { %v2179_v21 = vpack.c.bf16 %v2164_v56, %v2163_v38 }
 0x4ac   : > { %4681 = vmatmul.msk.bf16.gmra.mxu0 %vm563_vm2, %v2179_v21  ;;  %v1646_v5 = vpop.permute.xlu1 %1645  ;;  %v1810_v25 = vpop.permute.xlu2 %1809 }
 0x4ad   : > { %v1644_v1 = vpop.permute.xlu0 %1643  ;;  %v1686_v43 = vadd.f32 %v1646_v5, %v1526_v27  ;;  %v1532_v27 = vmul.f32 %v6715_v59, %v6845_v36  ;;  %v6951_v59 = vld [vmem:[%s7443_s11 + $0x7] ss:$0 sm:$0xff] }
 0x4ae   : > { %v1685_v53 = vadd.f32 %v1644_v1, %v1525_v13 }
 0x4b0   : > { %v1845_v41 = vadd.f32 %v1804_v0, %v1685_v53 }
 0x4b4   : > { %v1964_v15 = vpop.permute.xlu1 %1963  ;;  %v2128_v14 = vpop.permute.xlu2 %2127 }
 0x4b5   : > { %v1806_v50 = vpop.permute.xlu0 %1805  ;;  %v2005_v3 = vadd.f32 %v1964_v15, %v1845_v41 }
 0x4b6   : > { %v1846_v39 = vadd.f32 %v1806_v50, %v1686_v43 }
 0x4b8   : > { %v2006_v16 = vadd.f32 %v1966_v37, %v1846_v39 }
 0x4bc   : > { %v2126_v10 = vpop.permute.xlu1 %2125  ;;  %v1654_v51 = vpop.permute.xlu2 %1653 }
 0x4bd   : > { %v2124_v22 = vpop.permute.xlu0 %2123  ;;  %v2166_v17 = vadd.f32 %v2126_v10, %v2006_v16  ;;  %v1690_v2 = vadd.f32 %v1654_v51, %v6724_v61 }
 0x4be   : > { %v2165_v42 = vadd.f32 %v2124_v22, %v2005_v3 }
 0x4c0   : > { %v2180_v9 = vpack.c.bf16 %v2166_v17, %v2165_v42 }
 0x4c2   : > { %4682 = vmatmul.msk.bf16.gmra.mxu0 %vm563_vm2, %v2180_v9 }
 0x4c4   : > { %v1808_v19 = vpop.permute.xlu1 %1807  ;;  %v1972_v37 = vpop.permute.xlu2 %1971 }
 0x4c5   : > { %v1650_v48 = vpop.permute.xlu0 %1649  ;;  %v1847_v40 = vadd.f32 %v1808_v19, %v1687_v20  ;;  %v1534_v19 = vmul.f32 %v6889_v8, %v6843_v7 }
 0x4c6   : > { %v1688_v12 = vadd.f32 %v1650_v48, %v1528_v47  ;;  %v1533_v48 = vmul.f32 %v6889_v8, %v6812_v6 }
 0x4c8   : > { %v1848_v49 = vadd.f32 %v1810_v25, %v1688_v12 }
 0x4cc   : > { %v1970_v0 = vpop.permute.xlu1 %1969  ;;  %v2134_v46 = vpop.permute.xlu2 %2133 }
 0x4cd   : > { %v1968_v31 = vpop.permute.xlu0 %1967  ;;  %v2008_v45 = vadd.f32 %v1970_v0, %v1848_v49 }
 0x4ce   : > { %v2007_v52 = vadd.f32 %v1968_v31, %v1847_v40 }
 0x4d0   : > { %v2167_v57 = vadd.f32 %v2128_v14, %v2007_v52 }
 0x4d4   : > { %v1652_v60 = vpop.permute.xlu1 %1651  ;;  %v1656_v4 = vpop.permute.xlu2 %1655 }
 0x4d5   : > { %v2130_v26 = vpop.permute.xlu0 %2129  ;;  %v1689_v34 = vadd.f32 %v1652_v60, %v6727_v33  ;;  %v1691_v13 = vadd.f32 %v1656_v4, %v6730_v35 }
 0x4d6   : > { %v2168_v18 = vadd.f32 %v2130_v26, %v2008_v45 }
 0x4d8   : > { %v2181_v28 = vpack.c.bf16 %v2168_v18, %v2167_v57 }
 0x4da   : > { %4683 = vmatmul.msk.bf16.gmra.mxu0 %vm563_vm2, %v2181_v28 }
 0x4dc   : > { %v1814_v11 = vpop.permute.xlu1 %1813  ;;  %v1816_v25 = vpop.permute.xlu2 %1815 }
 0x4dd   : > { %v1812_v30 = vpop.permute.xlu0 %1811  ;;  %v1850_v54 = vadd.f32 %v1814_v11, %v1690_v2  ;;  %v1851_v50 = vadd.f32 %v1816_v25, %v1691_v13 }
 0x4de   : > { %v1849_v32 = vadd.f32 %v1812_v30, %v1689_v34 }
 0x4e0   : > { %v2009_v38 = vadd.f32 %v1972_v37, %v1849_v32 }
 0x4e4   : > { %v2132_v62 = vpop.permute.xlu1 %2131  ;;  %v1978_v15 = vpop.permute.xlu2 %1977 }
 0x4e5   : > { %v1974_v24 = vpop.permute.xlu0 %1973  ;;  %v2169_v21 = vadd.f32 %v2132_v62, %v2009_v38 }
 0x4e6   : > { %v2010_v56 = vadd.f32 %v1974_v24, %v1850_v54 }
 0x4e8   : > { %v2170_v5 = vadd.f32 %v2134_v46, %v2010_v56 }
 0x4ea   : > { %v2182_v1 = vpack.c.bf16 %v2170_v5, %v2169_v21 }
 0x4ec   : > { %4684 = vmatmul.msk.bf16.gmra.mxu0 %vm563_vm2, %v2182_v1  ;;  %v1658_v58 = vpop.permute.xlu1 %1657  ;;  %v1662_v17 = vpop.permute.xlu2 %1661 }
 0x4ed   : > { %v1818_v33 = vpop.permute.xlu0 %1817  ;;  %v1692_v23 = vadd.f32 %v1658_v58, %v1532_v27  ;;  %v1694_v47 = vadd.f32 %v1662_v17, %v1534_v19  ;;  %v4703_v19 = vld [vmem:[#allocation6 + $0x20] sm:$0xf0] }
 0x4ef   : > { %v1852_v43 = vadd.f32 %v1818_v33, %v1692_v23 }
 0x4f1   : > { %v2012_v39 = vadd.f32 %v1978_v15, %v1852_v43 }
 0x4f4   : > { %v1980_v55 = vpop.permute.xlu2 %1979 }
 0x4f5   : > { %v1976_v61 = vpop.permute.xlu1 %1975  ;;  %v2136_v41 = vpop.permute.xlu0 %2135 }
 0x4f6   : > { %v2011_v53 = vadd.f32 %v1976_v61, %v1851_v50 }
 0x4f8   : > { %v2171_v3 = vadd.f32 %v2136_v41, %v2011_v53 }
 0x4fc   : > { %v2142_v45 = vpop.permute.xlu2 %2141 }
 0x4fd   : > { %v2138_v14 = vpop.permute.xlu1 %2137  ;;  %v1820_v42 = vpop.permute.xlu0 %1819 }
 0x4fe   : > { %v2172_v16 = vadd.f32 %v2138_v14, %v2012_v39 }
 0x4ff   : > { %v2225_v10 = vpop.f32.mrf.mxu0 }
 0x500   : > { %v2183_v22 = vpack.c.bf16 %v2172_v16, %v2171_v3  ;;  %v2226_v36 = vadd.f32 %v6951_v59, %v2225_v10  ;;  %v2396_v10 = vld [vmem:[#allocation6 + $0x28] sm:$0xff] }
 0x501   : > { %v2419_v17 = vunpack.c.h.b16 %v2396_v10 }
 0x502   : > { %4685 = vmatmul.msk.bf16.gmra.mxu0 %vm563_vm2, %v2183_v22  ;;  %v2265_v44 = vmax.f32 %v2226_v36, 0.0  ;;  %v2418_v22 = vunpack.c.l.b16 %v2396_v10 }
 0x504   : > { %v2422_v36 = vpack.c.b16 %v2418_v22, %v2418_v22 }
 0x505   : > { %v1660_v35 = vpop.permute.xlu1 %1659  ;;  %v1982_v40 = vpop.permute.xlu0 %1981 }
 0x506   : > { %v1693_v0 = vadd.f32 %v1660_v35, %v1533_v48  ;;  %v4701_v35 = vld [vmem:[#allocation6 + $0x18] sm:$0xf]  ;;  %v2451_v48 = vsel %vm830_vm5, %v2422_v36, 0 }
 0x507   : > { %v2227_v9 = vpop.f32.mrf.mxu0  ;;  %2462 = vmatpush.bf16.msra.mxu2 %v2451_v48 }
 0x508   : > { %v2228_v51 = vadd.f32 %v6951_v59, %v2227_v9  ;;  %v1853_v37 = vadd.f32 %v1820_v42, %v1693_v0  ;;  %v2423_v42 = vpack.c.b16 %v2419_v17, %v2419_v17  ;;  %v5324_v9 = vld [vmem:[#allocation6 + $0x1c] sm:$0xf0] }
 0x50a   : > { %v2266_v63 = vmax.f32 %v2228_v51, 0.0  ;;  %v2013_v52 = vadd.f32 %v1980_v55, %v1853_v37  ;;  %v5323_v51 = vld [vmem:[#allocation6 + $0x1c] sm:$0xf] }
 0x50b   : > { %v4706_v55 = vor.u32 %v5323_v51, %v4703_v19  ;;  %v5334_v19 = vld [vmem:[%s7439_s7 + $0x48] sm:$0xff] }
 0x50c   : > { %v2284_v31 = vpack.c.bf16 %v2266_v63, %v2265_v44  ;;  %v2454_v44 = vsel %vm830_vm5, %v2423_v42, 0  ;;  %v4702_v63 = vor.u32 %v5324_v9, %v4701_v35  ;;  %v5328_v42 = vld [vmem:[%s7439_s7 + $0x18] sm:$0xff] }
 0x50d   : > { %v1822_v20 = vpop.permute.xlu1 %1821  ;;  %2511 = vmatpush.bf16.msra.mxu3 %v2454_v44 }
 0x50e   : > { %v1854_v12 = vadd.f32 %v1822_v20, %v1694_v47  ;;  %4691 = vmatmul.msk.bf16.vlgmr.msra.gmra.mxu1 %vm679_vm4, %v2284_v31  ;;  %2463 = vmatpush.bf16.msra.mxu2 %v4702_v63 }
 0x510   : > { %v2014_v49 = vadd.f32 %v1982_v40, %v1854_v12 }
 0x511   : > { %2512 = vmatpush.bf16.msra.mxu3 %v4706_v55  ;;  %v5327_v55 = vld [vmem:[%s7439_s7 + $0x10] sm:$0xff] }
 0x512   : > { %v2174_v26 = vadd.f32 %v2142_v45, %v2014_v49 }
 0x515   : > { %v2140_v60 = vpop.permute.xlu1 %2139 }
 0x516   : > { %v2173_v7 = vadd.f32 %v2140_v60, %v2013_v52  ;;  %v6984_v52 = vld [vmem:[%s7443_s11 + $0x8] ss:$0 sm:$0xff] }
 0x517   : > { %v2230_v57 = vpop.f32.mrf.mxu0 }
 0x518   : > { %v2184_v6 = vpack.c.bf16 %v2174_v26, %v2173_v7  ;;  %v2231_v8 = vadd.f32 %v6951_v59, %v2230_v57 }
 0x51a   : > { %4686 = vmatmul.msk.bf16.gmra.mxu0 %vm563_vm2, %v2184_v6  ;;  %v2267_v46 = vmax.f32 %v2231_v8, 0.0  ;;  %vm4383_vm2 = vcmask 15360  }
 0x51f   : > { %v2232_v18 = vpop.f32.mrf.mxu0 }
 0x520   : > { %v2233_v28 = vadd.f32 %v6951_v59, %v2232_v18 }
 0x522   : > { %v2268_v11 = vmax.f32 %v2233_v28, 0.0 }
 0x524   : > { %v2285_v30 = vpack.c.bf16 %v2268_v11, %v2267_v46 }
 0x526   : > { %4692 = vmatmul.msk.bf16.gmra.mxu1 %vm679_vm4, %v2285_v30 }
 0x529   : > { %v2235_v34 = vpop.f32.mrf.mxu0 }
 0x52a   : > { %v2236_v2 = vadd.f32 %v6951_v59, %v2235_v34 }
 0x52c   : > { %v2269_v54 = vmax.f32 %v2236_v2, 0.0 }
 0x531   : > { %v2237_v32 = vpop.f32.mrf.mxu0 }
 0x532   : > { %v2238_v4 = vadd.f32 %v6951_v59, %v2237_v32 }
 0x534   : > { %v2270_v62 = vmax.f32 %v2238_v4, 0.0 }
 0x536   : > { %v2286_v24 = vpack.c.bf16 %v2270_v62, %v2269_v54 }
 0x538   : > { %4693 = vmatmul.msk.bf16.gmra.mxu1 %vm679_vm4, %v2286_v24 }
 0x53f   : > { %v2240_v38 = vpop.f32.mrf.mxu0 }
 0x540   : > { %v2241_v56 = vadd.f32 %v6951_v59, %v2240_v38  ;;  %v5332_v38 = vld [vmem:[%s7439_s7 + $0x38] sm:$0xff] }
 0x541   : > { %2694 = vmatpush.bf16.msrb.mxu0 %v5332_v38 }
 0x542   : > { %v2271_v1 = vmax.f32 %v2241_v56, 0.0 }
 0x547   : > { %v2242_v21 = vpop.f32.mrf.mxu0 }
 0x548   : > { %v2243_v5 = vadd.f32 %v6951_v59, %v2242_v21  ;;  %v5336_v21 = vld [vmem:[%s7439_s7 + $0x58] sm:$0xff] }
 0x549   : > { %2747 = vmatpush.bf16.msrb.mxu1 %v5336_v21 }
 0x54a   : > { %v2272_v25 = vmax.f32 %v2243_v5, 0.0  ;;  %v5331_v5 = vld [vmem:[%s7439_s7 + $0x30] sm:$0xff] }
 0x54b   : > { %2695 = vmatpush.bf16.msrb.mxu0 %v5331_v5 }
 0x54c   : > { %v2287_v58 = vpack.c.bf16 %v2272_v25, %v2271_v1 }
 0x54e   : > { %4694 = vmatmul.msk.bf16.gmra.mxu1 %vm679_vm4, %v2287_v58 }
 0x557   : > { %v2245_v27 = vpop.f32.mrf.mxu0 }
 0x558   : > { %v2246_v33 = vadd.f32 %v6951_v59, %v2245_v27 }
 0x55a   : > { %v2273_v13 = vmax.f32 %v2246_v33, 0.0 }
 0x55f   : > { %v2247_v23 = vpop.f32.mrf.mxu0 }
 0x560   : > { %v2248_v61 = vadd.f32 %v6951_v59, %v2247_v23 }
 0x562   : > { %v2274_v15 = vmax.f32 %v2248_v61, 0.0 }
 0x564   : > { %v2288_v50 = vpack.c.bf16 %v2274_v15, %v2273_v13  ;;  %v5330_v15 = vld [vmem:[%s7439_s7 + $0x28] sm:$0xff] }
 0x565   : > { %2696 = vmatpush.bf16.msrb.mxu0 %v5330_v15 }
 0x566   : > { %4695 = vmatmul.msk.bf16.gmra.mxu1 %vm679_vm4, %v2288_v50  ;;  %v5335_v50 = vld [vmem:[%s7439_s7 + $0x50] sm:$0xff] }
 0x567   : > { %2748 = vmatpush.bf16.msrb.mxu1 %v5335_v50 }
 0x569   : > { %v2250_v43 = vpop.f32.mrf.mxu0 }
 0x56a   : > { %v2251_v53 = vadd.f32 %v6951_v59, %v2250_v43 }
 0x56b   : > { %2749 = vmatpush.bf16.msrb.mxu1 %v5334_v19 }
 0x56c   : > { %v2275_v14 = vmax.f32 %v2251_v53, 0.0 }
 0x571   : > { %v2252_v39 = vpop.f32.mrf.mxu0 }
 0x572   : > { %v2253_v41 = vadd.f32 %v6951_v59, %v2252_v39 }
 0x574   : > { %v2276_v3 = vmax.f32 %v2253_v41, 0.0 }
 0x576   : > { %v2289_v16 = vpack.c.bf16 %v2276_v3, %v2275_v14  ;;  %v5329_v3 = vld [vmem:[%s7439_s7 + $0x20] sm:$0xff] }
 0x577   : > { %2697 = vmatpush.bf16.msrb.mxu0 %v5329_v3 }
 0x578   : > { %4696 = vmatmul.msk.bf16.gmra.mxu1 %vm679_vm4, %v2289_v16 }
 0x57b   : > { %2698 = vmatpush.bf16.msrb.mxu0 %v5328_v42 }
 0x57f   : > { %v2255_v47 = vpop.f32.mrf.mxu0  ;;  %2699 = vmatpush.bf16.msrb.mxu0 %v5327_v55 }
 0x580   : > { %v2256_v0 = vadd.f32 %v6951_v59, %v2255_v47 }
 0x582   : > { %v2277_v12 = vmax.f32 %v2256_v0, 0.0 }
 0x587   : > { %v2257_v31 = vpop.f32.mrf.mxu0 }
 0x588   : > { %v2258_v20 = vadd.f32 %v6951_v59, %v2257_v31 }
 0x58a   : > { %v2278_v37 = vmax.f32 %v2258_v20, 0.0  ;;  %v5326_v20 = vld [vmem:[%s7439_s7 + $0x8] sm:$0xff] }
 0x58b   : > { %v2337_v40 = vpop.f32.mrf.mxu1  ;;  %2700 = vmatpush.bf16.msrb.mxu0 %v5326_v20 }
 0x58c   : > { %v2290_v49 = vpack.c.bf16 %v2278_v37, %v2277_v12  ;;  %v2338_v45 = vadd.f32 %v6984_v52, %v2337_v40  ;;  %v5325_v12 = vld [vmem:[%s7439_s7] sm:$0xff] }
 0x58d   : > { %v5333_v37 = vld [vmem:[%s7439_s7 + $0x40] sm:$0xff] }
 0x58e   : > { %4697 = vmatmul.msk.bf16.gmra.mxu1 %vm679_vm4, %v2290_v49  ;;  %v2377_v26 = vmax.f32 %v2338_v45, 0.0 }
 0x58f   : > { %2750 = vmatpush.bf16.msrb.mxu1 %v5333_v37  ;;  %2701 = vmatpush.bf16.msrb.mxu0 %v5325_v12 }
 0x593   : > { %v2339_v60 = vpop.f32.mrf.mxu1 }
 0x594   : > { %v2340_v7 = vadd.f32 %v6984_v52, %v2339_v60 }
 0x596   : > { %v2378_v57 = vmax.f32 %v2340_v7, 0.0 }
 0x597   : > { %v2260_v6 = vpop.f32.mrf.mxu0 }
 0x598   : > { %v2397_v8 = vpack.c.bf16 %v2378_v57, %v2377_v26  ;;  %v2261_v18 = vadd.f32 %v6951_v59, %v2260_v6 }
 0x59a   : > { %4707 = vmatmul.msk.bf16.vlgmr.msra.gmra.mxu2 %vm805_vm6, %v2397_v8  ;;  %4715 = vmatmul.msk.bf16.vlgmr.msra.gmra.mxu3 %vm805_vm6, %v2397_v8  ;;  %v2279_v11 = vmax.f32 %v2261_v18, 0.0  ;;  %v2405_v18 = vld [vmem:[%s7443_s11 + $0x9] sm:$0x3] }
 0x59f   : > { %v2262_v28 = vpop.f32.mrf.mxu0 }
 0x5a0   : > { %v2263_v46 = vadd.f32 %v6951_v59, %v2262_v28  ;;  %v7057_v28 = vperm.slane %v2405_v18, 0 }
 0x5a2   : > { %v2280_v30 = vmax.f32 %v2263_v46, 0.0  ;;  %v7059_v46 = vperm.slane %v2405_v18, 1 }
 0x5a3   : > { %v2342_v34 = vpop.f32.mrf.mxu1 }
 0x5a4   : > { %v2291_v2 = vpack.c.bf16 %v2280_v30, %v2279_v11  ;;  %v2343_v32 = vadd.f32 %v6984_v52, %v2342_v34 }
 0x5a6   : > { %4698 = vmatmul.msk.bf16.gmra.mxu1 %vm679_vm4, %v2291_v2  ;;  %v2379_v62 = vmax.f32 %v2343_v32, 0.0 }
 0x5ab   : > { %v2344_v4 = vpop.f32.mrf.mxu1 }
 0x5ac   : > { %v2345_v54 = vadd.f32 %v6984_v52, %v2344_v4 }
 0x5ae   : > { %v2380_v24 = vmax.f32 %v2345_v54, 0.0 }
 0x5b0   : > { %v2398_v56 = vpack.c.bf16 %v2380_v24, %v2379_v62 }
 0x5b2   : > { %4708 = vmatmul.msk.bf16.gmra.mxu2 %vm805_vm6, %v2398_v56  ;;  %4716 = vmatmul.msk.bf16.gmra.mxu3 %vm805_vm6, %v2398_v56 }
 0x5b5   : > { %v2347_v59 = vpop.f32.mrf.mxu1 }
 0x5b6   : > { %v2348_v1 = vadd.f32 %v6984_v52, %v2347_v59 }
 0x5b8   : > { %v2381_v27 = vmax.f32 %v2348_v1, 0.0 }
 0x5bd   : > { %v2349_v25 = vpop.f32.mrf.mxu1 }
 0x5be   : > { %v2350_v58 = vadd.f32 %v6984_v52, %v2349_v25 }
 0x5c0   : > { %v2382_v33 = vmax.f32 %v2350_v58, 0.0 }
 0x5c2   : > { %v2399_v23 = vpack.c.bf16 %v2382_v33, %v2381_v27 }
 0x5c4   : > { %4709 = vmatmul.msk.bf16.gmra.mxu2 %vm805_vm6, %v2399_v23  ;;  %4717 = vmatmul.msk.bf16.gmra.mxu3 %vm805_vm6, %v2399_v23 }
 0x5cb   : > { %v2352_v61 = vpop.f32.mrf.mxu1 }
 0x5cc   : > { %v2353_v13 = vadd.f32 %v6984_v52, %v2352_v61 }
 0x5ce   : > { %v2383_v39 = vmax.f32 %v2353_v13, 0.0 }
 0x5d3   : > { %v2354_v43 = vpop.f32.mrf.mxu1 }
 0x5d4   : > { %v2355_v53 = vadd.f32 %v6984_v52, %v2354_v43 }
 0x5d6   : > { %v2384_v41 = vmax.f32 %v2355_v53, 0.0 }
 0x5d8   : > { %v2400_v14 = vpack.c.bf16 %v2384_v41, %v2383_v39 }
 0x5da   : > { %4710 = vmatmul.msk.bf16.gmra.mxu2 %vm805_vm6, %v2400_v14  ;;  %4718 = vmatmul.msk.bf16.gmra.mxu3 %vm805_vm6, %v2400_v14 }
 0x5e3   : > { %v2357_v16 = vpop.f32.mrf.mxu1 }
 0x5e4   : > { %v2358_v10 = vadd.f32 %v6984_v52, %v2357_v16 }
 0x5e6   : > { %v2385_v35 = vmax.f32 %v2358_v10, 0.0 }
 0x5eb   : > { %v2359_v22 = vpop.f32.mrf.mxu1 }
 0x5ec   : > { %v2360_v17 = vadd.f32 %v6984_v52, %v2359_v22 }
 0x5ee   : > { %v2386_v36 = vmax.f32 %v2360_v17, 0.0 }
 0x5f0   : > { %v2401_v9 = vpack.c.bf16 %v2386_v36, %v2385_v35 }
 0x5f2   : > { %4711 = vmatmul.msk.bf16.gmra.mxu2 %vm805_vm6, %v2401_v9  ;;  %4719 = vmatmul.msk.bf16.gmra.mxu3 %vm805_vm6, %v2401_v9 }
 0x5f5   : > { %v2362_v51 = vpop.f32.mrf.mxu1 }
 0x5f6   : > { %v2363_v48 = vadd.f32 %v6984_v52, %v2362_v51 }
 0x5f8   : > { %v2387_v47 = vmax.f32 %v2363_v48, 0.0 }
 0x5fd   : > { %v2364_v44 = vpop.f32.mrf.mxu1 }
 0x5fe   : > { %v2365_v63 = vadd.f32 %v6984_v52, %v2364_v44 }
 0x600   : > { %v2388_v0 = vmax.f32 %v2365_v63, 0.0 }
 0x602   : > { %v2402_v31 = vpack.c.bf16 %v2388_v0, %v2387_v47 }
 0x604   : > { %4712 = vmatmul.msk.bf16.gmra.mxu2 %vm805_vm6, %v2402_v31  ;;  %4720 = vmatmul.msk.bf16.gmra.mxu3 %vm805_vm6, %v2402_v31 }
 0x60b   : > { %v2367_v40 = vpop.f32.mrf.mxu1 }
 0x60c   : > { %v2368_v49 = vadd.f32 %v6984_v52, %v2367_v40 }
 0x60e   : > { %v2389_v7 = vmax.f32 %v2368_v49, 0.0 }
 0x613   : > { %v2369_v45 = vpop.f32.mrf.mxu1 }
 0x614   : > { %v2370_v60 = vadd.f32 %v6984_v52, %v2369_v45 }
 0x616   : > { %v2390_v26 = vmax.f32 %v2370_v60, 0.0 }
 0x618   : > { %v2403_v57 = vpack.c.bf16 %v2390_v26, %v2389_v7 }
 0x61a   : > { %4713 = vmatmul.msk.bf16.gmra.mxu2 %vm805_vm6, %v2403_v57  ;;  %4721 = vmatmul.msk.bf16.gmra.mxu3 %vm805_vm6, %v2403_v57 }
 0x61d   : > { %v2465_v6 = vpop.f32.mrf.mxu2  ;;  %v2514_v8 = vpop.f32.mrf.mxu3 }
 0x61e   : > { %v7062_v2 = vadd.f32 %v2465_v6, %v7057_v28  ;;  %v7065_v32 = vadd.f32 %v2514_v8, %v7059_v46 }
 0x623   : > { %v2372_v11 = vpop.f32.mrf.mxu1 }
 0x624   : > { %v2373_v38 = vadd.f32 %v6984_v52, %v2372_v11 }
 0x625   : > { %v2467_v30 = vpop.f32.mrf.mxu2  ;;  %v2516_v34 = vpop.f32.mrf.mxu3 }
 0x626   : > { %v7068_v4 = vadd.f32 %v2467_v30, %v7057_v28  ;;  %v7071_v54 = vadd.f32 %v2516_v34, %v7059_v46  ;;  %v2391_v21 = vmax.f32 %v2373_v38, 0.0 }
 0x628   : > { %v2578_v62 = vpack.c.bf16 %v7068_v4, %v7062_v2  ;;  %v2579_v24 = vpack.c.bf16 %v7071_v54, %v7065_v32 }
 0x62a   : > { %2702 = vmatmul.bf16.vlgmr.msrb.gmra.mxu0 %v2578_v62  ;;  %4771 = vmatmul.msk.bf16.vlgmr.msrb.gmra.mxu1 %vm974_vm7, %v2579_v24 }
 0x62b   : > { %v2374_v56 = vpop.f32.mrf.mxu1 }
 0x62c   : > { %v2375_v59 = vadd.f32 %v6984_v52, %v2374_v56 }
 0x62e   : > { %v2392_v5 = vmax.f32 %v2375_v59, 0.0 }
 0x630   : > { %v2404_v1 = vpack.c.bf16 %v2392_v5, %v2391_v21 }
 0x632   : > { %4714 = vmatmul.msk.bf16.gmra.mxu2 %vm805_vm6, %v2404_v1  ;;  %4722 = vmatmul.msk.bf16.gmra.mxu3 %vm805_vm6, %v2404_v1 }
 0x635   : > { %v2470_v25 = vpop.f32.mrf.mxu2  ;;  %v2519_v58 = vpop.f32.mrf.mxu3 }
 0x636   : > { %v7083_v23 = vadd.f32 %v2470_v25, %v7057_v28  ;;  %v7086_v61 = vadd.f32 %v2519_v58, %v7059_v46 }
 0x63d   : > { %v2472_v27 = vpop.f32.mrf.mxu2  ;;  %v2521_v33 = vpop.f32.mrf.mxu3 }
 0x63e   : > { %v7089_v13 = vadd.f32 %v2472_v27, %v7057_v28  ;;  %v7092_v52 = vadd.f32 %v2521_v33, %v7059_v46 }
 0x640   : > { %v2580_v15 = vpack.c.bf16 %v7089_v13, %v7083_v23  ;;  %v2581_v50 = vpack.c.bf16 %v7092_v52, %v7086_v61 }
 0x642   : > { %2707 = vmatmul.bf16.gmra.mxu0 %v2580_v15  ;;  %4772 = vmatmul.msk.bf16.gmra.mxu1 %vm974_vm7, %v2581_v50  ;;  %v7186_v50 = vld [vmem:[%s7443_s11 + $0xb] ss:$0 sm:$0xff] }
 0x647   : > { %v2475_v43 = vpop.f32.mrf.mxu2  ;;  %v2524_v53 = vpop.f32.mrf.mxu3 }
 0x648   : > { %v7100_v14 = vadd.f32 %v2475_v43, %v7057_v28  ;;  %v7103_v3 = vadd.f32 %v2524_v53, %v7059_v46 }
 0x64f   : > { %v2477_v39 = vpop.f32.mrf.mxu2  ;;  %v2526_v41 = vpop.f32.mrf.mxu3 }
 0x650   : > { %v7106_v16 = vadd.f32 %v2477_v39, %v7057_v28  ;;  %v7109_v10 = vadd.f32 %v2526_v41, %v7059_v46 }
 0x652   : > { %v2582_v22 = vpack.c.bf16 %v7106_v16, %v7100_v14  ;;  %v2583_v17 = vpack.c.bf16 %v7109_v10, %v7103_v3 }
 0x654   : > { %2712 = vmatmul.bf16.gmra.mxu0 %v2582_v22  ;;  %4773 = vmatmul.msk.bf16.gmra.mxu1 %vm974_vm7, %v2583_v17 }
 0x65d   : > { %v2480_v35 = vpop.f32.mrf.mxu2  ;;  %v2529_v36 = vpop.f32.mrf.mxu3 }
 0x65e   : > { %v7117_v51 = vadd.f32 %v2480_v35, %v7057_v28  ;;  %v7120_v19 = vadd.f32 %v2529_v36, %v7059_v46 }
 0x665   : > { %v2482_v42 = vpop.f32.mrf.mxu2  ;;  %v2531_v9 = vpop.f32.mrf.mxu3 }
 0x666   : > { %v7123_v48 = vadd.f32 %v2482_v42, %v7057_v28  ;;  %v7126_v44 = vadd.f32 %v2531_v9, %v7059_v46 }
 0x668   : > { %v2584_v63 = vpack.c.bf16 %v7123_v48, %v7117_v51  ;;  %v2585_v55 = vpack.c.bf16 %v7126_v44, %v7120_v19 }
 0x66a   : > { %2717 = vmatmul.bf16.gmra.mxu0 %v2584_v63  ;;  %4774 = vmatmul.msk.bf16.gmra.mxu1 %vm974_vm7, %v2585_v55 }
 0x675   : > { %v2485_v47 = vpop.f32.mrf.mxu2  ;;  %v2534_v0 = vpop.f32.mrf.mxu3 }
 0x676   : > { %v7134_v12 = vadd.f32 %v2485_v47, %v7057_v28  ;;  %v7137_v37 = vadd.f32 %v2534_v0, %v7059_v46 }
 0x67d   : > { %v2487_v31 = vpop.f32.mrf.mxu2  ;;  %v2536_v20 = vpop.f32.mrf.mxu3 }
 0x67e   : > { %v7140_v40 = vadd.f32 %v2487_v31, %v7057_v28  ;;  %v7143_v49 = vadd.f32 %v2536_v20, %v7059_v46 }
 0x680   : > { %v2586_v45 = vpack.c.bf16 %v7140_v40, %v7134_v12  ;;  %v2587_v60 = vpack.c.bf16 %v7143_v49, %v7137_v37 }
 0x682   : > { %2722 = vmatmul.bf16.gmra.mxu0 %v2586_v45  ;;  %4775 = vmatmul.msk.bf16.gmra.mxu1 %vm974_vm7, %v2587_v60 }
 0x687   : > { %v2490_v7 = vpop.f32.mrf.mxu2  ;;  %v2539_v26 = vpop.f32.mrf.mxu3 }
 0x688   : > { %v7151_v8 = vadd.f32 %v2490_v7, %v7057_v28  ;;  %v7154_v18 = vadd.f32 %v2539_v26, %v7059_v46 }
 0x68f   : > { %v2492_v57 = vpop.f32.mrf.mxu2  ;;  %v2541_v6 = vpop.f32.mrf.mxu3 }
 0x690   : > { %v7157_v11 = vadd.f32 %v2492_v57, %v7057_v28  ;;  %v7160_v30 = vadd.f32 %v2541_v6, %v7059_v46 }
 0x692   : > { %v2588_v34 = vpack.c.bf16 %v7157_v11, %v7151_v8  ;;  %v2589_v62 = vpack.c.bf16 %v7160_v30, %v7154_v18 }
 0x694   : > { %2727 = vmatmul.bf16.gmra.mxu0 %v2588_v34  ;;  %4776 = vmatmul.msk.bf16.gmra.mxu1 %vm974_vm7, %v2589_v62 }
 0x69d   : > { %v2495_v24 = vpop.f32.mrf.mxu2  ;;  %v2544_v38 = vpop.f32.mrf.mxu3 }
 0x69e   : > { %v7168_v21 = vadd.f32 %v2495_v24, %v7057_v28  ;;  %v7171_v5 = vadd.f32 %v2544_v38, %v7059_v46 }
 0x6a5   : > { %v2497_v56 = vpop.f32.mrf.mxu2  ;;  %v2546_v59 = vpop.f32.mrf.mxu3 }
 0x6a6   : > { %v7174_v1 = vadd.f32 %v2497_v56, %v7057_v28  ;;  %v7177_v25 = vadd.f32 %v2546_v59, %v7059_v46 }
 0x6a7   : > { %v2703_v58 = vpop.f32.mrf.mxu0  ;;  %v2752_v27 = vpop.f32.mrf.mxu1 }
 0x6a8   : > { %v2590_v33 = vpack.c.bf16 %v7174_v1, %v7168_v21  ;;  %v2591_v15 = vpack.c.bf16 %v7177_v25, %v7171_v5  ;;  %v2704_v43 = vadd.f32 %v7186_v50, %v2703_v58 }
 0x6aa   : > { %2732 = vmatmul.bf16.gmra.mxu0 %v2590_v33  ;;  %4777 = vmatmul.msk.bf16.gmra.mxu1 %vm974_vm7, %v2591_v15  ;;  %v2753_v39 = vadd.f32 %v2752_v27, %v2704_v43 }
 0x6ac   : > { %v2793_v35 = vsel %vm2792_vm1, %v2753_v39, -inf }
 0x6af   : > { %v2705_v53 = vpop.f32.mrf.mxu0  ;;  %v2754_v22 = vpop.f32.mrf.mxu1 }
 0x6b0   : > { %v2706_v41 = vadd.f32 %v7186_v50, %v2705_v53 }
 0x6b2   : > { %v2755_v17 = vadd.f32 %v2754_v22, %v2706_v41 }
 0x6b4   : > { %v2794_v36 = vsel %vm2792_vm1, %v2755_v17, -inf }
 0x6b5   : > { %v2795_v42 = vmax.f32 %v2793_v35, %v2794_v36  ;;  %v2500_v9 = vpop.f32.mrf.mxu2  ;;  %v2549_v63 = vpop.f32.mrf.mxu3 }
 0x6b6   : > { %v7194_v60 = vadd.f32 %v2500_v9, %v7057_v28  ;;  %v7197_v7 = vadd.f32 %v2549_v63, %v7059_v46 }
 0x6b7   : > { %v2796_v55 = vrot.slane %v2795_v42, 4 }
 0x6b9   : > { %v2797_v47 = vmax.f32 %v2795_v42, %v2796_v55 }
 0x6bb   : > { %v2798_v0 = vrot.slane %v2797_v47, 2 }
 0x6bd   : > { %v2799_v31 = vmax.f32 %v2797_v47, %v2798_v0  ;;  %v2502_v20 = vpop.f32.mrf.mxu2  ;;  %v2551_v45 = vpop.f32.mrf.mxu3 }
 0x6be   : > { %v7200_v26 = vadd.f32 %v2502_v20, %v7057_v28  ;;  %v7203_v57 = vadd.f32 %v2551_v45, %v7059_v46 }
 0x6bf   : > { %v2800_v6 = vrot.slane %v2799_v31, 1  ;;  %v2708_v34 = vpop.f32.mrf.mxu0  ;;  %v2757_v62 = vpop.f32.mrf.mxu1 }
 0x6c0   : > { %v2592_v24 = vpack.c.bf16 %v7200_v26, %v7194_v60  ;;  %v2593_v38 = vpack.c.bf16 %v7203_v57, %v7197_v7  ;;  %v2709_v28 = vadd.f32 %v7186_v50, %v2708_v34 }
 0x6c1   : > { %v2801_v56 = vmax.f32 %v2799_v31, %v2800_v6 }
 0x6c2   : > { %2737 = vmatmul.bf16.gmra.mxu0 %v2592_v24  ;;  %4778 = vmatmul.msk.bf16.gmra.mxu1 %vm974_vm7, %v2593_v38  ;;  %v2758_v15 = vadd.f32 %v2757_v62, %v2709_v28 }
 0x6c3   : > { %v2865_v59 = vsub.f32 %v2753_v39, %v2801_v56  ;;  %v2866_v58 = vsub.f32 %v2755_v17, %v2801_v56 }
 0x6c4   : > { %v2802_v22 = vsel %vm2792_vm1, %v2758_v15, -inf }
 0x6c5   : > { %v2881_v27 = vmul.f32 1.442695, %v2865_v59  ;;  %v2883_v46 = vmul.f32 1.442695, %v2866_v58 }
 0x6c7   : > { %5634 = vpow2.f32 %v2881_v27  ;;  %v2710_v33 = vpop.f32.mrf.mxu0  ;;  %v2759_v53 = vpop.f32.mrf.mxu1 }
 0x6c8   : > { %5636 = vpow2.f32 %v2883_v46  ;;  %v2711_v43 = vadd.f32 %v7186_v50, %v2710_v33 }
 0x6ca   : > { %v2760_v41 = vadd.f32 %v2759_v53, %v2711_v43 }
 0x6cc   : > { %v2803_v35 = vsel %vm2792_vm1, %v2760_v41, -inf }
 0x6cd   : > { %v5635_v36 = vpop.eup %5634  ;;  %v2804_v42 = vmax.f32 %v2802_v22, %v2803_v35 }
 0x6ce   : > { %v5637_v39 = vpop.eup %5636  ;;  %v2913_v17 = vsel %vm2792_vm1, %v5635_v36, 0.0 }
 0x6cf   : > { %v2914_v9 = vsel %vm2792_vm1, %v5637_v39, 0.0  ;;  %v2805_v63 = vrot.slane %v2804_v42, 4 }
 0x6d0   : > { %v2915_v55 = vadd.f32 %v2914_v9, %v2913_v17 }
 0x6d1   : > { %v2806_v47 = vmax.f32 %v2804_v42, %v2805_v63  ;;  %v2713_v0 = vpop.f32.mrf.mxu0  ;;  %v2762_v31 = vpop.f32.mrf.mxu1 }
 0x6d2   : > { %v2916_v20 = vrot.slane %v2915_v55, 4  ;;  %v2714_v24 = vadd.f32 %v7186_v50, %v2713_v0 }
 0x6d3   : > { %v2807_v45 = vrot.slane %v2806_v47, 2 }
 0x6d4   : > { %v2917_v6 = vadd.f32 %v2916_v20, %v2915_v55  ;;  %v2763_v28 = vadd.f32 %v2762_v31, %v2714_v24 }
 0x6d5   : > { %v2808_v34 = vmax.f32 %v2806_v47, %v2807_v45 }
 0x6d6   : > { %v2918_v62 = vrot.slane %v2917_v6, 2  ;;  %v2811_v9 = vsel %vm2792_vm1, %v2763_v28, -inf }
 0x6d7   : > { %v2809_v38 = vrot.slane %v2808_v34, 1 }
 0x6d8   : > { %v2919_v56 = vadd.f32 %v2918_v62, %v2917_v6 }
 0x6d9   : > { %v2810_v59 = vmax.f32 %v2808_v34, %v2809_v38  ;;  %v2715_v58 = vpop.f32.mrf.mxu0  ;;  %v2764_v53 = vpop.f32.mrf.mxu1 }
 0x6da   : > { %v2716_v27 = vadd.f32 %v7186_v50, %v2715_v58  ;;  %v2920_v46 = vrot.slane %v2919_v56, 1 }
 0x6db   : > { %v2867_v33 = vsub.f32 %v2758_v15, %v2810_v59  ;;  %v2868_v43 = vsub.f32 %v2760_v41, %v2810_v59 }
 0x6dc   : > { %v2765_v22 = vadd.f32 %v2764_v53, %v2716_v27  ;;  %v2921_v35 = vadd.f32 %v2920_v46, %v2919_v56 }
 0x6dd   : > { %v2885_v42 = vmul.f32 1.442695, %v2867_v33  ;;  %v2887_v17 = vmul.f32 1.442695, %v2868_v43 }
 0x6de   : > { %v2812_v63 = vsel %vm2792_vm1, %v2765_v22, -inf  ;;  %5638 = vrcp.f32 %v2921_v35 }
 0x6df   : > { %5640 = vpow2.f32 %v2885_v42  ;;  %v2813_v55 = vmax.f32 %v2811_v9, %v2812_v63 }
 0x6e0   : > { %5642 = vpow2.f32 %v2887_v17 }
 0x6e1   : > { %v2814_v47 = vrot.slane %v2813_v55, 4 }
 0x6e3   : > { %v2815_v0 = vmax.f32 %v2813_v55, %v2814_v47 }
 0x6e4   : > { %v5639_v31 = vpop.eup %5638 }
 0x6e5   : > { %v5641_v20 = vpop.eup %5640  ;;  %v2816_v45 = vrot.slane %v2815_v0, 2  ;;  %v2994_v15 = vmul.f32 %v5639_v31, %v5637_v39  ;;  %v2993_v41 = vmul.f32 %v5639_v31, %v5635_v36 }
 0x6e6   : > { %v5643_v6 = vpop.eup %5642  ;;  %v2922_v34 = vsel %vm2792_vm1, %v5641_v20, 0.0 }
 0x6e7   : > { %v2923_v62 = vsel %vm2792_vm1, %v5643_v6, 0.0  ;;  %v2817_v24 = vmax.f32 %v2815_v0, %v2816_v45  ;;  %3016 = vperm.xlu1 %5622, %v2994_v15   ;;  %3011 = vperm.xlu0 %5624, %v2993_v41   ;;  %v2718_v38 = vpop.f32.mrf.mxu0  ;;  %v2767_v56 = vpop.f32.mrf.mxu1 }
 0x6e8   : > { %v2924_v59 = vadd.f32 %v2923_v62, %v2922_v34  ;;  %v2719_v43 = vadd.f32 %v7186_v50, %v2718_v38 }
 0x6e9   : > { %v2818_v58 = vrot.slane %v2817_v24, 1 }
 0x6ea   : > { %v2925_v27 = vrot.slane %v2924_v59, 4  ;;  %v2768_v9 = vadd.f32 %v2767_v56, %v2719_v43 }
 0x6eb   : > { %v2819_v46 = vmax.f32 %v2817_v24, %v2818_v58 }
 0x6ec   : > { %v2926_v33 = vadd.f32 %v2925_v27, %v2924_v59  ;;  %v2820_v45 = vsel %vm2792_vm1, %v2768_v9, -inf }
 0x6ed   : > { %v2869_v53 = vsub.f32 %v2763_v28, %v2819_v46  ;;  %v2870_v39 = vsub.f32 %v2765_v22, %v2819_v46 }
 0x6ee   : > { %v2927_v36 = vrot.slane %v2926_v33, 2 }
 0x6ef   : > { %v2889_v35 = vmul.f32 1.442695, %v2869_v53  ;;  %v2891_v42 = vmul.f32 1.442695, %v2870_v39  ;;  %v2720_v17 = vpop.f32.mrf.mxu0  ;;  %v2769_v47 = vpop.f32.mrf.mxu1 }
 0x6f0   : > { %v2721_v63 = vadd.f32 %v7186_v50, %v2720_v17  ;;  %v2928_v55 = vadd.f32 %v2927_v36, %v2926_v33 }
 0x6f1   : > { %5644 = vpow2.f32 %v2889_v35 }
 0x6f2   : > { %5646 = vpow2.f32 %v2891_v42  ;;  %v2770_v0 = vadd.f32 %v2769_v47, %v2721_v63  ;;  %v2929_v31 = vrot.slane %v2928_v55, 1 }
 0x6f4   : > { %v2821_v15 = vsel %vm2792_vm1, %v2770_v0, -inf  ;;  %v2930_v41 = vadd.f32 %v2929_v31, %v2928_v55 }
 0x6f5   : > { %v2822_v28 = vmax.f32 %v2820_v45, %v2821_v15 }
 0x6f6   : > { %5648 = vrcp.f32 %v2930_v41 }
 0x6f7   : > { %v5645_v22 = vpop.eup %5644  ;;  %v2823_v34 = vrot.slane %v2822_v28, 4 }
 0x6f8   : > { %v5647_v62 = vpop.eup %5646  ;;  %v2931_v24 = vsel %vm2792_vm1, %v5645_v22, 0.0 }
 0x6f9   : > { %v2932_v38 = vsel %vm2792_vm1, %v5647_v62, 0.0  ;;  %v2824_v56 = vmax.f32 %v2822_v28, %v2823_v34 }
 0x6fa   : > { %v2933_v59 = vadd.f32 %v2932_v38, %v2931_v24 }
 0x6fb   : > { %v2825_v58 = vrot.slane %v2824_v56, 2 }
 0x6fc   : > { %v5649_v27 = vpop.eup %5648  ;;  %v2934_v46 = vrot.slane %v2933_v59, 4 }
 0x6fd   : > { %v2826_v33 = vmax.f32 %v2824_v56, %v2825_v58  ;;  %v2996_v43 = vmul.f32 %v5649_v27, %v5643_v6  ;;  %v2995_v53 = vmul.f32 %v5649_v27, %v5641_v20 }
 0x6fe   : > { %v2935_v39 = vadd.f32 %v2934_v46, %v2933_v59 }
 0x6ff   : > { %v2827_v36 = vrot.slane %v2826_v33, 1  ;;  %3026 = vperm.xlu0 %5624, %v2996_v43   ;;  %3021 = vperm.xlu2 %5623, %v2995_v53   ;;  %v2723_v35 = vpop.f32.mrf.mxu0  ;;  %v2772_v42 = vpop.f32.mrf.mxu1 }
 0x700   : > { %v2936_v17 = vrot.slane %v2935_v39, 2  ;;  %v2724_v45 = vadd.f32 %v7186_v50, %v2723_v35 }
 0x701   : > { %v2828_v63 = vmax.f32 %v2826_v33, %v2827_v36 }
 0x702   : > { %v2937_v55 = vadd.f32 %v2936_v17, %v2935_v39  ;;  %v2773_v20 = vadd.f32 %v2772_v42, %v2724_v45 }
 0x703   : > { %v2871_v47 = vsub.f32 %v2768_v9, %v2828_v63  ;;  %v2872_v31 = vsub.f32 %v2770_v0, %v2828_v63 }
 0x704   : > { %v2938_v15 = vrot.slane %v2937_v55, 1  ;;  %v2829_v59 = vsel %vm2792_vm1, %v2773_v20, -inf }
 0x705   : > { %v2893_v41 = vmul.f32 1.442695, %v2871_v47  ;;  %v2895_v28 = vmul.f32 1.442695, %v2872_v31 }
 0x706   : > { %v2939_v34 = vadd.f32 %v2938_v15, %v2937_v55 }
 0x707   : > { %5650 = vpow2.f32 %v2893_v41  ;;  %v2725_v6 = vpop.f32.mrf.mxu0  ;;  %v2774_v38 = vpop.f32.mrf.mxu1 }
 0x708   : > { %5652 = vpow2.f32 %v2895_v28  ;;  %v2726_v24 = vadd.f32 %v7186_v50, %v2725_v6 }
 0x709   : > { %5654 = vrcp.f32 %v2939_v34 }
 0x70a   : > { %v2775_v56 = vadd.f32 %v2774_v38, %v2726_v24 }
 0x70c   : > { %v2830_v9 = vsel %vm2792_vm1, %v2775_v56, -inf }
 0x70d   : > { %v5651_v0 = vpop.eup %5650  ;;  %v2831_v58 = vmax.f32 %v2829_v59, %v2830_v9 }
 0x70e   : > { %v5653_v27 = vpop.eup %5652  ;;  %v2940_v46 = vsel %vm2792_vm1, %v5651_v0, 0.0 }
 0x70f   : > { %v5655_v33 = vpop.eup %5654  ;;  %v2941_v43 = vsel %vm2792_vm1, %v5653_v27, 0.0  ;;  %v2832_v53 = vrot.slane %v2831_v58, 4 }
 0x710   : > { %v2942_v39 = vadd.f32 %v2941_v43, %v2940_v46  ;;  %v2997_v36 = vmul.f32 %v5655_v33, %v5645_v22  ;;  %v2998_v35 = vmul.f32 %v5655_v33, %v5647_v62 }
 0x711   : > { %v2833_v42 = vmax.f32 %v2831_v58, %v2832_v53  ;;  %v2728_v17 = vpop.f32.mrf.mxu0  ;;  %v2777_v63 = vpop.f32.mrf.mxu1 }
 0x712   : > { %v2943_v55 = vrot.slane %v2942_v39, 4  ;;  %3031 = vperm.xlu1 %5622, %v2997_v36   ;;  %3036 = vperm.xlu2 %5623, %v2998_v35   ;;  %v2729_v41 = vadd.f32 %v7186_v50, %v2728_v17 }
 0x713   : > { %v2834_v47 = vrot.slane %v2833_v42, 2 }
 0x714   : > { %v2944_v31 = vadd.f32 %v2943_v55, %v2942_v39  ;;  %v2778_v38 = vadd.f32 %v2777_v63, %v2729_v41 }
 0x715   : > { %v2835_v45 = vmax.f32 %v2833_v42, %v2834_v47 }
 0x716   : > { %v2945_v15 = vrot.slane %v2944_v31, 2  ;;  %v2838_v39 = vsel %vm2792_vm1, %v2778_v38, -inf }
 0x717   : > { %v2836_v28 = vrot.slane %v2835_v45, 1 }
 0x718   : > { %v2946_v34 = vadd.f32 %v2945_v15, %v2944_v31 }
 0x719   : > { %v2837_v6 = vmax.f32 %v2835_v45, %v2836_v28  ;;  %v2730_v24 = vpop.f32.mrf.mxu0  ;;  %v2779_v58 = vpop.f32.mrf.mxu1 }
 0x71a   : > { %v2731_v22 = vadd.f32 %v7186_v50, %v2730_v24  ;;  %v2947_v62 = vrot.slane %v2946_v34, 1 }
 0x71b   : > { %v2873_v59 = vsub.f32 %v2773_v20, %v2837_v6  ;;  %v2874_v9 = vsub.f32 %v2775_v56, %v2837_v6 }
 0x71c   : > { %v2780_v46 = vadd.f32 %v2779_v58, %v2731_v22  ;;  %v2948_v33 = vadd.f32 %v2947_v62, %v2946_v34 }
 0x71d   : > { %v2897_v43 = vmul.f32 1.442695, %v2873_v59  ;;  %v2899_v53 = vmul.f32 1.442695, %v2874_v9 }
 0x71e   : > { %v2839_v36 = vsel %vm2792_vm1, %v2780_v46, -inf  ;;  %5656 = vrcp.f32 %v2948_v33 }
 0x71f   : > { %5658 = vpow2.f32 %v2897_v43  ;;  %v2840_v35 = vmax.f32 %v2838_v39, %v2839_v36 }
 0x720   : > { %5660 = vpow2.f32 %v2899_v53 }
 0x721   : > { %v2841_v42 = vrot.slane %v2840_v35, 4 }
 0x723   : > { %v2842_v17 = vmax.f32 %v2840_v35, %v2841_v42 }
 0x724   : > { %v5657_v63 = vpop.eup %5656 }
 0x725   : > { %v5659_v55 = vpop.eup %5658  ;;  %v2843_v47 = vrot.slane %v2842_v17, 2  ;;  %v3000_v20 = vmul.f32 %v5657_v63, %v5653_v27  ;;  %v2999_v56 = vmul.f32 %v5657_v63, %v5651_v0 }
 0x726   : > { %v5661_v31 = vpop.eup %5660  ;;  %v2949_v45 = vsel %vm2792_vm1, %v5659_v55, 0.0 }
 0x727   : > { %v2950_v15 = vsel %vm2792_vm1, %v5661_v31, 0.0  ;;  %v2844_v41 = vmax.f32 %v2842_v17, %v2843_v47  ;;  %3046 = vperm.xlu1 %5622, %v3000_v20   ;;  %3041 = vperm.xlu0 %5624, %v2999_v56   ;;  %v2733_v28 = vpop.f32.mrf.mxu0  ;;  %v2782_v34 = vpop.f32.mrf.mxu1 }
 0x728   : > { %v2951_v6 = vadd.f32 %v2950_v15, %v2949_v45  ;;  %v2734_v9 = vadd.f32 %v7186_v50, %v2733_v28 }
 0x729   : > { %v2845_v24 = vrot.slane %v2844_v41, 1 }
 0x72a   : > { %v2952_v22 = vrot.slane %v2951_v6, 4  ;;  %v2783_v39 = vadd.f32 %v2782_v34, %v2734_v9 }
 0x72b   : > { %v2846_v62 = vmax.f32 %v2844_v41, %v2845_v24 }
 0x72c   : > { %v2953_v59 = vadd.f32 %v2952_v22, %v2951_v6  ;;  %v2847_v47 = vsel %vm2792_vm1, %v2783_v39, -inf }
 0x72d   : > { %v2875_v58 = vsub.f32 %v2778_v38, %v2846_v62  ;;  %v2876_v27 = vsub.f32 %v2780_v46, %v2846_v62 }
 0x72e   : > { %v2954_v0 = vrot.slane %v2953_v59, 2 }
 0x72f   : > { %v2901_v33 = vmul.f32 1.442695, %v2875_v58  ;;  %v2903_v43 = vmul.f32 1.442695, %v2876_v27  ;;  %v2735_v53 = vpop.f32.mrf.mxu0  ;;  %v2784_v42 = vpop.f32.mrf.mxu1 }
 0x730   : > { %v2736_v36 = vadd.f32 %v7186_v50, %v2735_v53  ;;  %v2955_v35 = vadd.f32 %v2954_v0, %v2953_v59 }
 0x731   : > { %5662 = vpow2.f32 %v2901_v33 }
 0x732   : > { %5664 = vpow2.f32 %v2903_v43  ;;  %v2785_v17 = vadd.f32 %v2784_v42, %v2736_v36  ;;  %v2956_v63 = vrot.slane %v2955_v35, 1 }
 0x734   : > { %v2848_v20 = vsel %vm2792_vm1, %v2785_v17, -inf  ;;  %v2957_v56 = vadd.f32 %v2956_v63, %v2955_v35 }
 0x735   : > { %v2849_v38 = vmax.f32 %v2847_v47, %v2848_v20 }
 0x736   : > { %5666 = vrcp.f32 %v2957_v56 }
 0x737   : > { %v5663_v46 = vpop.eup %5662  ;;  %v2850_v45 = vrot.slane %v2849_v38, 4 }
 0x738   : > { %v5665_v15 = vpop.eup %5664  ;;  %v2958_v41 = vsel %vm2792_vm1, %v5663_v46, 0.0 }
 0x739   : > { %v2959_v28 = vsel %vm2792_vm1, %v5665_v15, 0.0  ;;  %v2851_v34 = vmax.f32 %v2849_v38, %v2850_v45 }
 0x73a   : > { %v2960_v6 = vadd.f32 %v2959_v28, %v2958_v41 }
 0x73b   : > { %v2852_v24 = vrot.slane %v2851_v34, 2 }
 0x73c   : > { %v5667_v22 = vpop.eup %5666  ;;  %v2961_v62 = vrot.slane %v2960_v6, 4 }
 0x73d   : > { %v2853_v59 = vmax.f32 %v2851_v34, %v2852_v24  ;;  %v3002_v9 = vmul.f32 %v5667_v22, %v5661_v31  ;;  %v3001_v58 = vmul.f32 %v5667_v22, %v5659_v55 }
 0x73e   : > { %v2962_v27 = vadd.f32 %v2961_v62, %v2960_v6 }
 0x73f   : > { %v2854_v0 = vrot.slane %v2853_v59, 1  ;;  %3056 = vperm.xlu0 %5624, %v3002_v9   ;;  %3051 = vperm.xlu2 %5623, %v3001_v58   ;;  %v2738_v33 = vpop.f32.mrf.mxu0  ;;  %v2787_v43 = vpop.f32.mrf.mxu1 }
 0x740   : > { %v2963_v53 = vrot.slane %v2962_v27, 2  ;;  %v2739_v47 = vadd.f32 %v7186_v50, %v2738_v33 }
 0x741   : > { %v2855_v36 = vmax.f32 %v2853_v59, %v2854_v0 }
 0x742   : > { %v2964_v35 = vadd.f32 %v2963_v53, %v2962_v27  ;;  %v2788_v55 = vadd.f32 %v2787_v43, %v2739_v47 }
 0x743   : > { %v2877_v42 = vsub.f32 %v2783_v39, %v2855_v36  ;;  %v2878_v63 = vsub.f32 %v2785_v17, %v2855_v36 }
 0x744   : > { %v2965_v20 = vrot.slane %v2964_v35, 1  ;;  %v2856_v6 = vsel %vm2792_vm1, %v2788_v55, -inf }
 0x745   : > { %v2905_v56 = vmul.f32 1.442695, %v2877_v42  ;;  %v2907_v38 = vmul.f32 1.442695, %v2878_v63 }
 0x746   : > { %v2966_v45 = vadd.f32 %v2965_v20, %v2964_v35 }
 0x747   : > { %5668 = vpow2.f32 %v2905_v56  ;;  %v2740_v31 = vpop.f32.mrf.mxu0  ;;  %v2789_v28 = vpop.f32.mrf.mxu1 }
 0x748   : > { %5670 = vpow2.f32 %v2907_v38  ;;  %v2741_v41 = vadd.f32 %v7186_v50, %v2740_v31 }
 0x749   : > { %5672 = vrcp.f32 %v2966_v45 }
 0x74a   : > { %v2790_v34 = vadd.f32 %v2789_v28, %v2741_v41 }
 0x74c   : > { %v2857_v39 = vsel %vm2792_vm1, %v2790_v34, -inf }
 0x74d   : > { %v5669_v17 = vpop.eup %5668  ;;  %v2858_v24 = vmax.f32 %v2856_v6, %v2857_v39 }
 0x74e   : > { %v5671_v22 = vpop.eup %5670  ;;  %v2967_v62 = vsel %vm2792_vm1, %v5669_v17, 0.0 }
 0x74f   : > { %v5673_v59 = vpop.eup %5672  ;;  %v2968_v9 = vsel %vm2792_vm1, %v5671_v22, 0.0  ;;  %v2859_v58 = vrot.slane %v2858_v24, 4 }
 0x750   : > { %v2969_v27 = vadd.f32 %v2968_v9, %v2967_v62  ;;  %v3003_v0 = vmul.f32 %v5673_v59, %v5663_v46  ;;  %v3004_v33 = vmul.f32 %v5673_v59, %v5665_v15 }
 0x751   : > { %v2860_v50 = vmax.f32 %v2858_v24, %v2859_v58 }
 0x752   : > { %v2970_v43 = vrot.slane %v2969_v27, 4  ;;  %3061 = vperm.xlu1 %5622, %v3003_v0   ;;  %3066 = vperm.xlu2 %5623, %v3004_v33  }
 0x753   : > { %v2861_v53 = vrot.slane %v2860_v50, 2 }
 0x754   : > { %v2971_v36 = vadd.f32 %v2970_v43, %v2969_v27  ;;  %v5367_v43 = vld [vmem:[#allocation10 + $0xec] sm:$0xf0] }
 0x755   : > { %v2862_v35 = vmax.f32 %v2860_v50, %v2861_v53  ;;  %v4893_v50 = vld [vmem:[#allocation10 + $0xe0] sm:$0xf] }
 0x756   : > { %v2972_v42 = vrot.slane %v2971_v36, 2  ;;  %v4894_v53 = vor.u32 %v5367_v43, %v4893_v50 }
 0x757   : > { %v2863_v63 = vrot.slane %v2862_v35, 1 }
 0x758   : > { %v2973_v47 = vadd.f32 %v2972_v42, %v2971_v36  ;;  %v4957_v36 = vld [vmem:[#allocation10 + $0x160] sm:$0xf]  ;;  %3615 = vmatpush.bf16.msrb.mxu2 %v4894_v53 }
 0x759   : > { %v2864_v20 = vmax.f32 %v2862_v35, %v2863_v63  ;;  %v5383_v35 = vld [vmem:[#allocation10 + $0x16c] sm:$0xf0] }
 0x75a   : > { %v2974_v45 = vrot.slane %v2973_v47, 1  ;;  %v4958_v63 = vor.u32 %v5383_v35, %v4957_v36  ;;  %v3022_v35 = vpop.permute.xlu2 %3021 }
 0x75b   : > { %v2879_v56 = vsub.f32 %v2788_v55, %v2864_v20  ;;  %v2880_v38 = vsub.f32 %v2790_v34, %v2864_v20  ;;  %v5363_v20 = vld [vmem:[#allocation10 + $0xcc] sm:$0xf0] }
 0x75c   : > { %v2975_v28 = vadd.f32 %v2974_v45, %v2973_v47  ;;  %v4877_v47 = vld [vmem:[#allocation10 + $0xc0] sm:$0xf]  ;;  %3632 = vmatpush.bf16.msrb.mxu3 %v4958_v63  ;;  %v5359_v45 = vld [vmem:[#allocation10 + $0xac] sm:$0xf0] }
 0x75d   : > { %v2909_v31 = vmul.f32 1.442695, %v2879_v56  ;;  %v2911_v41 = vmul.f32 1.442695, %v2880_v38  ;;  %v4878_v56 = vor.u32 %v5363_v20, %v4877_v47  ;;  %v4861_v38 = vld [vmem:[#allocation10 + $0xa0] sm:$0xf] }
 0x75f   : > { %5674 = vpow2.f32 %v2909_v31  ;;  %3616 = vmatpush.bf16.msrb.mxu2 %v4878_v56  ;;  %v4941_v31 = vld [vmem:[#allocation10 + $0x140] sm:$0xf] }
 0x760   : > { %5676 = vpow2.f32 %v2911_v41  ;;  %v4862_v41 = vor.u32 %v5359_v45, %v4861_v38 }
 0x761   : > { %5678 = vrcp.f32 %v2975_v28  ;;  %v5379_v28 = vld [vmem:[#allocation10 + $0x14c] sm:$0xf0] }
 0x763   : > { %3617 = vmatpush.bf16.msrb.mxu2 %v4862_v41 }
 0x765   : > { %v5675_v46 = vpop.eup %5674 }
 0x766   : > { %v5677_v15 = vpop.eup %5676  ;;  %v2976_v6 = vsel %vm2792_vm1, %v5675_v46, 0.0 }
 0x767   : > { %v5679_v39 = vpop.eup %5678  ;;  %v2977_v24 = vsel %vm2792_vm1, %v5677_v15, 0.0 }
 0x768   : > { %v2978_v62 = vadd.f32 %v2977_v24, %v2976_v6  ;;  %v3006_v59 = vmul.f32 %v5679_v39, %v5671_v22  ;;  %v3005_v9 = vmul.f32 %v5679_v39, %v5669_v17  ;;  %v4942_v6 = vor.u32 %v5379_v28, %v4941_v31  ;;  %v4845_v39 = vld [vmem:[#allocation10 + $0x80] sm:$0xf] }
 0x769   : > { %v4829_v24 = vld [vmem:[#allocation10 + $0x60] sm:$0xf]  ;;  %v3093_v31 = vmul.f32 %v3022_v35, %v7083_v23 }
 0x76a   : > { %v2979_v58 = vrot.slane %v2978_v62, 4  ;;  %3076 = vperm.xlu1 %5622, %v3006_v59   ;;  %3071 = vperm.xlu0 %5624, %v3005_v9   ;;  %v3017_v59 = vpop.permute.xlu1 %3016  ;;  %v3012_v9 = vpop.permute.xlu0 %3011 }
 0x76b   : > { %3633 = vmatpush.bf16.msrb.mxu3 %v4942_v6  ;;  %v3092_v50 = vmul.f32 %v3017_v59, %v7071_v54  ;;  %v3090_v43 = vmul.f32 %v3012_v9, %v7065_v32  ;;  %v3091_v53 = vmul.f32 %v3017_v59, %v7068_v4  ;;  %v3089_v36 = vmul.f32 %v3012_v9, %v7062_v2 }
 0x76c   : > { %v2980_v55 = vadd.f32 %v2979_v58, %v2978_v62  ;;  %v5351_v62 = vld [vmem:[#allocation10 + $0x6c] sm:$0xf0]  ;;  %v3094_v32 = vmul.f32 %v3022_v35, %v7086_v61  ;;  %v3037_v45 = vpop.permute.xlu2 %3036 }
 0x76d   : > { %v4830_v58 = vor.u32 %v5351_v62, %v4829_v24  ;;  %v3128_v63 = vsel %vm974_vm7, %v3090_v43, 0.0  ;;  %v3121_v20 = vadd.f32 %v3091_v53, %v3089_v36  ;;  %v4781_v43 = vld [vmem:[#allocation10] sm:$0xf]  ;;  %v5339_v35 = vld [vmem:[#allocation10 + $0xc] sm:$0xf0] }
 0x76e   : > { %v2981_v34 = vrot.slane %v2980_v55, 2  ;;  %v3144_v28 = vsel %vm974_vm7, %v3094_v32, 0.0 }
 0x76f   : > { %v3122_v54 = vrot.slane %v3121_v20, 4 }
 0x770   : > { %v2982_v27 = vadd.f32 %v2981_v34, %v2980_v55  ;;  %v4925_v55 = vld [vmem:[#allocation10 + $0x120] sm:$0xf]  ;;  %v5375_v34 = vld [vmem:[#allocation10 + $0x12c] sm:$0xf0] }
 0x771   : > { %v3123_v41 = vadd.f32 %v3122_v54, %v3121_v20 }
 0x772   : > { %v2983_v0 = vrot.slane %v2982_v27, 1  ;;  %v3027_v47 = vpop.permute.xlu0 %3026 }
 0x773   : > { %v3096_v56 = vmul.f32 %v3027_v47, %v7092_v52  ;;  %v3095_v4 = vmul.f32 %v3027_v47, %v7089_v13  ;;  %v3100_v52 = vmul.f32 %v3037_v45, %v7109_v10  ;;  %v3124_v62 = vrot.slane %v3123_v41, 2  ;;  %v5371_v10 = vld [vmem:[#allocation10 + $0x10c] sm:$0xf0] }
 0x774   : > { %v2984_v33 = vadd.f32 %v2983_v0, %v2982_v27  ;;  %v4813_v27 = vld [vmem:[#allocation10 + $0x40] sm:$0xf]  ;;  %v5347_v0 = vld [vmem:[#allocation10 + $0x4c] sm:$0xf0] }
 0x775   : > { %v3145_v2 = vsel %vm974_vm7, %v3096_v56, 0.0  ;;  %v3161_v23 = vsel %vm974_vm7, %v3100_v52, 0.0  ;;  %v3125_v32 = vadd.f32 %v3124_v62, %v3123_v41 }
 0x776   : > { %5680 = vrcp.f32 %v2984_v33  ;;  %v4814_v33 = vor.u32 %v5347_v0, %v4813_v27  ;;  %v3146_v24 = vadd.f32 %v3145_v2, %v3144_v28  ;;  %v5343_v27 = vld [vmem:[#allocation10 + $0x2c] sm:$0xf0]  ;;  %v3099_v0 = vmul.f32 %v3037_v45, %v7106_v16 }
 0x778   : > { %v3147_v13 = vrot.slane %v3146_v24, 4 }
 0x77a   : > { %v3148_v47 = vadd.f32 %v3147_v13, %v3146_v24 }
 0x77c   : > { %v5681_v42 = vpop.eup %5680  ;;  %v3149_v28 = vrot.slane %v3148_v47, 2 }
 0x77d   : > { %v3008_v22 = vmul.f32 %v5681_v42, %v5677_v15  ;;  %v3007_v17 = vmul.f32 %v5681_v42, %v5675_v46  ;;  %v5355_v15 = vld [vmem:[#allocation10 + $0x8c] sm:$0xf0]  ;;  %v3129_v42 = vsel %vm974_vm7, %v3092_v50, 0.0  ;;  %v4909_v50 = vld [vmem:[#allocation10 + $0x100] sm:$0xf] }
 0x77e   : > { %v4846_v46 = vor.u32 %v5355_v15, %v4845_v39  ;;  %v4910_v36 = vor.u32 %v5371_v10, %v4909_v50 }
 0x77f   : > { %3086 = vperm.xlu0 %5624, %v3008_v22   ;;  %3081 = vperm.xlu2 %5623, %v3007_v17   ;;  %v3130_v17 = vadd.f32 %v3129_v42, %v3128_v63  ;;  %v5365_v42 = vld [vmem:[#allocation10 + $0xe4] sm:$0xf]  ;;  %v4895_v63 = vld [vmem:[#allocation10 + $0xf0] sm:$0xf0] }
 0x780   : > { %3618 = vmatpush.bf16.msrb.mxu2 %v4846_v46  ;;  %v3137_v46 = vadd.f32 %v3095_v4, %v3093_v31  ;;  %v4898_v56 = vor.u32 %v5365_v42, %v4895_v63 }
 0x781   : > { %v3131_v38 = vrot.slane %v3130_v17, 4 }
 0x782   : > { %v3138_v9 = vrot.slane %v3137_v46, 4 }
 0x783   : > { %v3132_v15 = vadd.f32 %v3131_v38, %v3130_v17 }
 0x784   : > { %3619 = vmatpush.bf16.msrb.mxu2 %v4830_v58  ;;  %v3032_v22 = vpop.permute.xlu1 %3031 }
 0x785   : > { %v3098_v61 = vmul.f32 %v3032_v22, %v7103_v3  ;;  %v3133_v59 = vrot.slane %v3132_v15, 2  ;;  %v3097_v58 = vmul.f32 %v3032_v22, %v7100_v14  ;;  %v3139_v14 = vadd.f32 %v3138_v9, %v3137_v46 }
 0x786   : > { %v4782_v22 = vor.u32 %v5339_v35, %v4781_v43 }
 0x787   : > { %4398 = vrot.lane.b32.xlu0 %v6673_v29, %s5959_s24  ;;  %v4926_v29 = vor.u32 %v5375_v34, %v4925_v55  ;;  %v3160_v34 = vsel %vm974_vm7, %v3098_v61, 0.0  ;;  %v3153_v20 = vadd.f32 %v3099_v0, %v3097_v58  ;;  %v3134_v2 = vadd.f32 %v3133_v59, %v3132_v15 }
 0x788   : > { %3620 = vmatpush.bf16.msrb.mxu2 %v4814_v33  ;;  %v3162_v17 = vadd.f32 %v3161_v23, %v3160_v34  ;;  %v3140_v31 = vrot.slane %v3139_v14, 2 }
 0x789   : > { %3634 = vmatpush.bf16.msrb.mxu3 %v4926_v29  ;;  %v4797_v29 = vld [vmem:[#allocation10 + $0x20] sm:$0xf]  ;;  %v3154_v46 = vrot.slane %v3153_v20, 4  ;;  %v3135_v50 = vrot.slane %v3134_v2, 1 }
 0x78a   : > { %v4798_v33 = vor.u32 %v5343_v27, %v4797_v29  ;;  %v3163_v52 = vrot.slane %v3162_v17, 4  ;;  %v3126_v29 = vrot.slane %v3125_v32, 1 }
 0x78b   : > { %v3155_v27 = vadd.f32 %v3154_v46, %v3153_v20  ;;  %v4863_v46 = vld [vmem:[#allocation10 + $0xb0] sm:$0xf0] }
 0x78c   : > { %3621 = vmatpush.bf16.msrb.mxu2 %v4798_v33  ;;  %v3164_v10 = vadd.f32 %v3163_v52, %v3162_v17 }
 0x78d   : > { %3635 = vmatpush.bf16.msrb.mxu3 %v4910_v36  ;;  %v4879_v36 = vld [vmem:[#allocation10 + $0xd0] sm:$0xf0]  ;;  %v3156_v20 = vrot.slane %v3155_v27, 2 }
 0x790   : > { %3622 = vmatpush.bf16.msrb.mxu2 %v4782_v22 }
 0x794   : > { %3641 = vmatpush.bf16.msra.mxu2 %v4898_v56  ;;  %v3127_v56 = vadd.f32 %v3126_v29, %v3125_v32  ;;  %v3157_v32 = vadd.f32 %v3156_v20, %v3155_v27 }
 0x799   : > { %v3047_v6 = vpop.permute.xlu1 %3046  ;;  %v3042_v39 = vpop.permute.xlu0 %3041 }
 0x79a   : > { %v3052_v55 = vpop.permute.xlu2 %3051  ;;  %v3104_v16 = vmul.f32 %v3047_v6, %v7126_v44  ;;  %v3102_v54 = vmul.f32 %v3042_v39, %v7120_v19  ;;  %v3103_v38 = vmul.f32 %v3047_v6, %v7123_v48  ;;  %v3101_v45 = vmul.f32 %v3042_v39, %v7117_v51 }
 0x79b   : > { %v3106_v61 = vmul.f32 %v3052_v55, %v7137_v37 }
 0x79c   : > { %v3177_v48 = vsel %vm974_vm7, %v3104_v16, 0.0  ;;  %v3176_v51 = vsel %vm974_vm7, %v3102_v54, 0.0  ;;  %v3169_v6 = vadd.f32 %v3103_v38, %v3101_v45  ;;  %v3136_v45 = vadd.f32 %v3135_v50, %v3134_v2  ;;  %v4959_v2 = vld [vmem:[#allocation10 + $0x170] sm:$0xf0] }
 0x79d   : > { %v4927_v50 = vld [vmem:[#allocation10 + $0x130] sm:$0xf0] }
 0x7ac   : > { %v3067_v24 = vpop.permute.xlu2 %3066 }
 0x7ad   : > { %v3111_v39 = vmul.f32 %v3067_v24, %v7157_v11  ;;  %v3112_v15 = vmul.f32 %v3067_v24, %v7160_v30 }
 0x7b1   : > { %v3057_v3 = vpop.permute.xlu0 %3056 }
 0x7b2   : > { %v3108_v4 = vmul.f32 %v3057_v3, %v7143_v49  ;;  %v3107_v44 = vmul.f32 %v3057_v3, %v7140_v40  ;;  %v3105_v49 = vmul.f32 %v3052_v55, %v7134_v12  ;;  %v3178_v12 = vadd.f32 %v3177_v48, %v3176_v51  ;;  %v5353_v48 = vld [vmem:[#allocation10 + $0x84] sm:$0xf]  ;;  %v4847_v51 = vld [vmem:[#allocation10 + $0x90] sm:$0xf0] }
 0x7b4   : > { %v3193_v37 = vsel %vm974_vm7, %v3108_v4, 0.0  ;;  %v3185_v58 = vadd.f32 %v3107_v44, %v3105_v49  ;;  %v3179_v43 = vrot.slane %v3178_v12, 4  ;;  %v3165_v4 = vrot.slane %v3164_v10, 2  ;;  %v5381_v49 = vld [vmem:[#allocation10 + $0x164] sm:$0xf] }
 0x7b6   : > { %v3186_v35 = vrot.slane %v3185_v58, 4  ;;  %v3180_v17 = vadd.f32 %v3179_v43, %v3178_v12 }
 0x7b8   : > { %v3187_v24 = vadd.f32 %v3186_v35, %v3185_v58  ;;  %v3181_v12 = vrot.slane %v3180_v17, 2  ;;  %v4815_v35 = vld [vmem:[#allocation10 + $0x50] sm:$0xf0] }
 0x7c4   : > { %v3062_v53 = vpop.permute.xlu1 %3061 }
 0x7c5   : > { %v3110_v19 = vmul.f32 %v3062_v53, %v7154_v18  ;;  %v3109_v41 = vmul.f32 %v3062_v53, %v7151_v8  ;;  %v3192_v8 = vsel %vm974_vm7, %v3106_v61, 0.0  ;;  %v5361_v53 = vld [vmem:[#allocation10 + $0xc4] sm:$0xf] }
 0x7c6   : > { %v3194_v55 = vadd.f32 %v3193_v37, %v3192_v8  ;;  %v4882_v22 = vor.u32 %v5361_v53, %v4879_v36  ;;  %v3298_v37 = vpack.c.bf16 %v3136_v45, %v3136_v45  ;;  %v3188_v8 = vrot.slane %v3187_v24, 2 }
 0x7c7   : > { %v3208_v11 = vsel %vm974_vm7, %v3110_v19, 0.0  ;;  %v3201_v30 = vadd.f32 %v3111_v39, %v3109_v41  ;;  %v3297_v19 = vpack.c.bf16 %v3127_v56, %v3127_v56 }
 0x7c8   : > { %v3195_v42 = vrot.slane %v3194_v55, 4  ;;  %3642 = vmatpush.bf16.msra.mxu2 %v4882_v22  ;;  %v7304_v43 = vunpack.c.l.b16 %v3298_v37 }
 0x7c9   : > { %v3202_v63 = vrot.slane %v3201_v30, 4 }
 0x7ca   : > { %v3196_v52 = vadd.f32 %v3195_v42, %v3194_v55  ;;  %v4943_v55 = vld [vmem:[#allocation10 + $0x150] sm:$0xf0]  ;;  %v3182_v42 = vadd.f32 %v3181_v12, %v3180_v17 }
 0x7cb   : > { %v3203_v61 = vadd.f32 %v3202_v63, %v3201_v30  ;;  %v7302_v30 = vunpack.c.l.b16 %v3297_v19  ;;  %v3189_v63 = vadd.f32 %v3188_v8, %v3187_v24 }
 0x7cc   : > { %v3197_v58 = vrot.slane %v3196_v52, 2 }
 0x7cd   : > { %v3190_v19 = vrot.slane %v3189_v63, 1 }
 0x7ce   : > { %v3198_v22 = vadd.f32 %v3197_v58, %v3196_v52 }
 0x7cf   : > { %v3191_v12 = vadd.f32 %v3190_v19, %v3189_v63 }
 0x7dc   : > { %v3077_v62 = vpop.permute.xlu1 %3076  ;;  %v3072_v40 = vpop.permute.xlu0 %3071 }
 0x7dd   : > { %v3115_v18 = vmul.f32 %v3077_v62, %v7174_v1  ;;  %v3116_v59 = vmul.f32 %v3077_v62, %v7177_v25  ;;  %v3113_v9 = vmul.f32 %v3072_v40, %v7168_v21  ;;  %v3114_v13 = vmul.f32 %v3072_v40, %v7171_v5 }
 0x7de   : > { %v3141_v1 = vadd.f32 %v3140_v31, %v3139_v14  ;;  %v3209_v25 = vsel %vm974_vm7, %v3112_v15, 0.0  ;;  %v7297_v21 = vadd.f32 %v3149_v28, %v3148_v47  ;;  %v3170_v5 = vrot.slane %v3169_v6, 4  ;;  %v5357_v28 = vld [vmem:[#allocation10 + $0xa4] sm:$0xf] }
 0x7df   : > { %v3225_v23 = vsel %vm974_vm7, %v3116_v59, 0.0  ;;  %v3224_v34 = vsel %vm974_vm7, %v3114_v13, 0.0  ;;  %v3210_v0 = vadd.f32 %v3209_v25, %v3208_v11  ;;  %v3217_v33 = vadd.f32 %v3115_v18, %v3113_v9  ;;  %v5349_v59 = vld [vmem:[#allocation10 + $0x64] sm:$0xf]  ;;  %v4831_v9 = vld [vmem:[#allocation10 + $0x70] sm:$0xf0] }
 0x7e0   : > { %v3226_v3 = vadd.f32 %v3225_v23, %v3224_v34  ;;  %v3142_v14 = vrot.slane %v3141_v1, 1  ;;  %v3151_v16 = vrot.slane %v7297_v21, 1  ;;  %v3171_v47 = vadd.f32 %v3170_v5, %v3169_v6  ;;  %v5377_v13 = vld [vmem:[#allocation10 + $0x144] sm:$0xf]  ;;  %v3082_v5 = vpop.permute.xlu2 %3081 }
 0x7e1   : > { %v3211_v54 = vrot.slane %v3210_v0, 4  ;;  %v3218_v38 = vrot.slane %v3217_v33, 4  ;;  %v4866_v44 = vor.u32 %v5357_v28, %v4863_v46  ;;  %v4850_v15 = vor.u32 %v5353_v48, %v4847_v51  ;;  %v4911_v28 = vld [vmem:[#allocation10 + $0x110] sm:$0xf0] }
 0x7e2   : > { %v3227_v31 = vrot.slane %v3226_v3, 4  ;;  %v3172_v41 = vrot.slane %v3171_v47, 2  ;;  %v7300_v62 = vadd.f32 %v3142_v14, %v3141_v1  ;;  %v4962_v18 = vor.u32 %v5381_v49, %v4959_v2 }
 0x7e3   : > { %v3212_v6 = vadd.f32 %v3211_v54, %v3210_v0  ;;  %v3219_v39 = vadd.f32 %v3218_v38, %v3217_v33  ;;  %3643 = vmatpush.bf16.msra.mxu2 %v4866_v44  ;;  %v3204_v11 = vrot.slane %v3203_v61, 2  ;;  %v3158_v23 = vrot.slane %v3157_v32, 1  ;;  %v5373_v33 = vld [vmem:[#allocation10 + $0x124] sm:$0xf]  ;;  %v4799_v44 = vld [vmem:[#allocation10 + $0x30] sm:$0xf0] }
 0x7e4   : > { %v3228_v40 = vadd.f32 %v3227_v31, %v3226_v3  ;;  %v3166_v34 = vadd.f32 %v3165_v4, %v3164_v10  ;;  %3658 = vmatpush.bf16.msra.mxu3 %v4962_v18  ;;  %v4946_v29 = vor.u32 %v5377_v13, %v4943_v55  ;;  %v3173_v27 = vadd.f32 %v3172_v41, %v3171_v47  ;;  %v5345_v10 = vld [vmem:[#allocation10 + $0x44] sm:$0xf] }
 0x7e5   : > { %v3213_v25 = vrot.slane %v3212_v6, 2  ;;  %v3220_v1 = vrot.slane %v3219_v39, 2  ;;  %v4834_v0 = vor.u32 %v5349_v59, %v4831_v9  ;;  %v7307_v3 = vadd.f32 %v3151_v16, %v7297_v21  ;;  %v5369_v31 = vld [vmem:[#allocation10 + $0x104] sm:$0xf]  ;;  %v4783_v59 = vld [vmem:[#allocation10 + $0x10] sm:$0xf0] }
 0x7e6   : > { %v3299_v53 = vpack.c.bf16 %v7300_v62, %v7300_v62  ;;  %v3229_v36 = vrot.slane %v3228_v40, 2  ;;  %v3205_v56 = vadd.f32 %v3204_v11, %v3203_v61  ;;  %v7311_v14 = vadd.f32 %v3158_v23, %v3157_v32  ;;  %v5341_v61 = vld [vmem:[#allocation10 + $0x24] sm:$0xf] }
 0x7e7   : > { %3644 = vmatpush.bf16.msra.mxu2 %v4850_v15  ;;  %v3167_v20 = vrot.slane %v3166_v34, 1  ;;  %v3118_v47 = vmul.f32 %v3082_v5, %v7197_v7  ;;  %v4930_v54 = vor.u32 %v5373_v33, %v4927_v50  ;;  %v3174_v38 = vrot.slane %v3173_v27, 1  ;;  %v5337_v18 = vld [vmem:[#allocation10 + $0x4] sm:$0xf] }
 0x7e8   : > { %3659 = vmatpush.bf16.msra.mxu3 %v4946_v29  ;;  %v3214_v21 = vadd.f32 %v3213_v25, %v3212_v6  ;;  %v3221_v16 = vadd.f32 %v3220_v1, %v3219_v39  ;;  %v4818_v4 = vor.u32 %v5345_v10, %v4815_v35  ;;  %v3230_v46 = vadd.f32 %v3229_v36, %v3228_v40 }
 0x7e9   : > { %v3117_v17 = vmul.f32 %v3082_v5, %v7194_v60  ;;  %v3183_v7 = vrot.slane %v3182_v42, 1  ;;  %v3199_v32 = vrot.slane %v3198_v22, 1  ;;  %v3206_v48 = vrot.slane %v3205_v56, 1 }
 0x7ea   : > { %v3240_v51 = vsel %vm974_vm7, %v3118_v47, 0.0  ;;  %v4914_v6 = vor.u32 %v5369_v31, %v4911_v28  ;;  %v3215_v39 = vrot.slane %v3214_v21, 1  ;;  %v3222_v15 = vrot.slane %v3221_v16, 1 }
 0x7eb   : > { %3645 = vmatpush.bf16.msra.mxu2 %v4834_v0  ;;  %v3168_v2 = vadd.f32 %v3167_v20, %v3166_v34  ;;  %v3231_v37 = vrot.slane %v3230_v46, 1  ;;  %v3300_v9 = vpack.c.bf16 %v7307_v3, %v7307_v3  ;;  %v3184_v13 = vadd.f32 %v3183_v7, %v3182_v42 }
 0x7ec   : > { %3660 = vmatpush.bf16.msra.mxu3 %v4930_v54  ;;  %v3301_v58 = vpack.c.bf16 %v7311_v14, %v7311_v14  ;;  %v3200_v11 = vadd.f32 %v3199_v32, %v3198_v22  ;;  %v3207_v55 = vadd.f32 %v3206_v48, %v3205_v56  ;;  %v3216_v29 = vadd.f32 %v3215_v39, %v3214_v21 }
 0x7ed   : > { %v3223_v34 = vadd.f32 %v3222_v15, %v3221_v16  ;;  %v4786_v25 = vor.u32 %v5337_v18, %v4783_v59  ;;  %v3302_v1 = vpack.c.bf16 %v3168_v2, %v3168_v2  ;;  %v3232_v0 = vadd.f32 %v3231_v37, %v3230_v46 }
 0x7ee   : > { %v3341_v50 = vunpack.c.l.b16 %v3299_v53  ;;  %v3304_v3 = vpack.c.bf16 %v3184_v13, %v3184_v13  ;;  %v3305_v36 = vpack.c.bf16 %v3191_v12, %v3191_v12  ;;  %v3342_v35 = vunpack.c.l.b16 %v3300_v9 }
 0x7ef   : > { %3646 = vmatpush.bf16.msra.mxu2 %v4818_v4  ;;  %v3306_v42 = vpack.c.bf16 %v3200_v11, %v3200_v11  ;;  %v3307_v63 = vpack.c.bf16 %v3207_v55, %v3207_v55  ;;  %v3343_v56 = vunpack.c.l.b16 %v3301_v58  ;;  %v3308_v14 = vpack.c.bf16 %v3216_v29, %v3216_v29  ;;  %v5380_v58 = vld [vmem:[#allocation10 + $0x154] sm:$0xf0]  ;;  %v4885_v55 = vld [vmem:[#allocation10 + $0xc8] sm:$0xf] }
 0x7f0   : > { %3661 = vmatpush.bf16.msra.mxu3 %v4914_v6  ;;  %v3309_v20 = vpack.c.bf16 %v3223_v34, %v3223_v34  ;;  %v3344_v54 = vunpack.c.l.b16 %v3302_v1  ;;  %v3310_v21 = vpack.c.bf16 %v3232_v0, %v3232_v0  ;;  %v3355_v62 = vsel %vm1172_vm8, %v3341_v50, %v7302_v30  ;;  %v4869_v1 = vld [vmem:[#allocation10 + $0xa8] sm:$0xf] }
 0x7f1   : > { %v3087_v45 = vpop.permute.xlu0 %3086  ;;  %v3346_v53 = vunpack.c.l.b16 %v3304_v3  ;;  %v3362_v31 = vsel %vm1172_vm8, %v3342_v35, %v7304_v43  ;;  %v3348_v28 = vunpack.c.l.b16 %v3306_v42  ;;  %v3349_v46 = vunpack.c.l.b16 %v3307_v63  ;;  %v4965_v43 = vld [vmem:[#allocation10 + $0x168] sm:$0xf]  ;;  %v5372_v3 = vld [vmem:[#allocation10 + $0x114] sm:$0xf0]  ;;  %v5366_v63 = vld [vmem:[#allocation10 + $0xec] sm:$0xf] }
 0x7f2   : > { %v3119_v24 = vmul.f32 %v3087_v45, %v7200_v26  ;;  %v3120_v52 = vmul.f32 %v3087_v45, %v7203_v57  ;;  %v4802_v26 = vor.u32 %v5341_v61, %v4799_v44  ;;  %v3175_v57 = vadd.f32 %v3174_v38, %v3173_v27  ;;  %v4917_v50 = vld [vmem:[#allocation10 + $0x108] sm:$0xf] }
 0x7f3   : > { %v3347_v45 = vunpack.c.l.b16 %v3305_v36  ;;  %v3351_v61 = vunpack.c.l.b16 %v3309_v20  ;;  %v3363_v7 = vsel %vm1174_vm9, %v3344_v54, %v3362_v31  ;;  %v3352_v32 = vunpack.c.l.b16 %v3310_v21  ;;  %v4853_v36 = vld [vmem:[#allocation10 + $0x88] sm:$0xf]  ;;  %v5362_v54 = vld [vmem:[#allocation10 + $0xcc] sm:$0xf]  ;;  %v5161_v31 = vld [vmem:[#allocation12 + $0x170] sm:$0xf] }
 0x7f4   : > { %v3233_v49 = vadd.f32 %v3119_v24, %v3117_v17  ;;  %v3241_v41 = vsel %vm974_vm7, %v3120_v52, 0.0  ;;  %3647 = vmatpush.bf16.msra.mxu2 %v4802_v26  ;;  %v3303_v5 = vpack.c.bf16 %v3175_v57, %v3175_v57  ;;  %v3356_v24 = vsel %vm1174_vm9, %v3343_v56, %v3355_v62  ;;  %v5368_v26 = vld [vmem:[#allocation10 + $0xf4] sm:$0xf0]  ;;  %v4837_v56 = vld [vmem:[#allocation10 + $0x68] sm:$0xf] }
 0x7f5   : > { %v3242_v60 = vadd.f32 %v3241_v41, %v3240_v51  ;;  %v3350_v52 = vunpack.c.l.b16 %v3308_v14  ;;  %v3364_v48 = vsel %vm1176_vm10, %v3346_v53, %v3363_v7  ;;  %v5384_v41 = vld [vmem:[#allocation10 + $0x174] sm:$0xf0]  ;;  %v4918_v35 = vor.u32 %v5372_v3, %v4917_v50  ;;  %v4821_v21 = vld [vmem:[#allocation10 + $0x48] sm:$0xf]  ;;  %v5358_v62 = vld [vmem:[#allocation10 + $0xac] sm:$0xf] }
 0x7f6   : > { %v3234_v40 = vrot.slane %v3233_v49, 4  ;;  %v3345_v38 = vunpack.c.l.b16 %v3303_v5  ;;  %v3365_v6 = vsel %vm1178_vm11, %v3348_v28, %v3364_v48  ;;  %v4966_v59 = vor.u32 %v5384_v41, %v4965_v43  ;;  %v5360_v5 = vld [vmem:[#allocation10 + $0xb4] sm:$0xf0]  ;;  %v4871_v53 = vld [vmem:[#allocation10 + $0xb8] sm:$0xf0] }
 0x7f7   : > { %v3243_v8 = vrot.slane %v3242_v60, 4  ;;  %v3366_v2 = vsel %vm1180_vm12, %v3350_v52, %v3365_v6  ;;  %v5352_v14 = vld [vmem:[#allocation10 + $0x74] sm:$0xf0]  ;;  %v5145_v41 = vld [vmem:[#allocation12 + $0x150] sm:$0xf] }
 0x7f8   : > { %v3235_v23 = vadd.f32 %v3234_v40, %v3233_v49  ;;  %3648 = vmatpush.bf16.msra.mxu2 %v4786_v25  ;;  %v3357_v19 = vsel %vm1176_vm10, %v3345_v38, %v3356_v24  ;;  %v3367_v40 = vsel %vm1182_vm13, %v3352_v32, %v3366_v2  ;;  %v5376_v25 = vld [vmem:[#allocation10 + $0x134] sm:$0xf0]  ;;  %v4887_v38 = vld [vmem:[#allocation10 + $0xd8] sm:$0xf0]  ;;  %v5217_v32 = vld [vmem:[#allocation12 + $0x1e0] sm:$0xf] }
 0x7f9   : > { %v3244_v27 = vadd.f32 %v3243_v8, %v3242_v60  ;;  %v3358_v51 = vsel %vm1178_vm11, %v3347_v45, %v3357_v19  ;;  %v4901_v60 = vld [vmem:[#allocation10 + $0xe8] sm:$0xf]  ;;  %v4890_v45 = vor.u32 %v5362_v54, %v4887_v38  ;;  %v5432_v28 = vld [vmem:[#allocation12 + $0x174] sm:$0xf0]  ;;  %v4823_v50 = vld [vmem:[#allocation10 + $0x58] sm:$0xf0] }
 0x7fa   : > { %v3236_v33 = vrot.slane %v3235_v23, 2  ;;  %v3359_v39 = vsel %vm1180_vm12, %v3349_v46, %v3358_v51  ;;  %v4902_v12 = vor.u32 %v5368_v26, %v4901_v60  ;;  %v4949_v8 = vld [vmem:[#allocation10 + $0x148] sm:$0xf]  ;;  %v5225_v46 = vld [vmem:[#allocation12 + $0x1f0] sm:$0xf]  ;;  %v5162_v24 = vor.u32 %v5432_v28, %v5161_v31 }
 0x7fb   : > { %v3245_v10 = vrot.slane %v3244_v27, 2  ;;  %v3360_v37 = vsel %vm1182_vm13, %v3351_v61, %v3359_v39  ;;  %v4950_v29 = vor.u32 %v5380_v58, %v4949_v8  ;;  %v5448_v52 = vld [vmem:[#allocation12 + $0x1f4] sm:$0xf0]  ;;  %v5153_v61 = vld [vmem:[#allocation12 + $0x160] sm:$0xf]  ;;  %v4874_v51 = vor.u32 %v5358_v62, %v4871_v53 }
 0x7fc   : > { %v3237_v22 = vadd.f32 %v3236_v33, %v3235_v23  ;;  %v5364_v23 = vld [vmem:[#allocation10 + $0xd4] sm:$0xf0]  ;;  %v4870_v33 = vor.u32 %v5360_v5, %v4869_v1  ;;  %v5226_v19 = vor.u32 %v5448_v52, %v5225_v46  ;;  %4143 = vmatpush.bf16.msra.mxu0 %v5162_v24  ;;  %v5209_v60 = vld [vmem:[#allocation12 + $0x1d0] sm:$0xf]  ;;  %v4789_v2 = vld [vmem:[#allocation10 + $0x8] sm:$0xf] }
 0x7fd   : > { %v3246_v47 = vadd.f32 %v3245_v10, %v3244_v27  ;;  %v4886_v34 = vor.u32 %v5364_v23, %v4885_v55  ;;  %v4933_v27 = vld [vmem:[#allocation10 + $0x128] sm:$0xf]  ;;  %v5356_v10 = vld [vmem:[#allocation10 + $0x94] sm:$0xf0]  ;;  %v5350_v55 = vld [vmem:[#allocation10 + $0x6c] sm:$0xf] }
 0x7fe   : > { %v3238_v16 = vrot.slane %v3237_v22, 1  ;;  %v4934_v0 = vor.u32 %v5376_v25, %v4933_v27  ;;  %v4854_v42 = vor.u32 %v5356_v10, %v4853_v36  ;;  %v5344_v7 = vld [vmem:[#allocation10 + $0x34] sm:$0xf0]  ;;  %4156 = vmatpush.bf16.msra.mxu1 %v5226_v19  ;;  %v5426_v8 = vld [vmem:[#allocation12 + $0x144] sm:$0xf0] }
 0x7ff   : > { %v3247_v4 = vrot.slane %v3246_v47, 1  ;;  %v5428_v6 = vld [vmem:[#allocation12 + $0x154] sm:$0xf0]  ;;  %v4839_v23 = vld [vmem:[#allocation10 + $0x78] sm:$0xf0] }
 0x800   : > { %v3239_v17 = vadd.f32 %v3238_v16, %v3237_v22  ;;  %v4903_v22 = vld [vmem:[#allocation10 + $0xf8] sm:$0xf0]  ;;  %v5348_v16 = vld [vmem:[#allocation10 + $0x54] sm:$0xf0]  ;;  %v5442_v27 = vld [vmem:[#allocation12 + $0x1c4] sm:$0xf0] }
 0x801   : > { %v3248_v44 = vadd.f32 %v3247_v4, %v3246_v47  ;;  %v4906_v20 = vor.u32 %v5366_v63, %v4903_v22  ;;  %v4838_v47 = vor.u32 %v5352_v14, %v4837_v56  ;;  %v4805_v4 = vld [vmem:[#allocation10 + $0x28] sm:$0xf]  ;;  %v5444_v26 = vld [vmem:[#allocation12 + $0x1d4] sm:$0xf0]  ;;  %v5378_v25 = vld [vmem:[#allocation10 + $0x14c] sm:$0xf] }
 0x802   : > { %v3311_v30 = vpack.c.bf16 %v3239_v17, %v3239_v17  ;;  %v4822_v17 = vor.u32 %v5348_v16, %v4821_v21  ;;  %v4806_v39 = vor.u32 %v5344_v7, %v4805_v4  ;;  %v4951_v1 = vld [vmem:[#allocation10 + $0x158] sm:$0xf0]  ;;  %v5374_v10 = vld [vmem:[#allocation10 + $0x12c] sm:$0xf]  ;;  %v5033_v38 = vld [vmem:[#allocation12 + $0x70] sm:$0xf] }
 0x803   : > { %v3312_v49 = vpack.c.bf16 %v3248_v44, %v3248_v44  ;;  %v5430_v44 = vld [vmem:[#allocation12 + $0x164] sm:$0xf0]  ;;  %v4954_v36 = vor.u32 %v5378_v25, %v4951_v1  ;;  %v5342_v63 = vld [vmem:[#allocation10 + $0x2c] sm:$0xf]  ;;  %v4807_v22 = vld [vmem:[#allocation10 + $0x38] sm:$0xf0] }
 0x804   : > { %v3353_v15 = vunpack.c.l.b16 %v3311_v30  ;;  %v5446_v30 = vld [vmem:[#allocation12 + $0x1e4] sm:$0xf0]  ;;  %v5154_v48 = vor.u32 %v5430_v44, %v5153_v61  ;;  %v5370_v14 = vld [vmem:[#allocation10 + $0x10c] sm:$0xf]  ;;  %v4810_v54 = vor.u32 %v5342_v63, %v4807_v22  ;;  %v5400_v21 = vld [vmem:[#allocation12 + $0x74] sm:$0xf0] }
 0x805   : > { %v3354_v57 = vunpack.c.l.b16 %v3312_v49  ;;  %v5354_v49 = vld [vmem:[#allocation10 + $0x8c] sm:$0xf]  ;;  %v5218_v43 = vor.u32 %v5446_v30, %v5217_v32  ;;  %v5424_v16 = vld [vmem:[#allocation12 + $0x134] sm:$0xf0]  ;;  %v4791_v53 = vld [vmem:[#allocation10 + $0x18] sm:$0xf0]  ;;  %v5034_v46 = vor.u32 %v5400_v21, %v5033_v38 }
 0x806   : > { %v3361_v18 = vsel %vm1184_vm14, %v3353_v15, %v3360_v37  ;;  %v4855_v15 = vld [vmem:[#allocation10 + $0x98] sm:$0xf0]  ;;  %v5382_v37 = vld [vmem:[#allocation10 + $0x16c] sm:$0xf]  ;;  %4144 = vmatpush.bf16.msra.mxu0 %v5154_v48  ;;  %v5097_v31 = vld [vmem:[#allocation12 + $0xf0] sm:$0xf] }
 0x807   : > { %v3368_v9 = vsel %vm1184_vm14, %v3354_v57, %v3367_v40  ;;  %v7342_v13 = vpack.c.b16 %v3361_v18, %v3361_v18  ;;  %v5340_v57 = vld [vmem:[#allocation10 + $0x14] sm:$0xf0]  ;;  %v4967_v40 = vld [vmem:[#allocation10 + $0x178] sm:$0xf0]  ;;  %v5146_v18 = vor.u32 %v5428_v6, %v5145_v41  ;;  %4157 = vmatpush.bf16.msra.mxu1 %v5218_v43  ;;  %v5338_v62 = vld [vmem:[#allocation10 + $0xc] sm:$0xf] }
 0x808   : > { %v7344_v11 = vpack.c.b16 %v3368_v9, %v3368_v9  ;;  %v5210_v9 = vor.u32 %v5444_v26, %v5209_v60  ;;  %v4790_v58 = vor.u32 %v5340_v57, %v4789_v2  ;;  %v5416_v28 = vld [vmem:[#allocation12 + $0xf4] sm:$0xf0]  ;;  %v4794_v24 = vor.u32 %v5338_v62, %v4791_v53  ;;  %v5025_v52 = vld [vmem:[#allocation12 + $0x60] sm:$0xf]  ;;  %v5398_v61 = vld [vmem:[#allocation12 + $0x64] sm:$0xf0] }
 0x809   : > { %3623 = vmatmul.bf16.vlgmr.msrb.gmra.mxu2 %v7342_v13  ;;  %v5440_v44 = vld [vmem:[#allocation12 + $0x1b4] sm:$0xf0]  ;;  %v5098_v7 = vor.u32 %v5416_v28, %v5097_v31  ;;  %v5089_v32 = vld [vmem:[#allocation12 + $0xe0] sm:$0xf]  ;;  %v5414_v30 = vld [vmem:[#allocation12 + $0xe4] sm:$0xf0]  ;;  %v5026_v48 = vor.u32 %v5398_v61, %v5025_v52 }
 0x80a   : > { %4971 = vmatmul.msk.bf16.vlgmr.msrb.gmra.mxu3 %vm974_vm7, %v7344_v11  ;;  %3684 = vmatpush.bf16.msrb.mxu2 %v4966_v59  ;;  %v4858_v59 = vor.u32 %v5354_v49, %v4855_v15  ;;  %v5396_v49 = vld [vmem:[#allocation12 + $0x54] sm:$0xf0]  ;;  %v5090_v43 = vor.u32 %v5414_v30, %v5089_v32  ;;  %v5081_v41 = vld [vmem:[#allocation12 + $0xd0] sm:$0xf]  ;;  %v5009_v15 = vld [vmem:[#allocation12 + $0x40] sm:$0xf] }
 0x80b   : > { %3667 = vmatpush.bf16.msrb.mxu3 %v4902_v12  ;;  %v5137_v12 = vld [vmem:[#allocation12 + $0x140] sm:$0xf]  ;;  %4145 = vmatpush.bf16.msra.mxu0 %v5146_v18  ;;  %v5412_v6 = vld [vmem:[#allocation12 + $0xd4] sm:$0xf0]  ;;  %v5394_v60 = vld [vmem:[#allocation12 + $0x44] sm:$0xf0] }
 0x80c   : > { %v5138_v5 = vor.u32 %v5426_v8, %v5137_v12  ;;  %4158 = vmatpush.bf16.msra.mxu1 %v5210_v9  ;;  %v5082_v26 = vor.u32 %v5412_v6, %v5081_v41  ;;  %v5073_v2 = vld [vmem:[#allocation12 + $0xc0] sm:$0xf]  ;;  %v5410_v57 = vld [vmem:[#allocation12 + $0xc4] sm:$0xf0]  ;;  %v5392_v18 = vld [vmem:[#allocation12 + $0x34] sm:$0xf0] }
 0x80d   : > { %v5065_v9 = vld [vmem:[#allocation12 + $0xb0] sm:$0xf]  ;;  %v5408_v12 = vld [vmem:[#allocation12 + $0xb4] sm:$0xf0]  ;;  %v4993_v8 = vld [vmem:[#allocation12 + $0x20] sm:$0xf] }
 0x80e   : > { %3685 = vmatpush.bf16.msrb.mxu2 %v4950_v29  ;;  %v4970_v29 = vor.u32 %v5382_v37, %v4967_v40  ;;  %v5010_v37 = vor.u32 %v5394_v60, %v5009_v15  ;;  %v5001_v40 = vld [vmem:[#allocation12 + $0x30] sm:$0xf]  ;;  %v5386_v25 = vld [vmem:[#allocation12 + $0x4] sm:$0xf0]  ;;  %v5399_v1 = vld [vmem:[#allocation12 + $0x74] sm:$0xf] }
 0x80f   : > { %3668 = vmatpush.bf16.msrb.mxu3 %v4886_v34  ;;  %v5201_v34 = vld [vmem:[#allocation12 + $0x1c0] sm:$0xf]  ;;  %4146 = vmatpush.bf16.msra.mxu0 %v5138_v5  ;;  %v5035_v5 = vld [vmem:[#allocation12 + $0x78] sm:$0xf0]  ;;  %v5402_v53 = vld [vmem:[#allocation12 + $0x84] sm:$0xf0] }
 0x810   : > { %v5202_v3 = vor.u32 %v5442_v27, %v5201_v34  ;;  %v4977_v27 = vld [vmem:[#allocation12] sm:$0xf]  ;;  %v5019_v22 = vld [vmem:[#allocation12 + $0x58] sm:$0xf0]  ;;  %v5438_v28 = vld [vmem:[#allocation12 + $0x1a4] sm:$0xf0] }
 0x811   : > { %v5121_v38 = vld [vmem:[#allocation12 + $0x120] sm:$0xf]  ;;  %v5415_v52 = vld [vmem:[#allocation12 + $0xf4] sm:$0xf]  ;;  %v5099_v61 = vld [vmem:[#allocation12 + $0xf8] sm:$0xf0] }
 0x812   : > { %3686 = vmatpush.bf16.msrb.mxu2 %v4934_v0  ;;  %v4842_v0 = vor.u32 %v5350_v55, %v4839_v23  ;;  %4159 = vmatpush.bf16.msra.mxu1 %v5202_v3  ;;  %v4985_v23 = vld [vmem:[#allocation12 + $0x10] sm:$0xf]  ;;  %v5027_v3 = vld [vmem:[#allocation12 + $0x68] sm:$0xf0]  ;;  %v5041_v62 = vld [vmem:[#allocation12 + $0x80] sm:$0xf] }
 0x813   : > { %3669 = vmatpush.bf16.msrb.mxu3 %v4870_v33  ;;  %v5346_v33 = vld [vmem:[#allocation10 + $0x4c] sm:$0xf]  ;;  %v5185_v31 = vld [vmem:[#allocation12 + $0x1a0] sm:$0xf]  ;;  %v5389_v32 = vld [vmem:[#allocation12 + $0x24] sm:$0xf] }
 0x814   : > { %v4995_v30 = vld [vmem:[#allocation12 + $0x28] sm:$0xf0]  ;;  %v5387_v41 = vld [vmem:[#allocation12 + $0x14] sm:$0xf]  ;;  %v4987_v6 = vld [vmem:[#allocation12 + $0x18] sm:$0xf0] }
 0x815   : > { %v7361_v15 = vld [vmem:[%s7443_s11 + $0xc] sm:$0xf]  ;;  %v4990_v60 = vor.u32 %v5387_v41, %v4987_v6  ;;  %v5219_v6 = vld [vmem:[#allocation12 + $0x1e8] sm:$0xf0] }
 0x816   : > { %3687 = vmatpush.bf16.msrb.mxu2 %v4918_v35  ;;  %v4935_v35 = vld [vmem:[#allocation10 + $0x138] sm:$0xf0] }
 0x817   : > { %3670 = vmatpush.bf16.msrb.mxu3 %v4854_v42  ;;  %v4826_v42 = vor.u32 %v5346_v33, %v4823_v50  ;;  %v4938_v56 = vor.u32 %v5374_v10, %v4935_v35  ;;  %v5038_v33 = vor.u32 %v5399_v1, %v5035_v5  ;;  %v5397_v50 = vld [vmem:[#allocation12 + $0x64] sm:$0xf]  ;;  %v5057_v10 = vld [vmem:[#allocation12 + $0xa0] sm:$0xf]  ;;  %v5406_v35 = vld [vmem:[#allocation12 + $0xa4] sm:$0xf0] }
 0x818   : > { %v5058_v63 = vor.u32 %v5406_v35, %v5057_v10  ;;  %v5431_v1 = vld [vmem:[#allocation12 + $0x174] sm:$0xf]  ;;  %v5163_v5 = vld [vmem:[#allocation12 + $0x178] sm:$0xf0]  ;;  %v5405_v35 = vld [vmem:[#allocation12 + $0xa4] sm:$0xf] }
 0x819   : > { %3649 = vmatmul.bf16.vlgmr.msra.gmra.mxu2 %v7342_v13  ;;  %v5131_v41 = vld [vmem:[#allocation12 + $0x138] sm:$0xf0] }
 0x81a   : > { %4972 = vmatmul.msk.bf16.vlgmr.msra.gmra.mxu3 %vm974_vm7, %v7344_v11  ;;  %3693 = vmatpush.bf16.msra.mxu2 %v4906_v20  ;;  %v4919_v20 = vld [vmem:[#allocation10 + $0x118] sm:$0xf0] }
 0x81b   : > { %3671 = vmatpush.bf16.msrb.mxu3 %v4838_v47  ;;  %v5129_v47 = vld [vmem:[#allocation12 + $0x130] sm:$0xf]  ;;  %v4922_v4 = vor.u32 %v5370_v14, %v4919_v20  ;;  %v5404_v14 = vld [vmem:[#allocation12 + $0x94] sm:$0xf0] }
 0x81e   : > { %3694 = vmatpush.bf16.msra.mxu2 %v4890_v45  ;;  %v5130_v45 = vor.u32 %v5424_v16, %v5129_v47  ;;  %v5393_v47 = vld [vmem:[#allocation12 + $0x44] sm:$0xf]  ;;  %v5422_v16 = vld [vmem:[#allocation12 + $0x124] sm:$0xf0] }
 0x81f   : > { %3672 = vmatpush.bf16.msrb.mxu3 %v4822_v17  ;;  %v5193_v17 = vld [vmem:[#allocation12 + $0x1b0] sm:$0xf] }
 0x820   : > { %4147 = vmatpush.bf16.msra.mxu0 %v5130_v45  ;;  %v5194_v19 = vor.u32 %v5440_v44, %v5193_v17  ;;  %v5186_v17 = vor.u32 %v5438_v28, %v5185_v31  ;;  %v5042_v44 = vor.u32 %v5402_v53, %v5041_v62  ;;  %v5427_v62 = vld [vmem:[#allocation12 + $0x154] sm:$0xf]  ;;  %v5401_v31 = vld [vmem:[#allocation12 + $0x84] sm:$0xf]  ;;  %v5043_v28 = vld [vmem:[#allocation12 + $0x88] sm:$0xf0] }
 0x822   : > { %3695 = vmatpush.bf16.msra.mxu2 %v4874_v51  ;;  %4160 = vmatpush.bf16.msra.mxu1 %v5194_v19  ;;  %v5017_v51 = vld [vmem:[#allocation12 + $0x50] sm:$0xf]  ;;  %v5102_v19 = vor.u32 %v5415_v52, %v5099_v61  ;;  %v5169_v52 = vld [vmem:[#allocation12 + $0x180] sm:$0xf]  ;;  %v5046_v61 = vor.u32 %v5401_v31, %v5043_v28  ;;  %v3318_v28 = vperm.slane %v7361_v15, 3 }
 0x823   : > { %3673 = vmatpush.bf16.msrb.mxu3 %v4806_v39  ;;  %v5018_v39 = vor.u32 %v5396_v49, %v5017_v51  ;;  %v5091_v51 = vld [vmem:[#allocation12 + $0xe8] sm:$0xf0]  ;;  %v4998_v49 = vor.u32 %v5389_v32, %v4995_v30  ;;  %v3316_v32 = vperm.slane %v7361_v15, 1 }
 0x826   : > { %3696 = vmatpush.bf16.msra.mxu2 %v4858_v59  ;;  %v5074_v59 = vor.u32 %v5410_v57, %v5073_v2  ;;  %4161 = vmatpush.bf16.msra.mxu1 %v5186_v17  ;;  %v5113_v2 = vld [vmem:[#allocation12 + $0x110] sm:$0xf]  ;;  %v5420_v57 = vld [vmem:[#allocation12 + $0x114] sm:$0xf0]  ;;  %v5425_v17 = vld [vmem:[#allocation12 + $0x144] sm:$0xf] }
 0x827   : > { %3674 = vmatpush.bf16.msrb.mxu3 %v4790_v58  ;;  %v5390_v58 = vld [vmem:[#allocation12 + $0x24] sm:$0xf0] }
 0x828   : > { %v4994_v55 = vor.u32 %v5390_v58, %v4993_v8  ;;  %v5436_v8 = vld [vmem:[#allocation12 + $0x194] sm:$0xf0] }
 0x829   : > { %4973 = vmatmul.msk.bf16.vlgmr.msrb.gmra.mxu2 %vm974_vm7, %v7344_v11 }
 0x82a   : > { %3675 = vmatmul.bf16.vlgmr.msrb.gmra.mxu3 %v7342_v13  ;;  %3697 = vmatpush.bf16.msra.mxu2 %v4842_v0  ;;  %v4978_v0 = vor.u32 %v5386_v25, %v4977_v27  ;;  %v5067_v25 = vld [vmem:[#allocation12 + $0xb8] sm:$0xf0] }
 0x82b   : > { %3710 = vmatpush.bf16.msra.mxu3 %v4970_v29  ;;  %v5388_v29 = vld [vmem:[#allocation12 + $0x14] sm:$0xf0] }
 0x82c   : > { %v4986_v34 = vor.u32 %v5388_v29, %v4985_v23  ;;  %v5105_v23 = vld [vmem:[#allocation12 + $0x100] sm:$0xf]  ;;  %v5418_v29 = vld [vmem:[#allocation12 + $0x104] sm:$0xf0] }
 0x82d   : > { %v5106_v27 = vor.u32 %v5418_v29, %v5105_v23  ;;  %v5115_v23 = vld [vmem:[#allocation12 + $0x118] sm:$0xf0]  ;;  %v5441_v29 = vld [vmem:[#allocation12 + $0x1c4] sm:$0xf] }
 0x82e   : > { %3698 = vmatpush.bf16.msra.mxu2 %v4826_v42  ;;  %v5395_v42 = vld [vmem:[#allocation12 + $0x54] sm:$0xf] }
 0x82f   : > { %3711 = vmatpush.bf16.msra.mxu3 %v4954_v36  ;;  %v5030_v36 = vor.u32 %v5397_v50, %v5027_v3  ;;  %v5022_v20 = vor.u32 %v5395_v42, %v5019_v22  ;;  %v5429_v50 = vld [vmem:[#allocation12 + $0x164] sm:$0xf]  ;;  %v5155_v3 = vld [vmem:[#allocation12 + $0x168] sm:$0xf0] }
 0x830   : > { %v5059_v42 = vld [vmem:[#allocation12 + $0xa8] sm:$0xf0] }
 0x832   : > { %3699 = vmatpush.bf16.msra.mxu2 %v4810_v54  ;;  %v5011_v54 = vld [vmem:[#allocation12 + $0x48] sm:$0xf0] }
 0x833   : > { %3712 = vmatpush.bf16.msra.mxu3 %v4938_v56  ;;  %v5049_v56 = vld [vmem:[#allocation12 + $0x90] sm:$0xf]  ;;  %v5014_v45 = vor.u32 %v5393_v47, %v5011_v54 }
 0x834   : > { %v5050_v21 = vor.u32 %v5404_v14, %v5049_v56  ;;  %v5158_v56 = vor.u32 %v5429_v50, %v5155_v3  ;;  %v5195_v50 = vld [vmem:[#allocation12 + $0x1b8] sm:$0xf0] }
 0x836   : > { %3700 = vmatpush.bf16.msra.mxu2 %v4794_v24  ;;  %v5003_v24 = vld [vmem:[#allocation12 + $0x38] sm:$0xf0] }
 0x837   : > { %3713 = vmatpush.bf16.msra.mxu3 %v4922_v4  ;;  %v5122_v4 = vor.u32 %v5422_v16, %v5121_v38  ;;  %v5051_v16 = vld [vmem:[#allocation12 + $0x98] sm:$0xf0] }
 0x839   : > { %3701 = vmatmul.bf16.vlgmr.msra.gmra.mxu2 %v7342_v13  ;;  %v5002_v13 = vor.u32 %v5392_v18, %v5001_v40  ;;  %4148 = vmatpush.bf16.msra.mxu0 %v5122_v4  ;;  %v5114_v40 = vor.u32 %v5420_v57, %v5113_v2  ;;  %v5385_v18 = vld [vmem:[#allocation12 + $0x4] sm:$0xf]  ;;  %v5147_v4 = vld [vmem:[#allocation12 + $0x158] sm:$0xf0] }
 0x83a   : > { %4130 = vmatpush.bf16.msrb.mxu2 %v5098_v7  ;;  %4974 = vmatmul.msk.bf16.vlgmr.msra.gmra.mxu3 %vm974_vm7, %v7344_v11  ;;  %v5066_v11 = vor.u32 %v5408_v12, %v5065_v9  ;;  %v5409_v9 = vld [vmem:[#allocation12 + $0xc4] sm:$0xf]  ;;  %v5075_v12 = vld [vmem:[#allocation12 + $0xc8] sm:$0xf0] }
 0x83b   : > { %4117 = vmatpush.bf16.msrb.mxu3 %v5034_v46  ;;  %v5391_v46 = vld [vmem:[#allocation12 + $0x34] sm:$0xf] }
 0x83c   : > { %v5006_v7 = vor.u32 %v5391_v46, %v5003_v24  ;;  %v5150_v46 = vor.u32 %v5427_v62, %v5147_v4  ;;  %v5139_v24 = vld [vmem:[#allocation12 + $0x148] sm:$0xf0] }
 0x83d   : > { %4149 = vmatpush.bf16.msra.mxu0 %v5114_v40  ;;  %v5142_v30 = vor.u32 %v5425_v17, %v5139_v24  ;;  %v5123_v40 = vld [vmem:[#allocation12 + $0x128] sm:$0xf0] }
 0x83e   : > { %4131 = vmatpush.bf16.msrb.mxu2 %v5090_v43  ;;  %v5171_v62 = vld [vmem:[#allocation12 + $0x188] sm:$0xf0] }
 0x83f   : > { %4118 = vmatpush.bf16.msrb.mxu3 %v5026_v48  ;;  %v5413_v48 = vld [vmem:[#allocation12 + $0xe4] sm:$0xf] }
 0x840   : > { %v5094_v43 = vor.u32 %v5413_v48, %v5091_v51 }
 0x841   : > { %4150 = vmatpush.bf16.msra.mxu0 %v5106_v27 }
 0x842   : > { %4132 = vmatpush.bf16.msrb.mxu2 %v5082_v26  ;;  %v5083_v26 = vld [vmem:[#allocation12 + $0xd8] sm:$0xf0] }
 0x843   : > { %4119 = vmatpush.bf16.msrb.mxu3 %v5018_v39  ;;  %v5411_v39 = vld [vmem:[#allocation12 + $0xd4] sm:$0xf] }
 0x846   : > { %4133 = vmatpush.bf16.msrb.mxu2 %v5074_v59  ;;  %v4979_v59 = vld [vmem:[#allocation12 + $0x8] sm:$0xf0] }
 0x847   : > { %4120 = vmatpush.bf16.msrb.mxu3 %v5010_v37  ;;  %v5086_v37 = vor.u32 %v5411_v39, %v5083_v26  ;;  %v4982_v58 = vor.u32 %v5385_v18, %v4979_v59 }
 0x84a   : > { %4134 = vmatpush.bf16.msrb.mxu2 %v5066_v11  ;;  %v5078_v11 = vor.u32 %v5409_v9, %v5075_v12 }
 0x84b   : > { %4121 = vmatpush.bf16.msrb.mxu3 %v5002_v13  ;;  %v5177_v13 = vld [vmem:[#allocation12 + $0x190] sm:$0xf] }
 0x84e   : > { %4135 = vmatpush.bf16.msrb.mxu2 %v5058_v63 }
 0x84f   : > { %4122 = vmatpush.bf16.msrb.mxu3 %v4994_v55  ;;  %v5178_v55 = vor.u32 %v5436_v8, %v5177_v13  ;;  %v5443_v13 = vld [vmem:[#allocation12 + $0x1d4] sm:$0xf]  ;;  %v5211_v8 = vld [vmem:[#allocation12 + $0x1d8] sm:$0xf0] }
 0x851   : > { %4162 = vmatpush.bf16.msra.mxu1 %v5178_v55  ;;  %v5214_v55 = vor.u32 %v5443_v13, %v5211_v8  ;;  %v3791_v8 = vld [vmem:[%s7443_s11 + $0x10] sm:$0x3] }
 0x852   : > { %4136 = vmatpush.bf16.msrb.mxu2 %v5050_v21  ;;  %v5403_v21 = vld [vmem:[#allocation12 + $0x94] sm:$0xf] }
 0x853   : > { %4123 = vmatpush.bf16.msrb.mxu3 %v4986_v34  ;;  %v5407_v34 = vld [vmem:[#allocation12 + $0xb4] sm:$0xf] }
 0x856   : > { %4137 = vmatpush.bf16.msrb.mxu2 %v5042_v44  ;;  %v5434_v44 = vld [vmem:[#allocation12 + $0x184] sm:$0xf0] }
 0x857   : > { %4124 = vmatpush.bf16.msrb.mxu3 %v4978_v0  ;;  %v3315_v0 = vperm.slane %v7361_v15, 0  ;;  %v5170_v48 = vor.u32 %v5434_v44, %v5169_v52 }
 0x859   : > { %4163 = vmatpush.bf16.msra.mxu1 %v5170_v48  ;;  %v5453_v48 = vld [vmem:[%s7442_s10 + $0x20] sm:$0xff] }
 0x85a   : > { %4182 = vmatpush.bf16.msra.mxu2 %v5102_v19  ;;  %v5227_v19 = vld [vmem:[#allocation12 + $0x1f8] sm:$0xf0] }
 0x85b   : > { %4169 = vmatpush.bf16.msra.mxu3 %v5038_v33  ;;  %v5166_v33 = vor.u32 %v5431_v1, %v5163_v5  ;;  %v5417_v1 = vld [vmem:[#allocation12 + $0x104] sm:$0xf]  ;;  %v5107_v5 = vld [vmem:[#allocation12 + $0x108] sm:$0xf0] }
 0x85c   : > { %v5110_v3 = vor.u32 %v5417_v1, %v5107_v5 }
 0x85d   : > { %4195 = vmatpush.bf16.msrb.mxu0 %v5166_v33  ;;  %v5439_v33 = vld [vmem:[#allocation12 + $0x1b4] sm:$0xf] }
 0x85e   : > { %4183 = vmatpush.bf16.msra.mxu2 %v5094_v43  ;;  %v5423_v43 = vld [vmem:[#allocation12 + $0x134] sm:$0xf] }
 0x85f   : > { %4170 = vmatpush.bf16.msra.mxu3 %v5030_v36  ;;  %v5070_v36 = vor.u32 %v5407_v34, %v5067_v25  ;;  %v5134_v26 = vor.u32 %v5423_v43, %v5131_v41  ;;  %v5203_v34 = vld [vmem:[#allocation12 + $0x1c8] sm:$0xf0]  ;;  %v5451_v41 = vld [vmem:[%s7442_s10 + $0x10] sm:$0xff] }
 0x860   : > { %v5464_v43 = vld [vmem:[%s7442_s10 + $0x78] sm:$0xff] }
 0x861   : > { %4196 = vmatpush.bf16.msrb.mxu0 %v5158_v56 }
 0x862   : > { %4184 = vmatpush.bf16.msra.mxu2 %v5086_v37  ;;  %v5421_v37 = vld [vmem:[#allocation12 + $0x124] sm:$0xf] }
 0x863   : > { %4171 = vmatpush.bf16.msra.mxu3 %v5022_v20  ;;  %v5062_v20 = vor.u32 %v5405_v35, %v5059_v42  ;;  %v5126_v59 = vor.u32 %v5421_v37, %v5123_v40  ;;  %v5437_v35 = vld [vmem:[#allocation12 + $0x1a4] sm:$0xf]  ;;  %v5187_v42 = vld [vmem:[#allocation12 + $0x1a8] sm:$0xf0]  ;;  %v5449_v37 = vld [vmem:[%s7442_s10] sm:$0xff] }
 0x864   : > { %v5461_v40 = vld [vmem:[%s7442_s10 + $0x60] sm:$0xff] }
 0x865   : > { %4197 = vmatpush.bf16.msrb.mxu0 %v5150_v46 }
 0x866   : > { %4185 = vmatpush.bf16.msra.mxu2 %v5078_v11 }
 0x867   : > { %4172 = vmatpush.bf16.msra.mxu3 %v5014_v45  ;;  %v5054_v45 = vor.u32 %v5403_v21, %v5051_v16  ;;  %v5433_v16 = vld [vmem:[#allocation12 + $0x184] sm:$0xf] }
 0x868   : > { %v5174_v31 = vor.u32 %v5433_v16, %v5171_v62  ;;  %v5633_v16 = vld [vmem:[%s7443_s11 + $0x12] ss:$0 sm:$0xff] }
 0x869   : > { %4198 = vmatpush.bf16.msrb.mxu0 %v5142_v30  ;;  %v5454_v30 = vld [vmem:[%s7442_s10 + $0x28] sm:$0xff] }
 0x86a   : > { %4186 = vmatpush.bf16.msra.mxu2 %v5070_v36  ;;  %v3317_v36 = vperm.slane %v7361_v15, 2  ;;  %v5455_v15 = vld [vmem:[%s7442_s10 + $0x30] sm:$0xff] }
 0x86b   : > { %4173 = vmatpush.bf16.msra.mxu3 %v5006_v7  ;;  %v5447_v7 = vld [vmem:[#allocation12 + $0x1f4] sm:$0xf] }
 0x86c   : > { %v5230_v51 = vor.u32 %v5447_v7, %v5227_v19 }
 0x86d   : > { %4199 = vmatpush.bf16.msrb.mxu0 %v5134_v26  ;;  %v5462_v26 = vld [vmem:[%s7442_s10 + $0x68] sm:$0xff] }
 0x86e   : > { %4187 = vmatpush.bf16.msra.mxu2 %v5062_v20  ;;  %4208 = vmatpush.bf16.msrb.mxu1 %v5230_v51  ;;  %v5435_v20 = vld [vmem:[#allocation12 + $0x194] sm:$0xf] }
 0x86f   : > { %4174 = vmatpush.bf16.msra.mxu3 %v4998_v49  ;;  %v5445_v49 = vld [vmem:[#allocation12 + $0x1e4] sm:$0xf] }
 0x870   : > { %v5222_v39 = vor.u32 %v5445_v49, %v5219_v6  ;;  %v5452_v49 = vld [vmem:[%s7442_s10 + $0x18] sm:$0xff]  ;;  %v5463_v6 = vld [vmem:[%s7442_s10 + $0x70] sm:$0xff] }
 0x871   : > { %4200 = vmatpush.bf16.msrb.mxu0 %v5126_v59 }
 0x872   : > { %4188 = vmatpush.bf16.msra.mxu2 %v5054_v45  ;;  %4209 = vmatpush.bf16.msrb.mxu1 %v5222_v39 }
 0x873   : > { %4175 = vmatpush.bf16.msra.mxu3 %v4990_v60 }
 0x876   : > { %4189 = vmatpush.bf16.msra.mxu2 %v5046_v61  ;;  %4210 = vmatpush.bf16.msrb.mxu1 %v5214_v55  ;;  %v3793_v55 = vperm.slane %v3791_v8, 0 }
 0x877   : > { %4176 = vmatpush.bf16.msra.mxu3 %v4982_v58  ;;  %v5419_v58 = vld [vmem:[#allocation12 + $0x114] sm:$0xf] }
 0x878   : > { %v5118_v25 = vor.u32 %v5419_v58, %v5115_v23  ;;  %v5458_v58 = vld [vmem:[%s7442_s10 + $0x48] sm:$0xff]  ;;  %v5457_v23 = vld [vmem:[%s7442_s10 + $0x40] sm:$0xff] }
 0x87a   : > { %4201 = vmatpush.bf16.msrb.mxu0 %v5118_v25 }
 0x87e   : > { %4202 = vmatpush.bf16.msrb.mxu0 %v5110_v3 }
 0x88c   : > { %v3624_v10 = vpop.f32.mrf.mxu2 }
 0x88d   : > { %v3625_v63 = vadd.f32 %v3624_v10, %v3315_v0  ;;  %v3637_v22 = vpop.f32.mrf.mxu3  ;;  %v5206_v0 = vor.u32 %v5441_v29, %v5203_v34  ;;  %v5198_v10 = vor.u32 %v5439_v33, %v5195_v50 }
 0x88f   : > { %v3638_v14 = vadd.f32 %v3637_v22, %v3625_v63  ;;  %4211 = vmatpush.bf16.msrb.mxu1 %v5206_v0 }
 0x891   : > { %v3719_v47 = vmax.f32 %v3638_v14, 0.0  ;;  %v5190_v14 = vor.u32 %v5437_v35, %v5187_v42 }
 0x893   : > { %v3787_v54 = vpack.c.bf16 %v3719_v47, %v3719_v47  ;;  %4212 = vmatpush.bf16.msrb.mxu1 %v5198_v10  ;;  %v5179_v47 = vld [vmem:[#allocation12 + $0x198] sm:$0xf0] }
 0x894   : > { %v3626_v38 = vpop.f32.mrf.mxu2  ;;  %v5182_v21 = vor.u32 %v5435_v20, %v5179_v47 }
 0x895   : > { %v3639_v53 = vpop.f32.mrf.mxu3  ;;  %4125 = vmatmul.bf16.vlgmr.msrb.gmra.mxu3 %v3787_v54 }
 0x897   : > { %4213 = vmatpush.bf16.msrb.mxu1 %v5190_v14 }
 0x89b   : > { %4214 = vmatpush.bf16.msrb.mxu1 %v5182_v21 }
 0x89c   : > { %v3650_v60 = vpop.f32.mrf.mxu2 }
 0x89d   : > { %v3651_v2 = vadd.f32 %v3650_v60, %v3316_v32  ;;  %v3663_v57 = vpop.f32.mrf.mxu3  ;;  %v5456_v32 = vld [vmem:[%s7442_s10 + $0x38] sm:$0xff]  ;;  %v5450_v60 = vld [vmem:[%s7442_s10 + $0x8] sm:$0xff] }
 0x89e   : > { %4357 = vmatpush.bf16.msrb.mxu3 %v5456_v32 }
 0x89f   : > { %v3664_v18 = vadd.f32 %v3663_v57, %v3651_v2  ;;  %4215 = vmatpush.bf16.msrb.mxu1 %v5174_v31 }
 0x8a1   : > { %v3720_v9 = vmax.f32 %v3664_v18, 0.0  ;;  %v5460_v18 = vld [vmem:[%s7442_s10 + $0x58] sm:$0xff] }
 0x8a2   : > { %4358 = vmatpush.bf16.msrb.mxu3 %v5455_v15  ;;  %v4399_v15 = vpop.permute.xlu0 %4398 }
 0x8a3   : > { %v3788_v12 = vpack.c.bf16 %v3720_v9, %v3720_v9 }
 0x8a4   : > { %v3652_v11 = vpop.f32.mrf.mxu2 }
 0x8a5   : > { %v3665_v27 = vpop.f32.mrf.mxu3  ;;  %4138 = vmatmul.bf16.vlgmr.msrb.gmra.mxu2 %v3788_v12  ;;  %4177 = vmatmul.bf16.vlgmr.msra.gmra.mxu3 %v3787_v54 }
 0x8a6   : > { %4359 = vmatpush.bf16.msrb.mxu3 %v5454_v30  ;;  %4370 = vmatpush.bf16.msrb.mxu2 %v5464_v43 }
 0x8aa   : > { %4360 = vmatpush.bf16.msrb.mxu3 %v5453_v48  ;;  %4371 = vmatpush.bf16.msrb.mxu2 %v5463_v6 }
 0x8ac   : > { %v3689_v63 = vpop.f32.mrf.mxu2 }
 0x8ad   : > { %v3676_v22 = vpop.f32.mrf.mxu3 }
 0x8ae   : > { %v3677_v56 = vadd.f32 %v3676_v22, %v3317_v36  ;;  %4361 = vmatpush.bf16.msrb.mxu3 %v5452_v49  ;;  %4372 = vmatpush.bf16.msrb.mxu2 %v5462_v26  ;;  %v3794_v36 = vperm.slane %v3791_v8, 1 }
 0x8b0   : > { %v3690_v54 = vadd.f32 %v3689_v63, %v3677_v56 }
 0x8b2   : > { %v3721_v38 = vmax.f32 %v3690_v54, 0.0  ;;  %4362 = vmatpush.bf16.msrb.mxu3 %v5451_v41  ;;  %4373 = vmatpush.bf16.msrb.mxu2 %v5461_v40 }
 0x8b4   : > { %v3789_v53 = vpack.c.bf16 %v3721_v38, %v3721_v38  ;;  %v3691_v45 = vpop.f32.mrf.mxu2 }
 0x8b5   : > { %v3678_v4 = vpop.f32.mrf.mxu3  ;;  %4190 = vmatmul.bf16.vlgmr.msra.gmra.mxu2 %v3788_v12  ;;  %v5459_v12 = vld [vmem:[%s7442_s10 + $0x50] sm:$0xff] }
 0x8b6   : > { %4151 = vmatmul.bf16.vlgmr.msra.gmra.mxu0 %v3789_v53  ;;  %4363 = vmatpush.bf16.msrb.mxu3 %v5450_v60 }
 0x8b7   : > { %4374 = vmatpush.bf16.msrb.mxu2 %v5460_v18 }
 0x8ba   : > { %4364 = vmatpush.bf16.msrb.mxu3 %v5449_v37 }
 0x8bb   : > { %4375 = vmatpush.bf16.msrb.mxu2 %v5459_v12 }
 0x8bc   : > { %v3702_v46 = vpop.f32.mrf.mxu2 }
 0x8bd   : > { %v3703_v17 = vadd.f32 %v3702_v46, %v3318_v28  ;;  %v3715_v24 = vpop.f32.mrf.mxu3  ;;  %v5960_v28 = vmov 0.0  }
 0x8be   : > { %4396 = vst [vmem:[%s532_s15] sm:$0xff] %v5960_v28 }
 0x8bf   : > { %v3716_v52 = vadd.f32 %v3715_v24, %v3703_v17  ;;  %4376 = vmatpush.bf16.msrb.mxu2 %v5458_v58 }
 0x8c1   : > { %v3722_v61 = vmax.f32 %v3716_v52, 0.0 }
 0x8c3   : > { %v3790_v44 = vpack.c.bf16 %v3722_v61, %v3722_v61  ;;  %4377 = vmatpush.bf16.msrb.mxu2 %v5457_v23 }
 0x8c4   : > { %v3704_v7 = vpop.f32.mrf.mxu2 }
 0x8c5   : > { %v3717_v19 = vpop.f32.mrf.mxu3  ;;  %4164 = vmatmul.bf16.vlgmr.msra.gmra.mxu1 %v3790_v44 }
 0x8c6   : > { %4203 = vmatmul.bf16.vlgmr.msrb.gmra.mxu0 %v3789_v53 }
 0x8d5   : > { %4216 = vmatmul.bf16.vlgmr.msrb.gmra.mxu1 %v3790_v44 }
 0x918   : > { %v4126_v51 = vpop.f32.mrf.mxu3 }
 0x919   : > { %v4127_v34 = vadd.f32 %v4126_v51, %v3793_v55 }
 0x920   : > { %v4128_v39 = vpop.f32.mrf.mxu3 }
 0x928   : > { %v4139_v2 = vpop.f32.mrf.mxu2  ;;  %v4178_v57 = vpop.f32.mrf.mxu3 }
 0x929   : > { %v4140_v27 = vadd.f32 %v4139_v2, %v4127_v34  ;;  %v4179_v42 = vadd.f32 %v4178_v57, %v3794_v36 }
 0x930   : > { %v4141_v59 = vpop.f32.mrf.mxu2  ;;  %v4180_v9 = vpop.f32.mrf.mxu3 }
 0x933   : > { %v4152_v13 = vpop.f32.mrf.mxu0 }
 0x934   : > { %v4153_v1 = vadd.f32 %v4152_v13, %v4140_v27 }
 0x938   : > { %v4191_v11 = vpop.f32.mrf.mxu2 }
 0x939   : > { %v4192_v63 = vadd.f32 %v4191_v11, %v4179_v42 }
 0x93b   : > { %v4154_v29 = vpop.f32.mrf.mxu0 }
 0x940   : > { %v4193_v25 = vpop.f32.mrf.mxu2 }
 0x942   : > { %v4165_v5 = vpop.f32.mrf.mxu1 }
 0x943   : > { %v4166_v0 = vadd.f32 %v4165_v5, %v4153_v1  ;;  %v4204_v33 = vpop.f32.mrf.mxu0 }
 0x944   : > { %v4205_v22 = vadd.f32 %v4204_v33, %v4192_v63 }
 0x945   : > { %v4221_v50 = vmax.f32 %v4166_v0, 0.0 }
 0x947   : > { %v4255_v3 = vpack.c.bf16 %v4221_v50, %v4221_v50 }
 0x949   : > { %4365 = vmatmul.bf16.vlgmr.msrb.gmra.mxu3 %v4255_v3 }
 0x94a   : > { %v4167_v10 = vpop.f32.mrf.mxu1 }
 0x94b   : > { %v4206_v35 = vpop.f32.mrf.mxu0 }
 0x952   : > { %v4217_v56 = vpop.f32.mrf.mxu1 }
 0x953   : > { %v4218_v14 = vadd.f32 %v4217_v56, %v4205_v22 }
 0x955   : > { %v4222_v20 = vmax.f32 %v4218_v14, 0.0 }
 0x957   : > { %v4256_v47 = vpack.c.bf16 %v4222_v20, %v4222_v20 }
 0x959   : > { %4378 = vmatmul.bf16.vlgmr.msrb.gmra.mxu2 %v4256_v47 }
 0x95a   : > { %v4219_v54 = vpop.f32.mrf.mxu1 }
 0x9cc   : > { %v4366_v38 = vpop.f32.mrf.mxu3 }
 0x9cd   : > { %v4367_v62 = vadd.f32 %v5633_v16, %v4366_v38 }
 0x9d4   : > { %v4368_v21 = vpop.f32.mrf.mxu3 }
 0x9dc   : > { %v4379_v53 = vpop.f32.mrf.mxu2 }
 0x9dd   : > { %v4380_v45 = vadd.f32 %v4379_v53, %v4367_v62 }
 0x9df   : > { %v4384_v4 = vsel %vm4383_vm2, %v4380_v45, -inf }
 0x9e0   : > { %4385 = vmax.xlane.f32.xlu1 %v4384_v4 }
 0x9e4   : > { %v4381_v31 = vpop.f32.mrf.mxu2 }
 0xa53   : > { %v4386_v46 = vpop.xlane.xlu1 %4385 }
 0xa54   : > { %v4387_v17 = vsub.f32 %v4380_v45, %v4386_v46 }
 0xa56   : > { %v4388_v24 = vmul.f32 1.442695, %v4387_v17 }
 0xa58   : > { %5682 = vpow2.f32 %v4388_v24 }
 0xa5e   : > { %v5683_v52 = vpop.eup %5682 }
 0xa5f   : > { %v4390_v61 = vsel %vm4383_vm2, %v5683_v52, 0.0 }
 0xa60   : > { %4391 = vadd.xlane.f32.xlu2 %v4390_v61 }
 0xad3   : > { %v4392_v44 = vpop.xlane.xlu2 %4391 }
 0xad4   : > { %5684 = vlog2.f32 %v4392_v44 }
 0xada   : > { %v5685_v7 = vpop.eup %5684 }
 0xadb   : > { %v4394_v19 = vmul.f32 0.6931472, %v5685_v7 }
 0xadd   : > { %v4395_v32 = vsub.f32 %v4387_v17, %v4394_v19 }
 0xadf   : > { %4397 = vst.msk [vmem:[%s532_s15] sm:$0xff] %vm4383_vm2, %v4395_v32 }
 0xae0   : > { %4402 = vst.msk [vmem:[%s532_s15] sm:$0xff] %vm4401_vm3, %v4399_v15 }
 0xae1 PF: > { %s26_s21 = sadd.s32 1, %s5934_s21  }
 0xae2   : > { %p23_p8 = scmp.ge.s32.totalorder %s26_s21, 4  }
 0xae4   :  { %25 = sbr.rel (!%p23_p8) target bundleno = 7 (0x7), region = 130 }
 0xae9   :  { %4422 = vsyncpa [#allocation3], 1 }
 0xaea   :  { %4424 = vsyncpa [#allocation3 + $0x1], 1 }
 0xaeb   :  { %4425 = vsyncpa [#allocation5], 1 }
 0xaec   :  { %4426 = vsyncpa [#allocation8], 1 }
 0xaed   :  { %4427 = vsyncpa [#allocation11], 1 }

</bundles_post_ra>
